<compile_context>
chip_gen: v6e
topology: v6e:2x2x1
jax: 0.10.0
libtpu: 0.0.40
codegen_flags: <defaults>
</compile_context>

<pallas_src>
import functools

import numpy as np
import jax
import jax.numpy as jnp
from jax import lax
from jax.experimental import pallas as pl
from jax.experimental.pallas import tpu as pltpu

_EPS = 1e-5   # nn.BatchNorm2d default eps
_LANE = 128   # TPU lane width


# --------------------------------------------------------------------------
# In-kernel full im2col for a 3x3 "same" conv over a zero-padded image value.
# The concat is along the lane axis (each piece is a full 128-lane tile),
# so each 3x3 conv collapses to a single wide-K MXU matmul.
# --------------------------------------------------------------------------
def _im2col_3x3(xpad, H, W, C):
  """xpad: (H+2, W+2, C) value with zero halo -> (H*W, 9*C) patch matrix."""
  cols = []
  for dy in range(3):
    for dx in range(3):
      cols.append(xpad[dy:dy + H, dx:dx + W, :])
  patch = jnp.concatenate(cols, axis=-1)          # (H, W, 9*C)
  return patch.reshape(H * W, 9 * C)


# --------------------------------------------------------------------------
# Fused kernel: conv1+BN1+ReLU -> (VMEM halo scratch) -> conv2+BN2 + skip
#               (+ merged bias) + optional output ReLU.
# Weights arrive with the BN scale already folded in; biases are the only
# per-channel vectors left.
# --------------------------------------------------------------------------
def _residual_block_kernel(*refs, H, W, Cinp, Coutp, identity_skip,
                           output_activation):
  if identity_skip:
    (xpad_ref, w1_ref, b1_ref, w2_ref, bout_ref, out_ref, h1pad_ref) = refs
    wskip_ref = None
  else:
    (xpad_ref, w1_ref, b1_ref, w2_ref, wskip_ref, bout_ref, out_ref,
     h1pad_ref) = refs

  cdt = w1_ref.dtype   # compute dtype of the MXU operands (default bf16)

  # One aligned full-block load of the padded input tile (already in compute
  # dtype, so the DMA was narrow).  Widen to f32 for the shifted value
  # slices; the im2col patch is cast back to the compute dtype for the MXU.
  xv = xpad_ref[0].astype(jnp.float32)            # (H+2, W+2, Cinp)

  # ---- stage 1: conv1 (BN1 scale folded into w1) + bias + ReLU ----------
  patch1 = _im2col_3x3(xv, H, W, Cinp).astype(cdt)
  h1 = jnp.dot(patch1, w1_ref[...], preferred_element_type=jnp.float32)
  h1 = jnp.maximum(h1 + b1_ref[...], 0.0)         # (H*W, Coutp) f32

  # Keep h1 in VMEM with a 1-px zero halo (no HBM round trip).  Only the
  # halo ring is zeroed -- the interior is fully overwritten every step.
  # The ring is re-zeroed every grid step: scratch memory is uninitialized
  # and with a megacore-"parallel" grid each core has its own copy.
  zrow = jnp.zeros((1, W + 2, Coutp), jnp.float32)
  zcol = jnp.zeros((H, 1, Coutp), jnp.float32)
  h1pad_ref[0:1, :, :] = zrow
  h1pad_ref[H + 1:H + 2, :, :] = zrow
  h1pad_ref[1:H + 1, 0:1, :] = zcol
  h1pad_ref[1:H + 1, W + 1:W + 2, :] = zcol
  h1pad_ref[1:H + 1, 1:W + 1, :] = h1.reshape(H, W, Coutp)

  # ---- stage 2: conv2 (BN2 scale folded) + skip + merged bias -----------
  patch2 = _im2col_3x3(h1pad_ref[...], H, W, Coutp).astype(cdt)
  y = jnp.dot(patch2, w2_ref[...], preferred_element_type=jnp.float32)

  x_center = xv[1:H + 1, 1:W + 1, :]
  if identity_skip:
    # nn.Identity skip: add x directly (padded channels are zero).
    y = y + x_center.reshape(H * W, Coutp)
  else:
    xc = x_center.reshape(H * W, Cinp).astype(cdt)
    y = y + jnp.dot(xc, wskip_ref[...], preferred_element_type=jnp.float32)

  y = y + bout_ref[...]                           # b2 + folded skip bias
  if output_activation:
    y = jnp.maximum(y, 0.0)
  out_ref[0] = y.reshape(H, W, Coutp).astype(out_ref.dtype)


# --------------------------------------------------------------------------
# Wrapper / parameter folding
# --------------------------------------------------------------------------
def _round_up(x, m):
  return ((x + m - 1) // m) * m


def _fold_bn(gamma, beta, mean, var):
  scale = gamma / jnp.sqrt(var + _EPS)
  shift = beta - mean * scale
  return scale, shift


def _pad_vec(v, n):
  return jnp.pad(v, (0, n - v.shape[0])).reshape(1, n).astype(jnp.float32)


def _prep_conv3x3_weight(w_hwio, scale, cin_p, cout_p, dtype):
  """Fold BN scale into the conv kernel, zero-pad channels to lane-dense
  sizes and flatten the 3x3 taps into the contraction axis:
  (3,3,Ci,Co) -> (9*cin_p, cout_p), row index = (dy*3+dx)*cin_p + ci
  (matches the im2col concat order in the kernel)."""
  w = w_hwio * scale[None, None, None, :]
  kh, kw, ci, co = w.shape
  w = jnp.pad(w, ((0, 0), (0, 0), (0, cin_p - ci), (0, cout_p - co)))
  return w.reshape(kh * kw * cin_p, cout_p).astype(dtype)


def _vmem_limit_bytes(H, W, Cinp, Coutp, itemsize, identity_skip):
  """Explicit scoped-VMEM budget from the actual per-step buffers, with
  headroom, floored at the 32 MiB default and capped at 56 MiB (safe on
  v7x's 64 MiB physical VMEM; well under 128 MiB on v5e/v6e)."""
  xpad_b = (H + 2) * (W + 2) * Cinp * itemsize
  out_b = H * W * Coutp * 4
  w_b = (9 * Cinp * Coutp + 9 * Coutp * Coutp) * itemsize
  if not identity_skip:
    w_b += Cinp * Coutp * itemsize
  bias_b = 2 * Coutp * 4
  scratch_b = (H + 2) * (W + 2) * Coutp * 4
  patches_b = H * W * 9 * (Cinp + Coutp) * (4 + itemsize)
  est = 2 * (xpad_b + out_b) + 2 * (w_b + bias_b) + scratch_b + patches_b
  est = int(est * 1.5) + (4 << 20)
  return max(min(est, 56 << 20), 32 << 20)


def mock_residual_block_pallas(x_nchw, params, *, output_activation=True,
                               compute_dtype=jnp.bfloat16):
  """Forward pass of MockResidualBlock. NCHW in / NCHW out.

  compute_dtype: dtype of the MXU operands (weights + im2col patches + input
  DMA).  bfloat16 (default) gives 2-4x MXU throughput and half the input
  HBM traffic; jnp.float32 keeps tight accuracy.  Accumulation is f32 either
  way.
  """
  N, Cin, H, W = x_nchw.shape
  Cout = params["w1"].shape[-1]
  Cinp = _round_up(Cin, _LANE)
  Coutp = _round_up(Cout, _LANE)
  identity_skip = "wskip" not in params

  # NHWC, 1-px spatial zero pad + channel zero pad (lane-dense last dim).
  # Cast to the compute dtype here so the input DMA is already narrow.
  # TODO(synk): in a RealNVP stack keep activations NHWC / channel-padded
  #             between blocks; the transpose+pad here and slice+transpose
  #             on exit are whole extra HBM passes paid per block.
  # TODO(synk): for tiny channel counts (Cin<<128) the per-tap lane padding
  #             inflates MXU work; a round_up(9*Cin,128) packing would shrink
  #             it at the cost of lane-level repacking (XLU shuffles).
  x = jnp.transpose(x_nchw, (0, 2, 3, 1)).astype(compute_dtype)
  xpad = jnp.pad(x, ((0, 0), (1, 1), (1, 1), (0, Cinp - Cin)))

  s1, b1 = _fold_bn(*params["bn1"])
  s2, b2 = _fold_bn(*params["bn2"])

  w1 = _prep_conv3x3_weight(params["w1"], s1, Cinp, Coutp, compute_dtype)
  w2 = _prep_conv3x3_weight(params["w2"], s2, Coutp, Coutp, compute_dtype)
  b1p = _pad_vec(b1, Coutp)

  operands = [xpad, w1, b1p, w2]
  in_specs = [
      pl.BlockSpec((1, H + 2, W + 2, Cinp), lambda n: (n, 0, 0, 0)),
      pl.BlockSpec((9 * Cinp, Coutp), lambda n: (0, 0)),
      pl.BlockSpec((1, Coutp), lambda n: (0, 0)),
      pl.BlockSpec((9 * Coutp, Coutp), lambda n: (0, 0)),
  ]
  if identity_skip:
    bout = _pad_vec(b2, Coutp)
  else:
    ss, bs = _fold_bn(*params["bns"])
    wskip = jnp.pad(params["wskip"] * ss[None, :],
                    ((0, Cinp - Cin), (0, Coutp - Cout))).astype(compute_dtype)
    bout = _pad_vec(b2 + params["bskip"] * ss + bs, Coutp)
    operands.append(wskip)
    in_specs.append(pl.BlockSpec((Cinp, Coutp), lambda n: (0, 0)))
  operands.append(bout)
  in_specs.append(pl.BlockSpec((1, Coutp), lambda n: (0, 0)))

  kernel = functools.partial(
      _residual_block_kernel, H=H, W=W, Cinp=Cinp, Coutp=Coutp,
      identity_skip=identity_skip, output_activation=output_activation)

  vmem_limit = _vmem_limit_bytes(H, W, Cinp, Coutp,
                                 jnp.dtype(compute_dtype).itemsize,
                                 identity_skip)

  y = pl.pallas_call(
      kernel,
      out_shape=jax.ShapeDtypeStruct((N, H, W, Coutp), jnp.float32),
      grid_spec=pltpu.PrefetchScalarGridSpec(
          num_scalar_prefetch=0,
          grid=(N,),
          in_specs=in_specs,
          out_specs=pl.BlockSpec((1, H, W, Coutp), lambda n: (n, 0, 0, 0)),
          scratch_shapes=[pltpu.VMEM((H + 2, W + 2, Coutp), jnp.float32)],
      ),
      compiler_params=pltpu.CompilerParams(
          dimension_semantics=("parallel",),
          vmem_limit_bytes=vmem_limit),
  )(*operands)

  # Drop the channel padding, back to NCHW.
  return jnp.transpose(y[..., :Cout], (0, 3, 1, 2))


# --------------------------------------------------------------------------
# Deterministic parameter init (conv weights in HWIO layout)
# --------------------------------------------------------------------------
def init_params(key, c_in, c_out):
  ks = jax.random.split(key, 7)

  def bn_params(k):
    k1, k2, k3, k4 = jax.random.split(k, 4)
    gamma = jax.random.uniform(k1, (c_out,), jnp.float32, 0.5, 1.5)
    beta = 0.1 * jax.random.normal(k2, (c_out,), jnp.float32)
    mean = 0.1 * jax.random.normal(k3, (c_out,), jnp.float32)
    var = jax.random.uniform(k4, (c_out,), jnp.float32, 0.5, 1.5)
    return (gamma, beta, mean, var)

  params = {
      "w1": 0.3 * jax.random.normal(ks[0], (3, 3, c_in, c_out), jnp.float32),
      "w2": 0.3 * jax.random.normal(ks[1], (3, 3, c_out, c_out), jnp.float32),
      "bn1": bn_params(ks[2]),
      "bn2": bn_params(ks[3]),
  }
  if c_in != c_out:   # conv + BN skip path (nn.Identity otherwise)
    params["wskip"] = 0.3 * jax.random.normal(ks[4], (c_in, c_out), jnp.float32)
    params["bskip"] = 0.1 * jax.random.normal(ks[5], (c_out,), jnp.float32)
    params["bns"] = bn_params(ks[6])
  return params


# --------------------------------------------------------------------------
# Pure-JAX reference (for correctness check)
# --------------------------------------------------------------------------
def ref_forward(x_nchw, params, output_activation=True):
  def conv3x3(x, w_hwio):
    return lax.conv_general_dilated(
        x, w_hwio, (1, 1), ((1, 1), (1, 1)),
        dimension_numbers=("NCHW", "HWIO", "NCHW"),
        precision=lax.Precision.HIGHEST)

  def bn(x, p):
    gamma, beta, mean, var = p
    b = lambda v: v[None, :, None, None]
    return (x - b(mean)) / jnp.sqrt(b(var) + _EPS) * b(gamma) + b(beta)

  h = jax.nn.relu(bn(conv3x3(x_nchw, params["w1"]), params["bn1"]))
  h = bn(conv3x3(h, params["w2"]), params["bn2"])

  if "wskip" in params:
    c_in, c_out = params["wskip"].shape
    wskip_hwio = params["wskip"].reshape(1, 1, c_in, c_out)
    s = lax.conv_general_dilated(
        x_nchw, wskip_hwio, (1, 1), ((0, 0), (0, 0)),
        dimension_numbers=("NCHW", "HWIO", "NCHW"),
        precision=lax.Precision.HIGHEST)
    s = bn(s + params["bskip"][None, :, None, None], params["bns"])
  else:
    s = x_nchw

  y = h + s
  return jax.nn.relu(y) if output_activation else y


if __name__ == "__main__":
  key = jax.random.PRNGKey(0)
  kx, kx2, kp1, kp2 = jax.random.split(key, 4)

  # Tolerances cover bf16 MXU-operand rounding (default path) against the
  # f32 reference; output magnitudes here are O(1)-O(5).
  TOL = dict(rtol=3e-2, atol=1e-1)

  # Case 1: c_in != c_out -> conv(1x1)+BN skip path, default bf16 operands.
  N, C_IN, C_OUT, H, W = 2, 4, 8, 16, 16
  x = jax.random.normal(kx, (N, C_IN, H, W), jnp.float32)
  params = init_params(kp1, C_IN, C_OUT)
  out = jax.block_until_ready(
      mock_residual_block_pallas(x, params, output_activation=True))
  ref = ref_forward(x, params, output_activation=True)
  np.testing.assert_allclose(np.asarray(out), np.asarray(ref), **TOL)

  # Case 2: c_in == c_out -> identity skip, no output ReLU, f32 operands.
  x2 = jax.random.normal(kx2, (N, C_OUT, H, W), jnp.float32)
  params_id = init_params(kp2, C_OUT, C_OUT)
  out2 = jax.block_until_ready(
      mock_residual_block_pallas(x2, params_id, output_activation=False,
                                 compute_dtype=jnp.float32))
  ref2 = ref_forward(x2, params_id, output_activation=False)
  np.testing.assert_allclose(np.asarray(out2), np.asarray(ref2), **TOL)

  print("KERNEL_OK")
</pallas_src>

<mosaic_0001>
module attributes {stable_mosaic.version = 11 : i64} {
  func.func @_residual_block_kernel(%arg0: i32, %arg1: memref<1x18x18x128xbf16, #tpu.memory_space<vmem>>, %arg2: memref<1152x128xbf16, #tpu.memory_space<vmem>>, %arg3: memref<1x128xf32, #tpu.memory_space<vmem>>, %arg4: memref<1152x128xbf16, #tpu.memory_space<vmem>>, %arg5: memref<128x128xbf16, #tpu.memory_space<vmem>>, %arg6: memref<1x128xf32, #tpu.memory_space<vmem>>, %arg7: memref<1x16x16x128xf32, #tpu.memory_space<vmem>>, %arg8: memref<18x18x128xf32, #tpu.memory_space<vmem>>) attributes {dimension_semantics = [#tpu.dimension_semantics<parallel>], iteration_bounds = array<i64: 2>, scalar_prefetch = 0 : i64, scratch_operands = 1 : i64, tpu.core_type = #tpu.core_type<tc>, window_params = [{transform_indices = @transform_0, window_bounds = array<i64: 1, 18, 18, 128>}, {pipeline_mode = #tpu.pipeline_mode<synchronous>, transform_indices = @transform_1, window_bounds = array<i64: 1152, 128>}, {pipeline_mode = #tpu.pipeline_mode<synchronous>, transform_indices = @transform_2, window_bounds = array<i64: 1, 128>}, {pipeline_mode = #tpu.pipeline_mode<synchronous>, transform_indices = @transform_3, window_bounds = array<i64: 1152, 128>}, {pipeline_mode = #tpu.pipeline_mode<synchronous>, transform_indices = @transform_4, window_bounds = array<i64: 128, 128>}, {pipeline_mode = #tpu.pipeline_mode<synchronous>, transform_indices = @transform_5, window_bounds = array<i64: 1, 128>}, {transform_indices = @transform_6, window_bounds = array<i64: 1, 16, 16, 128>}]} {
    %c0 = arith.constant 0 : index
    %c0_0 = arith.constant 0 : index
    %c0_1 = arith.constant 0 : index
    %c0_2 = arith.constant 0 : index
    %0 = vector.load %arg1[%c0, %c0_0, %c0_1, %c0_2] : memref<1x18x18x128xbf16, #tpu.memory_space<vmem>>, vector<1x18x18x128xbf16>
    %1 = vector.shape_cast %0 : vector<1x18x18x128xbf16> to vector<18x18x128xbf16>
    %2 = arith.extf %1 : vector<18x18x128xbf16> to vector<18x18x128xf32>
    %3 = vector.extract_strided_slice %2 {offsets = [0, 0, 0], sizes = [16, 16, 128], strides = [1, 1, 1]} : vector<18x18x128xf32> to vector<16x16x128xf32>
    %4 = vector.extract_strided_slice %2 {offsets = [0, 1, 0], sizes = [16, 16, 128], strides = [1, 1, 1]} : vector<18x18x128xf32> to vector<16x16x128xf32>
    %5 = vector.extract_strided_slice %2 {offsets = [0, 2, 0], sizes = [16, 16, 128], strides = [1, 1, 1]} : vector<18x18x128xf32> to vector<16x16x128xf32>
    %6 = vector.extract_strided_slice %2 {offsets = [1, 0, 0], sizes = [16, 16, 128], strides = [1, 1, 1]} : vector<18x18x128xf32> to vector<16x16x128xf32>
    %7 = vector.extract_strided_slice %2 {offsets = [1, 1, 0], sizes = [16, 16, 128], strides = [1, 1, 1]} : vector<18x18x128xf32> to vector<16x16x128xf32>
    %8 = vector.extract_strided_slice %2 {offsets = [1, 2, 0], sizes = [16, 16, 128], strides = [1, 1, 1]} : vector<18x18x128xf32> to vector<16x16x128xf32>
    %9 = vector.extract_strided_slice %2 {offsets = [2, 0, 0], sizes = [16, 16, 128], strides = [1, 1, 1]} : vector<18x18x128xf32> to vector<16x16x128xf32>
    %10 = vector.extract_strided_slice %2 {offsets = [2, 1, 0], sizes = [16, 16, 128], strides = [1, 1, 1]} : vector<18x18x128xf32> to vector<16x16x128xf32>
    %11 = vector.extract_strided_slice %2 {offsets = [2, 2, 0], sizes = [16, 16, 128], strides = [1, 1, 1]} : vector<18x18x128xf32> to vector<16x16x128xf32>
    %12 = tpu.concatenate %3, %4, %5, %6, %7, %8, %9, %10, %11 in 2 : vector<16x16x128xf32>, vector<16x16x128xf32>, vector<16x16x128xf32>, vector<16x16x128xf32>, vector<16x16x128xf32>, vector<16x16x128xf32>, vector<16x16x128xf32>, vector<16x16x128xf32>, vector<16x16x128xf32> -> vector<16x16x1152xf32>
    %13 = vector.shape_cast %12 : vector<16x16x1152xf32> to vector<256x1152xf32>
    %14 = arith.truncf %13 : vector<256x1152xf32> to vector<256x1152xbf16>
    %c0_3 = arith.constant 0 : index
    %c0_4 = arith.constant 0 : index
    %15 = vector.load %arg2[%c0_3, %c0_4] : memref<1152x128xbf16, #tpu.memory_space<vmem>>, vector<1152x128xbf16>
    %cst = arith.constant dense<0.000000e+00> : vector<256x128xf32>
    %16 = tpu.matmul %14, %15, %cst {dimension_numbers = #tpu.dot_dimension_numbers<[1], [0], [0], [1], [0, 0, 1, 1], [], []>} : vector<256x1152xbf16>, vector<1152x128xbf16>, vector<256x128xf32> -> vector<256x128xf32>
    %c0_5 = arith.constant 0 : index
    %c0_6 = arith.constant 0 : index
    %17 = vector.load %arg3[%c0_5, %c0_6] : memref<1x128xf32, #tpu.memory_space<vmem>>, vector<1x128xf32>
    %18 = vector.broadcast %17 : vector<1x128xf32> to vector<256x128xf32>
    %19 = arith.addf %16, %18 : vector<256x128xf32>
    %cst_7 = arith.constant 0.000000e+00 : f32
    %20 = vector.broadcast %cst_7 : f32 to vector<256x128xf32>
    %21 = arith.maximumf %19, %20 : vector<256x128xf32>
    %cst_8 = arith.constant 0.000000e+00 : f32
    %22 = vector.broadcast %cst_8 : f32 to vector<1x18x128xf32>
    %cst_9 = arith.constant 0.000000e+00 : f32
    %23 = vector.broadcast %cst_9 : f32 to vector<16x1x128xf32>
    %c0_10 = arith.constant 0 : index
    %c0_11 = arith.constant 0 : index
    %c0_12 = arith.constant 0 : index
    %24 = vector.load %arg8[%c0_10, %c0_11, %c0_12] : memref<18x18x128xf32, #tpu.memory_space<vmem>>, vector<1x18x128xf32>
    tpu.vector_store %arg8[%c0_10, %c0_11, %c0_12], %22 {strides = array<i32>} : memref<18x18x128xf32, #tpu.memory_space<vmem>>, vector<1x18x128xf32>,
    %c17 = arith.constant 17 : index
    %c0_13 = arith.constant 0 : index
    %c0_14 = arith.constant 0 : index
    %25 = vector.load %arg8[%c17, %c0_13, %c0_14] : memref<18x18x128xf32, #tpu.memory_space<vmem>>, vector<1x18x128xf32>
    tpu.vector_store %arg8[%c17, %c0_13, %c0_14], %22 {strides = array<i32>} : memref<18x18x128xf32, #tpu.memory_space<vmem>>, vector<1x18x128xf32>,
    %c1 = arith.constant 1 : index
    %c0_15 = arith.constant 0 : index
    %c0_16 = arith.constant 0 : index
    %26 = vector.load %arg8[%c1, %c0_15, %c0_16] : memref<18x18x128xf32, #tpu.memory_space<vmem>>, vector<16x1x128xf32>
    tpu.vector_store %arg8[%c1, %c0_15, %c0_16], %23 {strides = array<i32>} : memref<18x18x128xf32, #tpu.memory_space<vmem>>, vector<16x1x128xf32>,
    %c1_17 = arith.constant 1 : index
    %c17_18 = arith.constant 17 : index
    %c0_19 = arith.constant 0 : index
    %27 = vector.load %arg8[%c1_17, %c17_18, %c0_19] : memref<18x18x128xf32, #tpu.memory_space<vmem>>, vector<16x1x128xf32>
    tpu.vector_store %arg8[%c1_17, %c17_18, %c0_19], %23 {strides = array<i32>} : memref<18x18x128xf32, #tpu.memory_space<vmem>>, vector<16x1x128xf32>,
    %28 = vector.shape_cast %21 : vector<256x128xf32> to vector<16x16x128xf32>
    %c1_20 = arith.constant 1 : index
    %c1_21 = arith.constant 1 : index
    %c0_22 = arith.constant 0 : index
    %29 = vector.load %arg8[%c1_20, %c1_21, %c0_22] : memref<18x18x128xf32, #tpu.memory_space<vmem>>, vector<16x16x128xf32>
    tpu.vector_store %arg8[%c1_20, %c1_21, %c0_22], %28 {strides = array<i32>} : memref<18x18x128xf32, #tpu.memory_space<vmem>>, vector<16x16x128xf32>,
    %c0_23 = arith.constant 0 : index
    %c0_24 = arith.constant 0 : index
    %c0_25 = arith.constant 0 : index
    %30 = vector.load %arg8[%c0_23, %c0_24, %c0_25] : memref<18x18x128xf32, #tpu.memory_space<vmem>>, vector<18x18x128xf32>
    %31 = vector.extract_strided_slice %30 {offsets = [0, 0, 0], sizes = [16, 16, 128], strides = [1, 1, 1]} : vector<18x18x128xf32> to vector<16x16x128xf32>
    %32 = vector.extract_strided_slice %30 {offsets = [0, 1, 0], sizes = [16, 16, 128], strides = [1, 1, 1]} : vector<18x18x128xf32> to vector<16x16x128xf32>
    %33 = vector.extract_strided_slice %30 {offsets = [0, 2, 0], sizes = [16, 16, 128], strides = [1, 1, 1]} : vector<18x18x128xf32> to vector<16x16x128xf32>
    %34 = vector.extract_strided_slice %30 {offsets = [1, 0, 0], sizes = [16, 16, 128], strides = [1, 1, 1]} : vector<18x18x128xf32> to vector<16x16x128xf32>
    %35 = vector.extract_strided_slice %30 {offsets = [1, 1, 0], sizes = [16, 16, 128], strides = [1, 1, 1]} : vector<18x18x128xf32> to vector<16x16x128xf32>
    %36 = vector.extract_strided_slice %30 {offsets = [1, 2, 0], sizes = [16, 16, 128], strides = [1, 1, 1]} : vector<18x18x128xf32> to vector<16x16x128xf32>
    %37 = vector.extract_strided_slice %30 {offsets = [2, 0, 0], sizes = [16, 16, 128], strides = [1, 1, 1]} : vector<18x18x128xf32> to vector<16x16x128xf32>
    %38 = vector.extract_strided_slice %30 {offsets = [2, 1, 0], sizes = [16, 16, 128], strides = [1, 1, 1]} : vector<18x18x128xf32> to vector<16x16x128xf32>
    %39 = vector.extract_strided_slice %30 {offsets = [2, 2, 0], sizes = [16, 16, 128], strides = [1, 1, 1]} : vector<18x18x128xf32> to vector<16x16x128xf32>
    %40 = tpu.concatenate %31, %32, %33, %34, %35, %36, %37, %38, %39 in 2 : vector<16x16x128xf32>, vector<16x16x128xf32>, vector<16x16x128xf32>, vector<16x16x128xf32>, vector<16x16x128xf32>, vector<16x16x128xf32>, vector<16x16x128xf32>, vector<16x16x128xf32>, vector<16x16x128xf32> -> vector<16x16x1152xf32>
    %41 = vector.shape_cast %40 : vector<16x16x1152xf32> to vector<256x1152xf32>
    %42 = arith.truncf %41 : vector<256x1152xf32> to vector<256x1152xbf16>
    %c0_26 = arith.constant 0 : index
    %c0_27 = arith.constant 0 : index
    %43 = vector.load %arg4[%c0_26, %c0_27] : memref<1152x128xbf16, #tpu.memory_space<vmem>>, vector<1152x128xbf16>
    %cst_28 = arith.constant dense<0.000000e+00> : vector<256x128xf32>
    %44 = tpu.matmul %42, %43, %cst_28 {dimension_numbers = #tpu.dot_dimension_numbers<[1], [0], [0], [1], [0, 0, 1, 1], [], []>} : vector<256x1152xbf16>, vector<1152x128xbf16>, vector<256x128xf32> -> vector<256x128xf32>
    %45 = vector.extract_strided_slice %2 {offsets = [1, 1, 0], sizes = [16, 16, 128], strides = [1, 1, 1]} : vector<18x18x128xf32> to vector<16x16x128xf32>
    %46 = vector.shape_cast %45 : vector<16x16x128xf32> to vector<256x128xf32>
    %47 = arith.truncf %46 : vector<256x128xf32> to vector<256x128xbf16>
    %c0_29 = arith.constant 0 : index
    %c0_30 = arith.constant 0 : index
    %48 = vector.load %arg5[%c0_29, %c0_30] : memref<128x128xbf16, #tpu.memory_space<vmem>>, vector<128x128xbf16>
    %cst_31 = arith.constant dense<0.000000e+00> : vector<256x128xf32>
    %49 = tpu.matmul %47, %48, %cst_31 {dimension_numbers = #tpu.dot_dimension_numbers<[1], [0], [0], [1], [0, 0, 1, 1], [], []>} : vector<256x128xbf16>, vector<128x128xbf16>, vector<256x128xf32> -> vector<256x128xf32>
    %50 = arith.addf %44, %49 : vector<256x128xf32>
    %c0_32 = arith.constant 0 : index
    %c0_33 = arith.constant 0 : index
    %51 = vector.load %arg6[%c0_32, %c0_33] : memref<1x128xf32, #tpu.memory_space<vmem>>, vector<1x128xf32>
    %52 = vector.broadcast %51 : vector<1x128xf32> to vector<256x128xf32>
    %53 = arith.addf %50, %52 : vector<256x128xf32>
    %cst_34 = arith.constant 0.000000e+00 : f32
    %54 = vector.broadcast %cst_34 : f32 to vector<256x128xf32>
    %55 = arith.maximumf %53, %54 : vector<256x128xf32>
    %56 = vector.shape_cast %55 : vector<256x128xf32> to vector<16x16x128xf32>
    %c0_35 = arith.constant 0 : index
    %c0_36 = arith.constant 0 : index
    %c0_37 = arith.constant 0 : index
    %c0_38 = arith.constant 0 : index
    %57 = vector.load %arg7[%c0_35, %c0_36, %c0_37, %c0_38] : memref<1x16x16x128xf32, #tpu.memory_space<vmem>>, vector<1x16x16x128xf32>
    %58 = vector.shape_cast %57 : vector<1x16x16x128xf32> to vector<16x16x128xf32>
    %59 = vector.shape_cast %56 : vector<16x16x128xf32> to vector<1x16x16x128xf32>
    tpu.vector_store %arg7[%c0_35, %c0_36, %c0_37, %c0_38], %59 {strides = array<i32>} : memref<1x16x16x128xf32, #tpu.memory_space<vmem>>, vector<1x16x16x128xf32>,
    return
  }
  func.func @transform_0(%arg0: i32) -> (i32, i32, i32, i32) {
    %c0_i32 = arith.constant 0 : i32
    %c0_i32_0 = arith.constant 0 : i32
    %c0_i32_1 = arith.constant 0 : i32
    %c0_i32_2 = arith.constant 0 : i32
    return %arg0, %c0_i32, %c0_i32_0, %c0_i32_1 : i32, i32, i32, i32
  }
  func.func @transform_1(%arg0: i32) -> (i32, i32) {
    %c0_i32 = arith.constant 0 : i32
    %c0_i32_0 = arith.constant 0 : i32
    %c0_i32_1 = arith.constant 0 : i32
    return %c0_i32, %c0_i32_0 : i32, i32
  }
  func.func @transform_2(%arg0: i32) -> (i32, i32) {
    %c0_i32 = arith.constant 0 : i32
    %c0_i32_0 = arith.constant 0 : i32
    %c0_i32_1 = arith.constant 0 : i32
    return %c0_i32, %c0_i32_0 : i32, i32
  }
  func.func @transform_3(%arg0: i32) -> (i32, i32) {
    %c0_i32 = arith.constant 0 : i32
    %c0_i32_0 = arith.constant 0 : i32
    %c0_i32_1 = arith.constant 0 : i32
    return %c0_i32, %c0_i32_0 : i32, i32
  }
  func.func @transform_4(%arg0: i32) -> (i32, i32) {
    %c0_i32 = arith.constant 0 : i32
    %c0_i32_0 = arith.constant 0 : i32
    %c0_i32_1 = arith.constant 0 : i32
    return %c0_i32, %c0_i32_0 : i32, i32
  }
  func.func @transform_5(%arg0: i32) -> (i32, i32) {
    %c0_i32 = arith.constant 0 : i32
    %c0_i32_0 = arith.constant 0 : i32
    %c0_i32_1 = arith.constant 0 : i32
    return %c0_i32, %c0_i32_0 : i32, i32
  }
  func.func @transform_6(%arg0: i32) -> (i32, i32, i32, i32) {
    %c0_i32 = arith.constant 0 : i32
    %c0_i32_0 = arith.constant 0 : i32
    %c0_i32_1 = arith.constant 0 : i32
    %c0_i32_2 = arith.constant 0 : i32
    return %arg0, %c0_i32, %c0_i32_0, %c0_i32_1 : i32, i32, i32, i32
  }
}

</mosaic_0001>

<bundles_post_ra>
// kernel: tpu_custom_call.1
= control target key start
LH: loop header
LB: loop body
LE: loop exit
PB: predicated region body
PF: predicated region fallthrough
CT: control target
= control target key end

     0   :  { %11 = vsyncpa [#allocation4], 0  ;;  %s8729_s0 = inlined_call_operand.vmem [shape: bf16[2,18,18,128], index: 0, kind: input, shape index: {}]   ;;  %s8730_s1 = inlined_call_operand.vmem [shape: bf16[1152,128], index: 1, kind: input, shape index: {}]   ;;  %s8731_s2 = inlined_call_operand.vmem [shape: f32[1,128], index: 2, kind: input, shape index: {}]   ;;  %s8732_s3 = inlined_call_operand.hbm [shape: bf16[1152,128], index: 3, kind: input, shape index: {}]   ;;  %s8733_s4 = inlined_call_operand.vmem [shape: bf16[128,128], index: 4, kind: input, shape index: {}]   ;;  %s8734_s5 = inlined_call_operand.vmem [shape: f32[1,128], index: 5, kind: input, shape index: {}]   ;;  %s8735_s6 = inlined_call_operand.hbm [shape: f32[2,16,16,128], index: 6, kind: output, shape index: {}]  }
   0x1   :  { %12 = vsyncpa [#allocation5], 0 }
   0x2   :  { %14 = vsyncpa [#allocation5 + $0x1], 0  ;;  %s6134_s21 = smov 0   ;;  %s6136_s22 = smov 0  }
   0x3   :  { %s6138_s23 = smov 0   ;;  %s6140_s24 = smov 0  }
   0x4 LB: > { %s6155_s25 = sadd.s32 4294967295, %s6089_s24   ;;  %s4439_s26 = sadd.s32 4294967294, %s6089_s24   ;;  %s6089_s24 = sphi %s6140_s24, %s8984_s24   ;;  %s6085_s23 = sphi %s6138_s23, %s8983_s23   ;;  %s6081_s22 = sphi %s6136_s22, %s8982_s22   ;;  %s6077_s21 = sphi %s6134_s21, %s8981_s21  }
   0x5   : > { %s6159_s27 = sadd.s32 1, %s6089_s24   ;;  %s158_s28 = sadd.s32 1, %s6085_s23 }
   0x6   : > { %s155_s29 = ssub.s32 %s6089_s24, %s6159_s27  ;;  %p168_p0 = scmp.ne.s32.totalorder %s6085_s23, %s6081_s22 }
   0x7   : > { %p156_p1 = scmp.eq.s32.totalorder %s155_s29, 0  ;;  %p169_p2 = scmp.eq.s32.totalorder %s6155_s25, 1 }
   0x8   : > { %p174_p3 = scmp.ne.s32.totalorder %s6081_s22, %s6077_s21  ;;  %p175_p4 = scmp.eq.s32.totalorder %s4439_s26, 1 }
   0x9   : > { %s6170_s30 = scalar_select %p156_p1, %s6085_s23, %s158_s28  }
   0xa   : > { %p6172_p5 = por %p169_p2, %p168_p0  ;;  %p6176_p6 = por %p175_p4, %p174_p3 }
   0xb   : > { %p4440_p7 = scmp.ge.s32.totalorder %s6089_s24, 1  ;;  %p182_p8 = scmp.lt.s32.totalorder %s6089_s24, 3 }
   0xc   : > { %s8789_s8 = scalar_select %p6176_p6, 1, 0 }
   0xd   : > { %p5768_p9 = scmp.eq.s32.totalorder %s6155_s25, 0  ;;  %p6183_p10 = pnand %p4440_p7, %p182_p8 }
   0xe   : > { %s6091_s10 = smov [#allocation3]  }
   0xf   : > { %s200_s11 = sshll.u32 %s6091_s10, 4  ;;  %p5760_p11 = pneg %p6183_p10  ;;  %s201_s11 = int_to_ptr.vmem [resolvable:$true] %s200_s11 }
  0x10   : > { %s6010_s12 = scalar_lea.vmem %s201_s11, 9216  ;;  %p6018_p3 = scmp.lt.s32.totalorder %s201_s11, %s201_s11 }
  0x11   : > { %p5761_p12 = pnand %p5768_p9, %p5760_p11  ;;  %p6011_p0 = scmp.ne.s32.totalorder %s201_s11, %s6010_s12 }
  0x12   : > { %p6019_p4 = scmp.lt.s32.totalorder %s6010_s12, %s6010_s12 }
  0x13   : > { %p6001_p13 = pneg %p5761_p12 }
  0x14   : > { %p6020_p6 = por %p6019_p4, %p6018_p3 }
  0x15   : > { %p6013_p1 = pnand %p6011_p0, %p6001_p13 }
  0x17   : > { %p6014_p2 = pneg %p6013_p1 }
  0x19   : > { %p6021_p7 = pnand %p6020_p6, %p6014_p2 }
  0x1b   : > { %6024 = shalt.err (!%p6021_p7)
}
  0x1c   : > { %s6092_s13 = smov 64   ;;  %s6093_s14 = smov 4  }
  0x1d   : > { %5763 = dma.hbm_to_vmem [thread:$0]  (!%p5761_p12), %s8732_s3, 9216, %s201_s11, [#allocation4], %s6092_s13, %s6092_s13, %s6093_s14  }
  0x1e   : > { %230 = sbr.rel (%p6183_p10) target bundleno = 1034 (0x40a), region = 44 }
  0x23   : > { %6068 = dma.done.wait (%p5768_p9), [#allocation4], 9216  }
  0x24   : > { %6070 = vsyncadd (%p5768_p9), [#allocation4], 4294958080  ;;  %v5809_v0 = vld [vmem:[%s8730_s1 + $0x78] sm:$0xff]   ;;  %p260_p6 = scmp.lt.s32.totalorder %s6155_s25, 1  ;;  %v5811_v2 = vld [vmem:[%s8730_s1 + $0x70] sm:$0xff]   ;;  %vm422_vm0 = vcmask 1046528  }
  0x25   : > { %v5810_v1 = vld [vmem:[%s8730_s1 + $0x38] sm:$0xff]   ;;  %4625 = vmatprep.subr.bf16.mxu0 %v5809_v0  ;;  %5737 = vmatprep.subr.bf16.mxu1 %v5809_v0  ;;  %v5812_v3 = vld [vmem:[%s8730_s1 + $0x30] sm:$0xff]   ;;  %v5813_v4 = vld [vmem:[%s8730_s1 + $0x68] sm:$0xff]   ;;  %vm535_vm1 = vcmask 1045504   ;;  %s4624_s18 = sshll.u32 %s6155_s25, 12  ;;  %s6096_s10 = smov [#allocation6]  }
  0x26   : > { %4626 = vmatpush3.bf16.msra.mxu0 %v5810_v1  ;;  %5745 = vmatpush3.bf16.msra.mxu1 %v5810_v1  ;;  %s261_s12 = scalar_select %p260_p6, %s6155_s25, 1  ;;  %v5814_v5 = vld [vmem:[%s8730_s1 + $0x28] sm:$0xff]   ;;  %v5815_v6 = vld [vmem:[%s8730_s1 + $0x60] sm:$0xff]   ;;  %v5817_v8 = vld [vmem:[%s8730_s1 + $0x58] sm:$0xff]  }
  0x27   : > { %4627 = vmatprep.subr.bf16.mxu0 %v5811_v2  ;;  %5738 = vmatprep.subr.bf16.mxu1 %v5811_v2  ;;  %v5816_v7 = vld [vmem:[%s8730_s1 + $0x20] sm:$0xff]   ;;  %v5818_v9 = vld [vmem:[%s8730_s1 + $0x18] sm:$0xff]   ;;  %v5819_v10 = vld [vmem:[%s8730_s1 + $0x50] sm:$0xff]   ;;  %s8681_s28 = scalar_lea.hbm %s8735_s6, %s4624_s18  ;;  %s6029_s11 = sshll.u32 %s6096_s10, 4  ;;  %s6030_s11 = int_to_ptr.vmem [resolvable:$false] %s6029_s11 }
  0x28   : > { %s5753_s17 = smul.u32 216, %s261_s12  ;;  %v5820_v21 = vld [vmem:[%s8730_s1 + $0x10] sm:$0xff]   ;;  %v5821_v25 = vld [vmem:[%s8730_s1 + $0x48] sm:$0xff]   ;;  %v5823_v35 = vld [vmem:[%s8730_s1 + $0x40] sm:$0xff]   ;;  %s6031_s12 = scalar_lea.vmem %s6030_s11, 8192 }
  0x29   : > { %v5822_v33 = vld [vmem:[%s8730_s1 + $0x8] sm:$0xff]   ;;  %v5824_v44 = vld [vmem:[%s8730_s1] sm:$0xff]   ;;  %v5827_v48 = vld [vmem:[%s8730_s1 + $0xf8] sm:$0xff]  }
  0x2a   : > { %4628 = vmatpush3.bf16.msra.mxu0 %v5812_v3  ;;  %5746 = vmatpush3.bf16.msra.mxu1 %v5812_v3  ;;  %s6232_s9 = scalar_lea.vmem %s8729_s0, %s5753_s17  ;;  %v5828_v52 = vld [vmem:[%s8730_s1 + $0x178] sm:$0xff]   ;;  %v5831_v62 = vld [vmem:[%s8730_s1 + $0xf0] sm:$0xff]  }
  0x2b   : > { %4629 = vmatprep.subr.bf16.mxu0 %v5813_v4  ;;  %5739 = vmatprep.subr.bf16.mxu1 %v5813_v4  ;;  %v6241_v11 = vld [vmem:[%s6232_s9] sm:$0xff]   ;;  %v6244_v12 = vld [vmem:[%s6232_s9 + $0x8] sm:$0x1]  ;;  %v6247_v13 = vld [vmem:[%s6232_s9 + $0x90] sm:$0xff]  }
  0x2c   : > { %v320_v14 = vunpack.c.l.bf16 %v6241_v11  ;;  %v321_v15 = vunpack.c.h.bf16 %v6241_v11  ;;  %v322_v16 = vunpack.c.l.bf16 %v6244_v12  ;;  %v6253_v17 = vld [vmem:[%s6232_s9 + $0x98] sm:$0x1]  ;;  %v356_v18 = vunpack.c.l.bf16 %v6247_v13  ;;  %v6289_v37 = vld [vmem:[%s6232_s9 + $0xc] sm:$0xff]   ;;  %v6292_v38 = vld [vmem:[%s6232_s9 + $0x14] sm:$0x1] }
  0x2d   : > { %v8746_v19 = vunpack.c.h.bf16 %v6247_v13  ;;  %v8745_v20 = vunpack.c.l.bf16 %v6253_v17  ;;  %v323_v39 = vunpack.c.l.bf16 %v6289_v37  ;;  %v324_v40 = vunpack.c.h.bf16 %v6289_v37  ;;  %v6298_v42 = vld [vmem:[%s6232_s9 + $0x9c] sm:$0xff]   ;;  %v6301_v43 = vld [vmem:[%s6232_s9 + $0xa4] sm:$0x1]  ;;  %v5838_v0 = vld [vmem:[%s8730_s1 + $0x170] sm:$0xff]  }
  0x2e   : > { %4630 = vmatpush3.bf16.msra.mxu0 %v5814_v5  ;;  %5747 = vmatpush3.bf16.msra.mxu1 %v5814_v5  ;;  %v423_v22 = vrot.slane %v320_v14, 1  ;;  %v424_v23 = vrot.slane %v321_v15, 1  ;;  %v426_v24 = vrot.slane %v322_v16, 1  ;;  %v483_v26 = vrot.slane %v356_v18, 1  ;;  %8792 = vst [vmem:[#allocation10_spill] sm:$0xff] %v6298_v42  ;;  %v5829_v56 = vld [vmem:[%s8730_s1 + $0xb8] sm:$0xff]  }
  0x2f   : > { %4631 = vmatprep.subr.bf16.mxu0 %v5815_v6  ;;  %5740 = vmatprep.subr.bf16.mxu1 %v5815_v6  ;;  %v484_v27 = vrot.slane %v8746_v19, 1  ;;  %v486_v30 = vrot.slane %v8745_v20, 1  ;;  %v325_v41 = vunpack.c.l.bf16 %v6292_v38  ;;  %v8744_v45 = vunpack.c.l.bf16 %v6298_v42  ;;  %v5830_v59 = vld [vmem:[%s8730_s1 + $0x138] sm:$0xff]   ;;  %v6350_v2 = vld [vmem:[%s6232_s9 + $0x20] sm:$0x1] }
  0x30   : > { %v425_v28 = vsel %vm422_vm0, %v423_v22, %v424_v23  ;;  %v427_v29 = vsel %vm422_vm0, %v424_v23, %v426_v24  ;;  %v8743_v46 = vunpack.c.h.bf16 %v6298_v42  ;;  %v8742_v47 = vunpack.c.l.bf16 %v6301_v43  ;;  %v6347_v1 = vld [vmem:[%s6232_s9 + $0x18] sm:$0xff]   ;;  %v5840_v23 = vld [vmem:[%s8730_s1 + $0x130] sm:$0xff]  }
  0x31   : > { %v683_v31 = vpack.c.bf16 %v427_v29, %v425_v28  ;;  %v485_v32 = vsel %vm422_vm0, %v483_v26, %v484_v27  ;;  %v487_v34 = vsel %vm422_vm0, %v484_v27, %v486_v30  ;;  %v428_v49 = vrot.slane %v323_v39, 1  ;;  %8793 = vst [vmem:[#allocation11_spill] sm:$0xff] %v6347_v1  ;;  %v5835_v27 = vld [vmem:[%s8730_s1 + $0xe8] sm:$0xff]  }
  0x32   : > { %4632 = vmatpush3.bf16.msra.mxu0 %v5816_v7  ;;  %5748 = vmatpush3.bf16.msra.mxu1 %v5816_v7  ;;  %v6286_v36 = vpack.c.bf16 %v487_v34, %v485_v32  ;;  %v429_v50 = vrot.slane %v324_v40, 1  ;;  %v431_v51 = vrot.slane %v325_v41, 1  ;;  %v488_v53 = vrot.slane %v8744_v45, 1  ;;  %v6358_v7 = vld [vmem:[%s6232_s9 + $0xa8] sm:$0xff]  }
  0x33   : > { %4633 = vmatprep.subr.bf16.mxu0 %v5817_v8  ;;  %5741 = vmatprep.subr.bf16.mxu1 %v5817_v8  ;;  %v489_v54 = vrot.slane %v8743_v46, 1  ;;  %v491_v55 = vrot.slane %v8742_v47, 1  ;;  %v326_v4 = vunpack.c.l.bf16 %v6347_v1  ;;  %v327_v5 = vunpack.c.h.bf16 %v6347_v1  ;;  %v6361_v8 = vld [vmem:[%s6232_s9 + $0xb0] sm:$0x1]  ;;  %v6588_v46 = vld [vmem:[%s6232_s9 + $0x5c] sm:$0x1] }
  0x34   : > { %8791 = vst [vmem:[#allocation9_spill] sm:$0xff] %v6286_v36  ;;  %1351 = vmatprep.mubr.bf16.mxu0 %v683_v31  ;;  %1447 = vmatprep.mubr.bf16.mxu1 %v6286_v36  ;;  %v430_v57 = vsel %vm422_vm0, %v428_v49, %v429_v50  ;;  %v432_v58 = vsel %vm422_vm0, %v429_v50, %v431_v51  ;;  %v328_v6 = vunpack.c.l.bf16 %v6350_v2  ;;  %v8739_v22 = vunpack.c.l.bf16 %v6361_v8 }
  0x35   : > { %v490_v60 = vsel %vm422_vm0, %v488_v53, %v489_v54  ;;  %v492_v61 = vsel %vm422_vm0, %v489_v54, %v491_v55  ;;  %v6341_v63 = vpack.c.bf16 %v432_v58, %v430_v57  ;;  %v433_v24 = vrot.slane %v326_v4, 1  ;;  %v6410_v53 = vld [vmem:[%s6232_s9 + $0xb4] sm:$0xff]   ;;  %v6413_v54 = vld [vmem:[%s6232_s9 + $0xbc] sm:$0x1]  ;;  %v5837_v55 = vld [vmem:[%s8730_s1 + $0xe0] sm:$0xff]  }
  0x36   : > { %4634 = vmatpush3.bf16.msra.mxu0 %v5818_v9  ;;  %5749 = vmatpush3.bf16.msra.mxu1 %v5818_v9  ;;  %v6352_v3 = vpack.c.bf16 %v492_v61, %v490_v60  ;;  %v5832_v9 = vld [vmem:[%s8730_s1 + $0xb0] sm:$0xff]   ;;  %v436_v26 = vrot.slane %v328_v6, 1  ;;  %v496_v30 = vrot.slane %v8739_v22, 1  ;;  %v8738_v57 = vunpack.c.l.bf16 %v6410_v53  ;;  %v5839_v60 = vld [vmem:[%s8730_s1 + $0xa0] sm:$0xff]  }
  0x37   : > { %4635 = vmatprep.subr.bf16.mxu0 %v5819_v10  ;;  %5742 = vmatprep.subr.bf16.mxu1 %v5819_v10  ;;  %v8741_v10 = vunpack.c.l.bf16 %v6358_v7  ;;  %v8737_v58 = vunpack.c.h.bf16 %v6410_v53  ;;  %v536_v22 = vrot.slane %v320_v14, 2  ;;  %v5851_v14 = vld [vmem:[%s8730_s1 + $0x88] sm:$0xff]  }
  0x38   : > { %8794 = vst [vmem:[#allocation12_spill] sm:$0xff] %v6352_v3 }
  0x39   : > { %v493_v28 = vrot.slane %v8741_v10, 1  ;;  %v6567_v10 = vrot.slane %v326_v4, 2  ;;  %v6582_v4 = vrot.slane %v328_v6, 2 }
  0x3a   : > { %4636 = vmatpush3.bf16.msra.mxu0 %v5820_v21  ;;  %5750 = vmatpush3.bf16.msra.mxu1 %v5820_v21  ;;  %v8740_v21 = vunpack.c.h.bf16 %v6358_v7 }
  0x3b   : > { %4637 = vmatprep.subr.bf16.mxu0 %v5821_v25  ;;  %5743 = vmatprep.subr.bf16.mxu1 %v5821_v25  ;;  %v434_v25 = vrot.slane %v327_v5, 1 }
  0x3c   : > { %v494_v29 = vrot.slane %v8740_v21, 1  ;;  %v539_v21 = vrot.slane %v322_v16, 2  ;;  %v542_v16 = vrot.slane %v324_v40, 2  ;;  %v5863_v40 = vld [vmem:[%s8730_s1 + $0x150] sm:$0xff]  }
  0x3d   : > { %v435_v31 = vsel %vm422_vm0, %v433_v24, %v434_v25  ;;  %v437_v32 = vsel %vm422_vm0, %v434_v25, %v436_v26  ;;  %v498_v24 = vrot.slane %v8738_v57, 1  ;;  %v499_v25 = vrot.slane %v8737_v58, 1 }
  0x3e   : > { %4638 = vmatpush3.bf16.msra.mxu0 %v5822_v33  ;;  %5751 = vmatpush3.bf16.msra.mxu1 %v5822_v33  ;;  %v5836_v33 = vld [vmem:[%s8730_s1 + $0xa8] sm:$0xff]   ;;  %v495_v34 = vsel %vm422_vm0, %v493_v28, %v494_v29  ;;  %v6404_v49 = vpack.c.bf16 %v437_v32, %v435_v31 }
  0x3f   : > { %4639 = vmatprep.subr.bf16.mxu0 %v5823_v35  ;;  %5744 = vmatprep.subr.bf16.mxu1 %v5823_v35  ;;  %v497_v35 = vsel %vm422_vm0, %v494_v29, %v496_v30  ;;  %v5852_v29 = vld [vmem:[%s8730_s1 + $0x128] sm:$0xff]   ;;  %v5844_v30 = vld [vmem:[%s8730_s1 + $0x98] sm:$0xff]   ;;  %v500_v31 = vsel %vm422_vm0, %v498_v24, %v499_v25 }
  0x42   : > { %4640 = vmatpush3.bf16.msra.mxu0 %v5824_v44  ;;  %5752 = vmatpush3.bf16.msra.mxu1 %v5824_v44  ;;  %v6399_v44 = vld [vmem:[%s6232_s9 + $0x24] sm:$0xff]  }
  0x43   : > { %4737 = vmatprep.subr.bf16.mxu1 %v5827_v48  ;;  %4849 = vmatprep.subr.bf16.mxu0 %v5828_v52  ;;  %8795 = vst [vmem:[#allocation13_spill] sm:$0xff] %v6399_v44  ;;  %v6402_v48 = vld [vmem:[%s6232_s9 + $0x2c] sm:$0x1]  ;;  %v329_v50 = vunpack.c.l.bf16 %v6399_v44  ;;  %v330_v51 = vunpack.c.h.bf16 %v6399_v44 }
  0x44   : > { %v331_v52 = vunpack.c.l.bf16 %v6402_v48 }
  0x45   : > { %1352 = vmatmul.mubr.bf16.vlgmr.msra.gmra.mxu0 %v6241_v11  ;;  %1448 = vmatmul.mubr.bf16.vlgmr.msra.gmra.mxu1 %v6247_v13  ;;  %v438_v61 = vrot.slane %v329_v50, 1  ;;  %v5853_v11 = vld [vmem:[%s8730_s1 + $0xc0] sm:$0xff]  }
  0x46   : > { %4738 = vmatpush3.bf16.msra.mxu1 %v5829_v56  ;;  %4850 = vmatpush3.bf16.msra.mxu0 %v5830_v59  ;;  %v6418_v56 = vpack.c.bf16 %v497_v35, %v495_v34  ;;  %v8736_v59 = vunpack.c.l.bf16 %v6413_v54  ;;  %v6462_v34 = vld [vmem:[%s6232_s9 + $0x30] sm:$0xff]   ;;  %v6465_v35 = vld [vmem:[%s6232_s9 + $0x38] sm:$0x1]  ;;  %v6631_v45 = vrot.slane %v331_v52, 2 }
  0x47   : > { %4739 = vmatprep.subr.bf16.mxu1 %v5831_v62  ;;  %1359 = vmatprep.mubr.bf16.mxu0 %v6341_v63  ;;  %v439_v62 = vrot.slane %v330_v51, 1 }
  0x48   : > { %1455 = vmatprep.mubr.bf16.mxu1 %v6352_v3  ;;  %4851 = vmatprep.subr.bf16.mxu0 %v5838_v0  ;;  %8796 = vst [vmem:[#allocation14_spill] sm:$0xff] %v6418_v56  ;;  %v441_v0 = vrot.slane %v331_v52, 1  ;;  %v501_v26 = vrot.slane %v8736_v59, 1 }
  0x4a   : > { %4740 = vmatpush3.bf16.msra.mxu1 %v5832_v9  ;;  %4852 = vmatpush3.bf16.msra.mxu0 %v5840_v23  ;;  %v5850_v9 = vld [vmem:[%s8730_s1 + $0x168] sm:$0xff]   ;;  %v5843_v23 = vld [vmem:[%s8730_s1 + $0xd8] sm:$0xff]   ;;  %v442_v28 = vsel %vm422_vm0, %v439_v62, %v441_v0  ;;  %v502_v32 = vsel %vm422_vm0, %v499_v25, %v501_v26  ;;  %v334_v0 = vunpack.c.l.bf16 %v6465_v35  ;;  %v5857_v25 = vld [vmem:[%s8730_s1 + $0x120] sm:$0xff]  }
  0x4b   : > { %4741 = vmatprep.subr.bf16.mxu1 %v5835_v27  ;;  %v440_v27 = vsel %vm422_vm0, %v438_v61, %v439_v62  ;;  %4853 = vmatprep.subr.bf16.mxu0 %v5850_v9  ;;  %v332_v61 = vunpack.c.l.bf16 %v6462_v34  ;;  %v333_v62 = vunpack.c.h.bf16 %v6462_v34  ;;  %v5856_v9 = vld [vmem:[%s8730_s1 + $0x160] sm:$0xff]   ;;  %v6475_v24 = vpack.c.bf16 %v502_v32, %v500_v31  ;;  %v5860_v32 = vld [vmem:[%s8730_s1 + $0x158] sm:$0xff]  }
  0x4d   : > { %1360 = vmatmul.mubr.bf16.gmra.mxu0 %v6289_v37  ;;  %1456 = vmatmul.mubr.bf16.gmra.mxu1 %v6298_v42  ;;  %8797 = vst [vmem:[#allocation15_spill] sm:$0xff] %v6475_v24  ;;  %v444_v26 = vrot.slane %v333_v62, 1 }
  0x4e   : > { %4742 = vmatpush3.bf16.msra.mxu1 %v5836_v33  ;;  %1367 = vmatprep.mubr.bf16.mxu0 %v6404_v49  ;;  %v5845_v33 = vld [vmem:[%s8730_s1 + $0xd0] sm:$0xff]  }
  0x4f   : > { %4743 = vmatprep.subr.bf16.mxu1 %v5837_v55  ;;  %1463 = vmatprep.mubr.bf16.mxu1 %v6418_v56  ;;  %v6467_v55 = vpack.c.bf16 %v442_v28, %v440_v27  ;;  %v446_v27 = vrot.slane %v334_v0, 1  ;;  %v6487_v28 = vld [vmem:[%s6232_s9 + $0x3c] sm:$0xff]  }
  0x50   : > { %4854 = vmatpush3.bf16.msra.mxu0 %v5852_v29  ;;  %v6490_v29 = vld [vmem:[%s6232_s9 + $0x44] sm:$0x1]  ;;  %v8755_v31 = vunpack.c.l.bf16 %v6487_v28 }
  0x51   : > { %4855 = vmatprep.subr.bf16.mxu0 %v5856_v9  ;;  %v5849_v9 = vld [vmem:[%s8730_s1 + $0xc8] sm:$0xff]   ;;  %v447_v58 = vsel %vm422_vm0, %v444_v26, %v446_v27  ;;  %v8751_v57 = vunpack.c.l.bf16 %v6490_v29 }
  0x52   : > { %4744 = vmatpush3.bf16.msra.mxu1 %v5839_v60  ;;  %v443_v60 = vrot.slane %v332_v61, 1 }
  0x53   : > { %4745 = vmatprep.subr.bf16.mxu1 %v5843_v23  ;;  %v5846_v23 = vld [vmem:[%s8730_s1 + $0x90] sm:$0xff]   ;;  %v451_v27 = vrot.slane %v8751_v57, 1 }
  0x54   : > { %v445_v59 = vsel %vm422_vm0, %v443_v60, %v444_v26  ;;  %4856 = vmatpush3.bf16.msra.mxu0 %v5857_v25  ;;  %v5861_v60 = vld [vmem:[%s8730_s1 + $0x118] sm:$0xff]   ;;  %v448_v25 = vrot.slane %v8755_v31, 1 }
  0x55   : > { %1368 = vmatmul.mubr.bf16.gmra.mxu0 %v6347_v1  ;;  %1464 = vmatmul.mubr.bf16.gmra.mxu1 %v6358_v7  ;;  %v6525_v12 = vpack.c.bf16 %v447_v58, %v445_v59  ;;  %v6541_v58 = vld [vmem:[%s6232_s9 + $0x50] sm:$0x1] }
  0x56   : > { %4746 = vmatpush3.bf16.msra.mxu1 %v5844_v30  ;;  %1375 = vmatprep.mubr.bf16.mxu0 %v6467_v55  ;;  %v8754_v30 = vunpack.c.h.bf16 %v6487_v28  ;;  %v5864_v59 = vld [vmem:[%s8730_s1 + $0x110] sm:$0xff]   ;;  %v8747_v47 = vunpack.c.l.bf16 %v6541_v58  ;;  %v8809_v36 = vunpack.c.l.bf16 %v6541_v58 }
  0x57   : > { %4747 = vmatprep.subr.bf16.mxu1 %v5845_v33  ;;  %1471 = vmatprep.mubr.bf16.mxu1 %v6475_v24  ;;  %v537_v33 = vrot.slane %v321_v15, 2  ;;  %8798 = vst [vmem:[#allocation16_spill] sm:$0xff] %v6525_v12  ;;  %v541_v15 = vrot.slane %v323_v39, 2  ;;  %v544_v39 = vrot.slane %v325_v41, 2  ;;  %v8803_v24 = vunpack.c.l.bf16 %v6490_v29  ;;  %v5884_v29 = vld [vmem:[%s8730_s1 + $0x1d8] sm:$0xff]  }
  0x58   : > { %4857 = vmatprep.subr.bf16.mxu0 %v5860_v32  ;;  %v449_v26 = vrot.slane %v8754_v30, 1  ;;  %v6553_v32 = vrot.slane %v356_v18, 2 }
  0x59   : > { %4858 = vmatpush3.bf16.msra.mxu0 %v5861_v60  ;;  %v538_v38 = vsel %vm535_vm1, %v536_v22, %v537_v33  ;;  %v540_v41 = vsel %vm535_vm1, %v537_v33, %v539_v21  ;;  %v6571_v21 = vrot.slane %v327_v5, 2  ;;  %v5867_v22 = vld [vmem:[%s8730_s1 + $0x148] sm:$0xff]   ;;  %v6585_v5 = vld [vmem:[%s6232_s9 + $0x54] sm:$0xff]   ;;  %v543_v20 = vsel %vm535_vm1, %v541_v15, %v542_v16 }
  0x5a   : > { %4748 = vmatpush3.bf16.msra.mxu1 %v5846_v23  ;;  %v6538_v23 = vld [vmem:[%s6232_s9 + $0x48] sm:$0xff]   ;;  %v450_v33 = vsel %vm422_vm0, %v448_v25, %v449_v26  ;;  %4859 = vmatprep.subr.bf16.mxu0 %v5863_v40  ;;  %v6595_v25 = vld [vmem:[%s6232_s9 + $0x60] sm:$0xff]   ;;  %v5873_v40 = vld [vmem:[%s8730_s1 + $0x1f8] sm:$0xff]   ;;  %v545_v19 = vsel %vm535_vm1, %v542_v16, %v544_v39  ;;  %v6760_v56 = vrot.slane %v8803_v24, 2 }
  0x5b   : > { %4749 = vmatprep.subr.bf16.mxu1 %v5849_v9  ;;  %v5854_v9 = vld [vmem:[%s8730_s1 + $0x80] sm:$0xff]   ;;  %v8750_v18 = vunpack.c.l.bf16 %v6538_v23  ;;  %v8748_v60 = vunpack.c.h.bf16 %v6538_v23  ;;  %v8759_v52 = vunpack.c.l.bf16 %v6595_v25  ;;  %v8756_v15 = vunpack.c.h.bf16 %v6595_v25  ;;  %v6653_v39 = vld [vmem:[%s6232_s9 + $0x78] sm:$0xff]  }
  0x5c   : > { %v548_v30 = vsel %vm535_vm1, %v6567_v10, %v6571_v21  ;;  %v550_v10 = vsel %vm535_vm1, %v6571_v21, %v6582_v4  ;;  %v5882_v21 = vld [vmem:[%s8730_s1 + $0x1e0] sm:$0xff]   ;;  %v8804_v3 = vunpack.c.l.bf16 %v6653_v39  ;;  %v8805_v24 = vunpack.c.h.bf16 %v6653_v39 }
  0x5d   : > { %1376 = vmatmul.mubr.bf16.gmra.mxu0 %v6399_v44  ;;  %1472 = vmatmul.mubr.bf16.gmra.mxu1 %v6410_v53  ;;  %v453_v2 = vrot.slane %v8750_v18, 1  ;;  %v454_v6 = vrot.slane %v8748_v60, 1  ;;  %v6696_v31 = vrot.slane %v8756_v15, 1  ;;  %v6714_v15 = vrot.slane %v334_v0, 2 }
  0x5e   : > { %4750 = vmatpush3.bf16.msra.mxu1 %v5851_v14  ;;  %1383 = vmatprep.mubr.bf16.mxu0 %v6525_v12  ;;  %v452_v14 = vsel %vm422_vm0, %v449_v26, %v451_v27  ;;  %v6604_v27 = vld [vmem:[%s6232_s9 + $0x68] sm:$0x1] }
  0x5f   : > { %4751 = vmatprep.subr.bf16.mxu1 %v5853_v11  ;;  %1512 = vmatprep.mubr.bf16.mxu1 %v6289_v37  ;;  %v684_v11 = vpack.c.bf16 %v540_v41, %v538_v38  ;;  %v6592_v37 = vrot.slane %v329_v50, 2  ;;  %v6597_v26 = vpack.c.bf16 %v452_v14, %v450_v33  ;;  %v5868_v50 = vld [vmem:[%s8730_s1 + $0x108] sm:$0xff]   ;;  %v8749_v38 = vunpack.c.l.bf16 %v6585_v5  ;;  %v5874_v33 = vld [vmem:[%s8730_s1 + $0x1b8] sm:$0xff]  }
  0x60   : > { %4860 = vmatpush3.bf16.msra.mxu0 %v5864_v59  ;;  %v456_v59 = vrot.slane %v8747_v47, 1  ;;  %v6617_v41 = vrot.slane %v330_v51, 2  ;;  %v8752_v14 = vunpack.c.h.bf16 %v6585_v5  ;;  %v5876_v51 = vld [vmem:[%s8730_s1 + $0x1f0] sm:$0xff]   ;;  %v8753_v47 = vunpack.c.l.bf16 %v6588_v46 }
  0x61   : > { %8799 = vst [vmem:[#allocation17_spill] sm:$0xff] %v6597_v26  ;;  %4861 = vmatprep.subr.bf16.mxu0 %v5867_v22  ;;  %v5870_v22 = vld [vmem:[%s8730_s1 + $0x140] sm:$0xff]   ;;  %v455_v48 = vsel %vm422_vm0, %v453_v2, %v454_v6  ;;  %v8757_v16 = vunpack.c.l.bf16 %v6604_v27 }
  0x62   : > { %4752 = vmatpush3.bf16.msra.mxu1 %v5854_v9  ;;  %v6620_v9 = vld [vmem:[%s6232_s9 + $0x6c] sm:$0xff]   ;;  %v457_v60 = vsel %vm422_vm0, %v454_v6, %v456_v59  ;;  %v5871_v2 = vld [vmem:[%s8730_s1 + $0x100] sm:$0xff]   ;;  %v6661_v59 = vpack.c.bf16 %v545_v19, %v543_v20 }
  0x63   : > { %4961 = vmatprep.subr.bf16.mxu1 %v5873_v40  ;;  %v6645_v40 = vld [vmem:[%s6232_s9 + $0x74] sm:$0x1]  ;;  %v8758_v18 = vunpack.c.l.bf16 %v6620_v9  ;;  %v8760_v57 = vunpack.c.h.bf16 %v6620_v9  ;;  %v5879_v20 = vld [vmem:[%s8730_s1 + $0x1e8] sm:$0xff]  }
  0x64   : > { %4862 = vmatpush3.bf16.msra.mxu0 %v5868_v50  ;;  %v5877_v6 = vld [vmem:[%s8730_s1 + $0x1b0] sm:$0xff]   ;;  %v6669_v50 = vld [vmem:[%s8730_s1 + $0x238] sm:$0xff]   ;;  %v8761_v19 = vunpack.c.l.bf16 %v6645_v40 }
  0x65   : > { %1384 = vmatmul.mubr.bf16.gmra.mxu0 %v6462_v34  ;;  %1513 = vmatmul.mubr.bf16.vlgmr.msra.gmra.mxu1 %v684_v11  ;;  %v458_v11 = vrot.slane %v8749_v38, 1  ;;  %v459_v38 = vrot.slane %v8752_v14, 1  ;;  %v6678_v14 = vpack.c.bf16 %v457_v60, %v455_v48  ;;  %v6700_v60 = vrot.slane %v8757_v16, 1 }
  0x66   : > { %1391 = vmatprep.mubr.bf16.mxu0 %v6597_v26  ;;  %1520 = vmatprep.mubr.bf16.mxu1 %v6347_v1  ;;  %v6704_v48 = vrot.slane %v333_v62, 2  ;;  %v6718_v16 = vrot.slane %v8758_v18, 1  ;;  %v6732_v35 = vrot.slane %v8760_v57, 1  ;;  %v6736_v0 = vrot.slane %v8761_v19, 1  ;;  %v6751_v62 = vld [vmem:[%s6232_s9 + $0x8c] sm:$0x1] }
  0x67   : > { %4962 = vmatpush3.bf16.msra.mxu1 %v5874_v33  ;;  %4863 = vmatprep.subr.bf16.mxu0 %v5870_v22  ;;  %v461_v33 = vrot.slane %v8753_v47, 1  ;;  %8800 = vst [vmem:[#allocation18_spill] sm:$0xff] %v6678_v14  ;;  %v6682_v22 = vrot.slane %v8759_v52, 1  ;;  %v6689_v47 = vld [vmem:[%s6232_s9 + $0x80] sm:$0x1]  ;;  %v8802_v52 = vunpack.c.h.bf16 %v6487_v28  ;;  %v460_v19 = vsel %vm422_vm0, %v458_v11, %v459_v38 }
  0x68   : > { %4963 = vmatprep.subr.bf16.mxu1 %v5876_v51  ;;  %v6686_v51 = vrot.slane %v332_v61, 2  ;;  %4864 = vmatpush3.bf16.msra.mxu0 %v5871_v2  ;;  %v5880_v61 = vld [vmem:[%s8730_s1 + $0x1a8] sm:$0xff]   ;;  %v6769_v11 = vrot.slane %v8804_v3, 1  ;;  %v8808_v3 = vunpack.c.h.bf16 %v6538_v23 }
  0x69   : > { %v6722_v2 = vld [vmem:[%s6232_s9 + $0x84] sm:$0xff]   ;;  %5593 = vmatprep.subr.bf16.mxu0 %v6669_v50  ;;  %v6748_v57 = vrot.slane %v8802_v52, 2  ;;  %v462_v4 = vsel %vm422_vm0, %v459_v38, %v461_v33  ;;  %v8806_v33 = vunpack.c.l.bf16 %v6689_v47 }
  0x6a   : > { %v5883_v52 = vld [vmem:[%s8730_s1 + $0x1a0] sm:$0xff]   ;;  %v6789_v38 = vrot.slane %v8808_v3, 2  ;;  %v8811_v3 = vunpack.c.l.bf16 %v6253_v17  ;;  %v8812_v58 = vunpack.c.l.bf16 %v6722_v2  ;;  %v5887_v17 = vld [vmem:[%s8730_s1 + $0x1d0] sm:$0xff]  }
  0x6b   : > { %4964 = vmatpush3.bf16.msra.mxu1 %v5877_v6  ;;  %v553_v6 = vsel %vm535_vm1, %v6592_v37, %v6617_v41  ;;  %v6777_v37 = vrot.slane %v8805_v24, 1  ;;  %v8810_v24 = vunpack.c.h.bf16 %v6247_v13 }
  0x6c   : > { %4965 = vmatprep.subr.bf16.mxu1 %v5879_v20  ;;  %v8801_v20 = vunpack.c.l.bf16 %v6487_v28  ;;  %v599_v26 = vrot.slane %v8811_v3, 2  ;;  %v8815_v3 = vunpack.c.l.bf16 %v6301_v43 }
  0x6d   : > { %1392 = vmatmul.mubr.bf16.gmra.mxu0 %v6487_v28  ;;  %1521 = vmatmul.mubr.bf16.gmra.mxu1 %v6661_v59  ;;  %v597_v1 = vrot.slane %v8810_v24, 2  ;;  %v8814_v24 = vunpack.c.h.bf16 %v6298_v42 }
  0x6e   : > { %1399 = vmatprep.mubr.bf16.mxu0 %v6678_v14  ;;  %1528 = vmatprep.mubr.bf16.mxu1 %v6399_v44  ;;  %v6744_v18 = vrot.slane %v8801_v20, 2  ;;  %v6765_v20 = vpack.c.bf16 %v550_v10, %v548_v30  ;;  %v8807_v30 = vunpack.c.l.bf16 %v6538_v23  ;;  %v6795_v44 = vrot.slane %v8809_v36, 2  ;;  %v5886_v36 = vld [vmem:[%s8730_s1 + $0x198] sm:$0xff]  }
  0x6f   : > { %4966 = vmatpush3.bf16.msra.mxu1 %v5880_v61  ;;  %v6781_v61 = vrot.slane %v8806_v33, 1  ;;  %v555_v33 = vsel %vm535_vm1, %v6617_v41, %v6631_v45  ;;  %v8813_v45 = vunpack.c.l.bf16 %v6298_v42  ;;  %v602_v14 = vrot.slane %v8814_v24, 2 }
  0x70   : > { %4967 = vmatprep.subr.bf16.mxu1 %v5882_v21  ;;  %v6785_v10 = vrot.slane %v8807_v30, 2  ;;  %v6791_v21 = vpack.c.bf16 %v462_v4, %v460_v19  ;;  %v6811_v19 = vrot.slane %v8812_v58, 1  ;;  %v598_v4 = vsel %vm535_vm1, %v6553_v32, %v597_v1 }
  0x71   : > { %v601_v41 = vrot.slane %v8813_v45, 2  ;;  %v604_v32 = vrot.slane %v8815_v3, 2  ;;  %v8816_v58 = vunpack.c.l.bf16 %v6358_v7  ;;  %v8817_v30 = vunpack.c.h.bf16 %v6358_v7 }
  0x73   : > { %4968 = vmatpush3.bf16.msra.mxu1 %v5883_v52  ;;  %v600_v52 = vsel %vm535_vm1, %v597_v1, %v599_v26  ;;  %v606_v45 = vrot.slane %v8816_v58, 2  ;;  %v607_v24 = vrot.slane %v8817_v30, 2  ;;  %v603_v12 = vsel %vm535_vm1, %v601_v41, %v602_v14  ;;  %v5888_v26 = vld [vmem:[%s8730_s1 + $0x190] sm:$0xff]  }
  0x74   : > { %4969 = vmatprep.subr.bf16.mxu1 %v5884_v29  ;;  %v6833_v29 = vpack.c.bf16 %v555_v33, %v553_v6  ;;  %v6835_v42 = vpack.c.bf16 %v600_v52, %v598_v4  ;;  %v8818_v1 = vunpack.c.l.bf16 %v6361_v8  ;;  %v465_v30 = vsel %vm422_vm0, %v6682_v22, %v6696_v31 }
  0x75   : > { %1400 = vmatmul.mubr.bf16.gmra.mxu0 %v6538_v23  ;;  %1529 = vmatmul.mubr.bf16.gmra.mxu1 %v6765_v20  ;;  %v467_v6 = vsel %vm422_vm0, %v6696_v31, %v6700_v60  ;;  %v605_v33 = vsel %vm535_vm1, %v602_v14, %v604_v32  ;;  %v608_v4 = vsel %vm535_vm1, %v606_v45, %v607_v24  ;;  %v8819_v8 = vunpack.c.h.bf16 %v6722_v2  ;;  %v5890_v31 = vld [vmem:[%s8730_s1 + $0x1c8] sm:$0xff]  }
  0x76   : > { %1407 = vmatprep.mubr.bf16.mxu0 %v6791_v21  ;;  %1536 = vmatprep.mubr.bf16.mxu1 %v6462_v34  ;;  %v609_v43 = vrot.slane %v8818_v1, 2  ;;  %v8820_v52 = vunpack.c.l.bf16 %v6751_v62  ;;  %v6855_v58 = vpack.c.bf16 %v605_v33, %v603_v12  ;;  %v8821_v14 = vunpack.c.l.bf16 %v6585_v5  ;;  %v5891_v12 = vld [vmem:[%s8730_s1 + $0x188] sm:$0xff]  }
  0x77   : > { %4970 = vmatpush3.bf16.msra.mxu1 %v5886_v36  ;;  %v479_v41 = vrot.slane %v8819_v8, 1  ;;  %v8822_v60 = vunpack.c.h.bf16 %v6585_v5  ;;  %v8823_v45 = vunpack.c.l.bf16 %v6410_v53  ;;  %v8825_v33 = vunpack.c.l.bf16 %v6413_v54 }
  0x78   : > { %v481_v3 = vrot.slane %v8820_v52, 1  ;;  %v610_v1 = vsel %vm535_vm1, %v607_v24, %v609_v43  ;;  %4971 = vmatprep.subr.bf16.mxu1 %v5887_v17  ;;  %v571_v22 = vrot.slane %v8821_v14, 2  ;;  %v6872_v17 = vpack.c.bf16 %v467_v6, %v465_v30 }
  0x79   : > { %v572_v36 = vrot.slane %v8822_v60, 2  ;;  %v6865_v32 = vpack.c.bf16 %v610_v1, %v608_v4  ;;  %v611_v8 = vrot.slane %v8823_v45, 2  ;;  %v8824_v24 = vunpack.c.h.bf16 %v6410_v53  ;;  %v5892_v4 = vld [vmem:[%s8730_s1 + $0x1c0] sm:$0xff]  }
  0x7a   : > { %v614_v52 = vrot.slane %v8825_v33, 2  ;;  %v8826_v14 = vunpack.c.l.bf16 %v6588_v46  ;;  %v5893_v46 = vld [vmem:[%s8730_s1 + $0x180] sm:$0xff]   ;;  %v558_v54 = vsel %vm535_vm1, %v6686_v51, %v6704_v48  ;;  %v470_v6 = vsel %vm422_vm0, %v6718_v16, %v6732_v35 }
  0x7b   : > { %v612_v43 = vrot.slane %v8824_v24, 2  ;;  %4972 = vmatpush3.bf16.msra.mxu1 %v5888_v26  ;;  %v560_v26 = vsel %vm535_vm1, %v6704_v48, %v6714_v15  ;;  %v8827_v15 = vunpack.c.l.bf16 %v6595_v25  ;;  %v8828_v16 = vunpack.c.h.bf16 %v6595_v25 }
  0x7c   : > { %v574_v60 = vrot.slane %v8826_v14, 2  ;;  %4973 = vmatprep.subr.bf16.mxu1 %v5890_v31  ;;  %v472_v31 = vsel %vm422_vm0, %v6732_v35, %v6736_v0  ;;  %v8830_v0 = vunpack.c.l.bf16 %v6620_v9  ;;  %v563_v33 = vsel %vm535_vm1, %v6744_v18, %v6748_v57 }
  0x7d   : > { %v613_v1 = vsel %vm535_vm1, %v611_v8, %v612_v43  ;;  %v615_v45 = vsel %vm535_vm1, %v612_v43, %v614_v52  ;;  %1408 = vmatmul.mubr.bf16.gmra.mxu0 %v6585_v5  ;;  %1537 = vmatmul.mubr.bf16.gmra.mxu1 %v6833_v29  ;;  %v6906_v8 = vpack.c.bf16 %v560_v26, %v558_v54  ;;  %v576_v51 = vrot.slane %v8827_v15, 2 }
  0x7e   : > { %v6887_v30 = vpack.c.bf16 %v615_v45, %v613_v1  ;;  %1415 = vmatprep.mubr.bf16.mxu0 %v6872_v17  ;;  %1544 = vmatprep.mubr.bf16.mxu1 %v6487_v28  ;;  %v6908_v24 = vpack.c.bf16 %v472_v31, %v470_v6  ;;  %v577_v48 = vrot.slane %v8828_v16, 2  ;;  %v8829_v43 = vunpack.c.l.bf16 %v6604_v27 }
  0x7f   : > { %4974 = vmatpush3.bf16.msra.mxu1 %v5891_v12  ;;  %v581_v12 = vrot.slane %v8830_v0, 2  ;;  %v565_v52 = vsel %vm535_vm1, %v6748_v57, %v6760_v56  ;;  %v475_v27 = vsel %vm422_vm0, %v6769_v11, %v6777_v37  ;;  %v477_v14 = vsel %vm422_vm0, %v6777_v37, %v6781_v61 }
  0x80   : > { %4975 = vmatprep.subr.bf16.mxu1 %v5892_v4  ;;  %v579_v35 = vrot.slane %v8829_v43, 2  ;;  %v6934_v4 = vpack.c.bf16 %v565_v52, %v563_v33  ;;  %v6936_v1 = vpack.c.bf16 %v477_v14, %v475_v27  ;;  %v568_v56 = vsel %vm535_vm1, %v6785_v10, %v6789_v38  ;;  %v5881_v52 = vld [vmem:[%s8730_s1 + $0x228] sm:$0xff]   ;;  %v5894_v27 = vld [vmem:[%s8730_s1 + $0x218] sm:$0xff]  }
  0x81   : > { %v570_v57 = vsel %vm535_vm1, %v6789_v38, %v6795_v44  ;;  %v480_v18 = vsel %vm422_vm0, %v6811_v19, %v479_v41  ;;  %v482_v11 = vsel %vm422_vm0, %v479_v41, %v481_v3  ;;  %v8831_v45 = vunpack.c.h.bf16 %v6620_v9 }
  0x82   : > { %v6951_v37 = vpack.c.bf16 %v570_v57, %v568_v56  ;;  %v6953_v61 = vpack.c.bf16 %v482_v11, %v480_v18  ;;  %v8832_v54 = vunpack.c.l.bf16 %v6645_v40  ;;  %v573_v44 = vsel %vm535_vm1, %v571_v22, %v572_v36  ;;  %v5895_v56 = vld [vmem:[%s8730_s1 + $0x210] sm:$0xff]   ;;  %v5896_v11 = vld [vmem:[%s8730_s1 + $0x208] sm:$0xff]  }
  0x83   : > { %4976 = vmatpush3.bf16.msra.mxu1 %v5893_v46  ;;  %v582_v46 = vrot.slane %v8831_v45, 2  ;;  %v575_v38 = vsel %vm535_vm1, %v572_v36, %v574_v60  ;;  %v8833_v10 = vunpack.c.l.bf16 %v6653_v39  ;;  %v8834_v41 = vunpack.c.h.bf16 %v6653_v39 }
  0x84   : > { %v584_v26 = vrot.slane %v8832_v54, 2  ;;  %v8835_v40 = vunpack.c.l.bf16 %v6689_v47  ;;  %v8836_v31 = vunpack.c.l.bf16 %v6722_v2  ;;  %v8837_v16 = vunpack.c.h.bf16 %v6722_v2  ;;  %v8839_v54 = vld [vmem:[#allocation16_spill] sm:$0xff] }
  0x85   : > { %1416 = vmatmul.mubr.bf16.gmra.mxu0 %v6595_v25  ;;  %1545 = vmatmul.mubr.bf16.gmra.mxu1 %v6906_v8  ;;  %v586_v19 = vrot.slane %v8833_v10, 2  ;;  %v587_v3 = vrot.slane %v8834_v41, 2  ;;  %v8838_v0 = vunpack.c.l.bf16 %v6751_v62  ;;  %v6977_v33 = vpack.c.bf16 %v575_v38, %v573_v44  ;;  %v5878_v62 = vld [vmem:[%s8730_s1 + $0x230] sm:$0xff]   ;;  %v8842_v38 = vld [vmem:[#allocation18_spill] sm:$0xff]  ;;  %v7046_v10 = vld [vmem:[%s6232_s9 + $0xc0] sm:$0xff]  }
  0x86   : > { %1423 = vmatprep.mubr.bf16.mxu0 %v6908_v24  ;;  %1552 = vmatprep.mubr.bf16.mxu1 %v6538_v23  ;;  %v589_v6 = vrot.slane %v8835_v40, 2  ;;  %v591_v15 = vrot.slane %v8836_v31, 2  ;;  %v592_v43 = vrot.slane %v8837_v16, 2  ;;  %v578_v47 = vsel %vm535_vm1, %v576_v51, %v577_v48  ;;  %v8841_v44 = vld [vmem:[#allocation17_spill] sm:$0xff]  ;;  %v316_v31 = vld [vmem:[%s6232_s9 + $0xc8] sm:$0x1] }
  0x87   : > { %v594_v22 = vrot.slane %v8838_v0, 2  ;;  %v580_v36 = vsel %vm535_vm1, %v577_v48, %v579_v35  ;;  %v585_v51 = vsel %vm535_vm1, %v582_v46, %v584_v26  ;;  %v5885_v35 = vld [vmem:[%s8730_s1 + $0x220] sm:$0xff]   ;;  %v8840_v26 = vld [vmem:[#allocation10_spill] sm:$0xff]  ;;  %v8844_v41 = vld [vmem:[#allocation13_spill] sm:$0xff] }
  0x88   : > { %v6985_v60 = vpack.c.bf16 %v580_v36, %v578_v47  ;;  %v593_v57 = vsel %vm535_vm1, %v591_v15, %v592_v43  ;;  %v8845_v40 = vld [vmem:[#allocation9_spill] sm:$0xff]  ;;  %v8846_v16 = vld [vmem:[#allocation12_spill] sm:$0xff]  ;;  %v370_v47 = vunpack.c.l.bf16 %v316_v31 }
  0x89   : > { %v595_v18 = vsel %vm535_vm1, %v592_v43, %v594_v22  ;;  %v369_v43 = vunpack.c.h.bf16 %v7046_v10 }
  0x8a   : > { %v7028_v45 = vpack.c.bf16 %v595_v18, %v593_v57 }
  0x8d   : > { %1424 = vmatmul.mubr.bf16.gmra.mxu0 %v6620_v9  ;;  %1553 = vmatmul.mubr.bf16.gmra.mxu1 %v6934_v4 }
  0x8e   : > { %1431 = vmatprep.mubr.bf16.mxu0 %v6936_v1  ;;  %1560 = vmatprep.mubr.bf16.mxu1 %v6585_v5 }
  0x95   : > { %1432 = vmatmul.mubr.bf16.gmra.mxu0 %v6653_v39  ;;  %1561 = vmatmul.mubr.bf16.gmra.mxu1 %v6951_v37 }
  0x96   : > { %1439 = vmatprep.mubr.bf16.mxu0 %v6953_v61  ;;  %1568 = vmatprep.mubr.bf16.mxu1 %v6595_v25 }
  0x9d   : > { %1440 = vmatmul.mubr.bf16.gmra.mxu0 %v6722_v2  ;;  %1569 = vmatmul.mubr.bf16.gmra.mxu1 %v6977_v33 }
  0x9e   : > { %1576 = vmatprep.mubr.bf16.mxu1 %v6620_v9  ;;  %1673 = vmatprep.mubr.bf16.mxu0 %v6661_v59  ;;  %v583_v59 = vsel %vm535_vm1, %v581_v12, %v582_v46  ;;  %v590_v12 = vsel %vm535_vm1, %v587_v3, %v589_v6  ;;  %v5897_v46 = vld [vmem:[%s8730_s1 + $0x200] sm:$0xff]   ;;  %v5900_v6 = vld [vmem:[%s8733_s4 + $0x30] sm:$0xff]  }
  0x9f   : > { %v7000_v48 = vpack.c.bf16 %v585_v51, %v583_v59 }
  0xa5   : > { %1577 = vmatmul.mubr.bf16.gmra.mxu1 %v6985_v60  ;;  %1674 = vmatmul.mubr.bf16.vlgmr.msra.gmra.mxu0 %v6341_v63 }
  0xa6   : > { %5594 = vmatpush3.bf16.msra.mxu0 %v6669_v50  ;;  %1584 = vmatprep.mubr.bf16.mxu1 %v6653_v39  ;;  %v588_v50 = vsel %vm535_vm1, %v586_v19, %v587_v3  ;;  %v8843_v19 = vld [vmem:[#allocation11_spill] sm:$0xff]  ;;  %v5899_v3 = vld [vmem:[%s8733_s4 + $0x38] sm:$0xff]  }
  0xa7   : > { %1681 = vmatprep.mubr.bf16.mxu0 %v6765_v20  ;;  %5595 = vmatprep.subr.bf16.mxu0 %v5878_v62  ;;  %v7014_v14 = vpack.c.bf16 %v590_v12, %v588_v50  ;;  %v661_v12 = vrot.slane %v370_v47, 2 }
  0xa8   : > { %5641 = vmatprep.subr.bf16.mxu1 %v5899_v3 }
  0xaa   : > { %5596 = vmatpush3.bf16.msra.mxu0 %v5878_v62 }
  0xab   : > { %5597 = vmatprep.subr.bf16.mxu0 %v5881_v52 }
  0xad   : > { %1585 = vmatmul.mubr.bf16.gmra.mxu1 %v7000_v48  ;;  %1682 = vmatmul.mubr.bf16.gmra.mxu0 %v6404_v49 }
  0xae   : > { %1592 = vmatprep.mubr.bf16.mxu1 %v6722_v2  ;;  %1689 = vmatprep.mubr.bf16.mxu0 %v6833_v29 }
  0xaf   : > { %5598 = vmatpush3.bf16.msra.mxu0 %v5881_v52 }
  0xb0   : > { %5599 = vmatprep.subr.bf16.mxu0 %v5885_v35 }
  0xb3   : > { %5600 = vmatpush3.bf16.msra.mxu0 %v5885_v35 }
  0xb4   : > { %5601 = vmatprep.subr.bf16.mxu0 %v5894_v27 }
  0xb5   : > { %1593 = vmatmul.mubr.bf16.gmra.mxu1 %v7014_v14  ;;  %1690 = vmatmul.mubr.bf16.gmra.mxu0 %v6467_v55 }
  0xb6   : > { %1600 = vmatprep.mubr.bf16.mxu1 %v6247_v13  ;;  %1697 = vmatprep.mubr.bf16.mxu0 %v6906_v8 }
  0xb7   : > { %5602 = vmatpush3.bf16.msra.mxu0 %v5894_v27 }
  0xb8   : > { %5603 = vmatprep.subr.bf16.mxu0 %v5895_v56 }
  0xbb   : > { %5604 = vmatpush3.bf16.msra.mxu0 %v5895_v56 }
  0xbc   : > { %5605 = vmatprep.subr.bf16.mxu0 %v5896_v11 }
  0xbd   : > { %1601 = vmatmul.mubr.bf16.gmra.mxu1 %v7028_v45  ;;  %1698 = vmatmul.mubr.bf16.gmra.mxu0 %v8839_v54 }
  0xbe   : > { %1608 = vmatprep.mubr.bf16.mxu1 %v8840_v26  ;;  %1705 = vmatprep.mubr.bf16.mxu0 %v6934_v4 }
  0xbf   : > { %5606 = vmatpush3.bf16.msra.mxu0 %v5896_v11  ;;  %v8847_v11 = vld [vmem:[#allocation14_spill] sm:$0xff] }
  0xc0   : > { %5607 = vmatprep.subr.bf16.mxu0 %v5897_v46 }
  0xc3   : > { %5608 = vmatpush3.bf16.msra.mxu0 %v5897_v46 }
  0xc5   : > { %1609 = vmatmul.mubr.bf16.gmra.mxu1 %v6835_v42  ;;  %1706 = vmatmul.mubr.bf16.gmra.mxu0 %v8841_v44 }
  0xc6   : > { %1616 = vmatprep.mubr.bf16.mxu1 %v6358_v7  ;;  %1713 = vmatprep.mubr.bf16.mxu0 %v6951_v37 }
  0xcd   : > { %1617 = vmatmul.mubr.bf16.gmra.mxu1 %v6855_v58  ;;  %1714 = vmatmul.mubr.bf16.gmra.mxu0 %v8842_v38 }
  0xce   : > { %1624 = vmatprep.mubr.bf16.mxu1 %v6410_v53  ;;  %1721 = vmatprep.mubr.bf16.mxu0 %v6977_v33 }
  0xd5   : > { %1625 = vmatmul.mubr.bf16.gmra.mxu1 %v6865_v32  ;;  %1722 = vmatmul.mubr.bf16.gmra.mxu0 %v6791_v21 }
  0xd6   : > { %1632 = vmatprep.mubr.bf16.mxu1 %v7046_v10  ;;  %1729 = vmatprep.mubr.bf16.mxu0 %v6985_v60 }
  0xdd   : > { %1633 = vmatmul.mubr.bf16.gmra.mxu1 %v6887_v30  ;;  %1730 = vmatmul.mubr.bf16.gmra.mxu0 %v6872_v17 }
  0xde   : > { %1737 = vmatprep.mubr.bf16.mxu0 %v7000_v48  ;;  %1834 = vmatprep.mubr.bf16.mxu1 %v6404_v49 }
  0xe5   : > { %1738 = vmatmul.mubr.bf16.gmra.mxu0 %v6908_v24  ;;  %1835 = vmatmul.mubr.bf16.vlgmr.msra.gmra.mxu1 %v8843_v19 }
  0xe6   : > { %1745 = vmatprep.mubr.bf16.mxu0 %v7014_v14  ;;  %1842 = vmatprep.mubr.bf16.mxu1 %v6467_v55 }
  0xe7   : > { %5642 = vmatpush3.bf16.msra.mxu1 %v5899_v3 }
  0xe8   : > { %5643 = vmatprep.subr.bf16.mxu1 %v5900_v6 }
  0xeb   : > { %5644 = vmatpush3.bf16.msra.mxu1 %v5900_v6 }
  0xed   : > { %1746 = vmatmul.mubr.bf16.gmra.mxu0 %v6936_v1  ;;  %1843 = vmatmul.mubr.bf16.gmra.mxu1 %v8844_v41 }
  0xee   : > { %1753 = vmatprep.mubr.bf16.mxu0 %v7028_v45  ;;  %1850 = vmatprep.mubr.bf16.mxu1 %v8839_v54 }
  0xf5   : > { %1754 = vmatmul.mubr.bf16.gmra.mxu0 %v6953_v61  ;;  %1851 = vmatmul.mubr.bf16.gmra.mxu1 %v6462_v34 }
  0xf6   : > { %1761 = vmatprep.mubr.bf16.mxu0 %v6835_v42  ;;  %1858 = vmatprep.mubr.bf16.mxu1 %v8841_v44 }
  0xfd   : > { %1762 = vmatmul.mubr.bf16.gmra.mxu0 %v8845_v40  ;;  %1859 = vmatmul.mubr.bf16.gmra.mxu1 %v6487_v28  ;;  %v368_v28 = vunpack.c.l.bf16 %v7046_v10 }
  0xfe   : > { %1769 = vmatprep.mubr.bf16.mxu0 %v6855_v58  ;;  %1866 = vmatprep.mubr.bf16.mxu1 %v8842_v38 }
  0xff   : > { %v658_v51 = vrot.slane %v368_v28, 2 }
 0x105   : > { %v4641_v34 = vpop.f32.mrf.mxu0  ;;  %v4713_v15 = vpop.f32.mrf.mxu1  ;;  %1770 = vmatmul.mubr.bf16.gmra.mxu0 %v8846_v16  ;;  %1867 = vmatmul.mubr.bf16.gmra.mxu1 %v6538_v23  ;;  %v659_v23 = vrot.slane %v369_v43, 2 }
 0x106   : > { %1777 = vmatprep.mubr.bf16.mxu0 %v6865_v32  ;;  %1874 = vmatprep.mubr.bf16.mxu1 %v6791_v21 }
 0x107   : > { %v4642_v0 = vpop.f32.mrf.mxu0  ;;  %v4714_v22 = vpop.f32.mrf.mxu1  ;;  %v660_v41 = vsel %vm535_vm1, %v658_v51, %v659_v23  ;;  %v662_v3 = vsel %vm535_vm1, %v659_v23, %v661_v12 }
 0x108   : > { %v7085_v36 = vadd.f32 %v4642_v0, %v4641_v34  ;;  %v7087_v62 = vadd.f32 %v4714_v22, %v4713_v15  ;;  %v651_v0 = vrot.slane %v368_v28, 1  ;;  %v652_v22 = vrot.slane %v369_v43, 1 }
 0x109   : > { %v4644_v52 = vpop.f32.mrf.mxu0  ;;  %v4716_v59 = vpop.f32.mrf.mxu1 }
 0x10a   : > { %v653_v28 = vsel %vm422_vm0, %v651_v0, %v652_v22 }
 0x10b   : > { %v4645_v35 = vpop.f32.mrf.mxu0  ;;  %v4717_v50 = vpop.f32.mrf.mxu1 }
 0x10c   : > { %v7089_v27 = vadd.f32 %v4645_v35, %v4644_v52  ;;  %v7091_v56 = vadd.f32 %v4717_v50, %v4716_v59  ;;  %v7103_v52 = vpack.c.bf16 %v662_v3, %v660_v41  ;;  %v5901_v59 = vld [vmem:[%s8733_s4 + $0x28] sm:$0xff]  }
 0x10d   : > { %v4647_v57 = vpop.f32.mrf.mxu0  ;;  %v4719_v18 = vpop.f32.mrf.mxu1  ;;  %1778 = vmatmul.mubr.bf16.gmra.mxu0 %v8847_v11  ;;  %1875 = vmatmul.mubr.bf16.gmra.mxu1 %v6585_v5  ;;  %v654_v5 = vrot.slane %v370_v47, 1 }
 0x10e   : > { %1785 = vmatprep.mubr.bf16.mxu0 %v6887_v30  ;;  %1882 = vmatprep.mubr.bf16.mxu1 %v6872_v17 }
 0x10f   : > { %v4648_v46 = vpop.f32.mrf.mxu0  ;;  %v4720_v19 = vpop.f32.mrf.mxu1  ;;  %5645 = vmatprep.subr.bf16.mxu1 %v5901_v59  ;;  %v655_v43 = vsel %vm422_vm0, %v652_v22, %v654_v5 }
 0x110   : > { %v7099_v6 = vadd.f32 %v4648_v46, %v4647_v57  ;;  %v7101_v31 = vadd.f32 %v4720_v19, %v4719_v18  ;;  %v8850_v18 = vld [vmem:[#allocation15_spill] sm:$0xff]  ;;  %5646 = vmatpush3.bf16.msra.mxu1 %v5901_v59 }
 0x111   : > { %v4650_v34 = vpop.f32.mrf.mxu0  ;;  %v4722_v15 = vpop.f32.mrf.mxu1 }
 0x112   : > { %8848 = vst [vmem:[#allocation16_spill] sm:$0xff] %v7101_v31 }
 0x113   : > { %v4651_v35 = vpop.f32.mrf.mxu0  ;;  %v4723_v50 = vpop.f32.mrf.mxu1 }
 0x114   : > { %v7108_v51 = vadd.f32 %v4651_v35, %v4650_v34  ;;  %v7110_v23 = vadd.f32 %v4723_v50, %v4722_v15  ;;  %v7122_v15 = vpack.c.bf16 %v655_v43, %v653_v28  ;;  %v5902_v43 = vld [vmem:[%s8733_s4 + $0x20] sm:$0xff]  }
 0x115   : > { %v4653_v12 = vpop.f32.mrf.mxu0  ;;  %v4725_v57 = vpop.f32.mrf.mxu1  ;;  %1786 = vmatmul.mubr.bf16.gmra.mxu0 %v8850_v18  ;;  %1883 = vmatmul.mubr.bf16.gmra.mxu1 %v6595_v25 }
 0x116   : > { %8849 = vst [vmem:[#allocation10_spill] sm:$0xff] %v7110_v23  ;;  %1793 = vmatprep.mubr.bf16.mxu0 %v7103_v52  ;;  %1890 = vmatprep.mubr.bf16.mxu1 %v6908_v24  ;;  %8852 = vst [vmem:[#allocation18_spill] sm:$0xff] %v7122_v15 }
 0x117   : > { %v4654_v47 = vpop.f32.mrf.mxu0  ;;  %v4726_v46 = vpop.f32.mrf.mxu1  ;;  %5647 = vmatprep.subr.bf16.mxu1 %v5902_v43 }
 0x118   : > { %v7118_v19 = vadd.f32 %v4654_v47, %v4653_v12  ;;  %v7120_v41 = vadd.f32 %v4726_v46, %v4725_v57  ;;  %5648 = vmatpush3.bf16.msra.mxu1 %v5902_v43 }
 0x119   : > { %v4656_v3 = vpop.f32.mrf.mxu0  ;;  %v4728_v34 = vpop.f32.mrf.mxu1 }
 0x11a   : > { %8851 = vst [vmem:[#allocation17_spill] sm:$0xff] %v7120_v41 }
 0x11b   : > { %v4657_v25 = vpop.f32.mrf.mxu0  ;;  %v4729_v35 = vpop.f32.mrf.mxu1 }
 0x11c   : > { %v7124_v50 = vadd.f32 %v4657_v25, %v4656_v3  ;;  %v7126_v23 = vadd.f32 %v4729_v35, %v4728_v34 }
 0x11d   : > { %v4659_v0 = vpop.f32.mrf.mxu0  ;;  %v4731_v31 = vpop.f32.mrf.mxu1  ;;  %1794 = vmatmul.mubr.bf16.gmra.mxu0 %v7122_v15  ;;  %1891 = vmatmul.mubr.bf16.gmra.mxu1 %v6620_v9 }
 0x11e   : > { %8853 = vst [vmem:[#allocation11_spill] sm:$0xff] %v7126_v23  ;;  %1898 = vmatprep.mubr.bf16.mxu1 %v6936_v1  ;;  %5609 = vmatprep.mubr.bf16.mxu0 %v6765_v20  ;;  %v7146_v20 = vld [vmem:[%s8731_s2] ss:$0 sm:$0xff] }
 0x11f   : > { %v4660_v22 = vpop.f32.mrf.mxu0  ;;  %v4732_v5 = vpop.f32.mrf.mxu1 }
 0x120   : > { %v7132_v59 = vadd.f32 %v4660_v22, %v4659_v0  ;;  %v7134_v12 = vadd.f32 %v4732_v5, %v4731_v31  ;;  %v1354_v0 = vadd.f32 %v7085_v36, %v7146_v20 }
 0x121   : > { %v4662_v57 = vpop.f32.mrf.mxu0  ;;  %v4734_v28 = vpop.f32.mrf.mxu1 }
 0x122   : > { %8854 = vst [vmem:[#allocation13_spill] sm:$0xff] %v7134_v12 }
 0x123   : > { %v4663_v47 = vpop.f32.mrf.mxu0  ;;  %v4735_v46 = vpop.f32.mrf.mxu1 }
 0x124   : > { %v7139_v3 = vadd.f32 %v4663_v47, %v4662_v57  ;;  %v7141_v9 = vadd.f32 %v4735_v46, %v4734_v28 }
 0x125   : > { %v4665_v31 = vpop.f32.mrf.mxu0  ;;  %v4753_v34 = vpop.f32.mrf.mxu1  ;;  %1899 = vmatmul.mubr.bf16.gmra.mxu1 %v6653_v39  ;;  %5610 = vmatmul.mubr.bf16.vlgmr.msra.gmra.mxu0 %v6833_v29  ;;  %v5903_v39 = vld [vmem:[%s8733_s4 + $0x18] sm:$0xff]  }
 0x126   : > { %8855 = vst [vmem:[#allocation9_spill] sm:$0xff] %v7141_v9  ;;  %1906 = vmatprep.mubr.bf16.mxu1 %v6953_v61  ;;  %5613 = vmatprep.mubr.bf16.mxu0 %v6906_v8  ;;  %v1357_v8 = vadd.f32 %v7089_v27, %v7146_v20 }
 0x127   : > { %v4666_v25 = vpop.f32.mrf.mxu0  ;;  %v4754_v35 = vpop.f32.mrf.mxu1  ;;  %5649 = vmatprep.subr.bf16.mxu1 %v5903_v39 }
 0x128   : > { %v7154_v22 = vadd.f32 %v4666_v25, %v4665_v31  ;;  %v4755_v5 = vadd.f32 %v4754_v35, %v4753_v34  ;;  %5650 = vmatpush3.bf16.msra.mxu1 %v5903_v39  ;;  %v5904_v25 = vld [vmem:[%s8733_s4 + $0x10] sm:$0xff]   ;;  %v5905_v39 = vld [vmem:[%s8733_s4 + $0x8] sm:$0xff]  }
 0x129   : > { %v4668_v57 = vpop.f32.mrf.mxu0  ;;  %v4756_v28 = vpop.f32.mrf.mxu1  ;;  %5651 = vmatprep.subr.bf16.mxu1 %v5904_v25 }
 0x12a   : > { %v7159_v29 = vadd.f32 %v4755_v5, %v1354_v0  ;;  %v1362_v5 = vadd.f32 %v7099_v6, %v7146_v20 }
 0x12b   : > { %v4669_v47 = vpop.f32.mrf.mxu0  ;;  %v4757_v46 = vpop.f32.mrf.mxu1 }
 0x12c   : > { %v7163_v43 = vadd.f32 %v4669_v47, %v4668_v57  ;;  %v4758_v36 = vadd.f32 %v4757_v46, %v4756_v28  ;;  %5652 = vmatpush3.bf16.msra.mxu1 %v5904_v25  ;;  %v5907_v25 = vld [vmem:[%s8733_s4] sm:$0xff]  }
 0x12d   : > { %v4671_v31 = vpop.f32.mrf.mxu0  ;;  %v4759_v34 = vpop.f32.mrf.mxu1  ;;  %1907 = vmatmul.mubr.bf16.gmra.mxu1 %v6722_v2  ;;  %5614 = vmatmul.mubr.bf16.gmra.mxu0 %v6934_v4 }
 0x12e   : > { %v7170_v35 = vadd.f32 %v4758_v36, %v1357_v8  ;;  %1914 = vmatprep.mubr.bf16.mxu1 %v8845_v40  ;;  %5617 = vmatprep.mubr.bf16.mxu0 %v6951_v37  ;;  %v1365_v8 = vadd.f32 %v7108_v51, %v7146_v20  ;;  %v5906_v51 = vld [vmem:[#allocation3 + $0x78] sm:$0xff]  }
 0x12f   : > { %v4672_v27 = vpop.f32.mrf.mxu0  ;;  %v4760_v0 = vpop.f32.mrf.mxu1  ;;  %5653 = vmatprep.subr.bf16.mxu1 %v5905_v39  ;;  %5121 = vmatprep.subr.bf16.mxu0 %v5906_v51 }
 0x130   : > { %v7176_v57 = vadd.f32 %v4672_v27, %v4671_v31  ;;  %v4761_v2 = vadd.f32 %v4760_v0, %v4759_v34  ;;  %5654 = vmatpush3.bf16.msra.mxu1 %v5905_v39 }
 0x131   : > { %v4674_v4 = vpop.f32.mrf.mxu0  ;;  %v4762_v28 = vpop.f32.mrf.mxu1  ;;  %5655 = vmatprep.subr.bf16.mxu1 %v5907_v25 }
 0x132   : > { %v7181_v47 = vadd.f32 %v4761_v2, %v1362_v5  ;;  %v1370_v2 = vadd.f32 %v7118_v19, %v7146_v20 }
 0x133   : > { %v4675_v46 = vpop.f32.mrf.mxu0  ;;  %v4763_v37 = vpop.f32.mrf.mxu1 }
 0x134   : > { %v7185_v36 = vadd.f32 %v4675_v46, %v4674_v4  ;;  %v4764_v6 = vadd.f32 %v4763_v37, %v4762_v28  ;;  %5656 = vmatpush3.bf16.msra.mxu1 %v5907_v25  ;;  %v5908_v46 = vld [vmem:[#allocation3 + $0x38] sm:$0xff]   ;;  %v5909_v25 = vld [vmem:[#allocation3 + $0x70] sm:$0xff]  }
 0x135   : > { %v4677_v31 = vpop.f32.mrf.mxu0  ;;  %v4765_v34 = vpop.f32.mrf.mxu1  ;;  %1915 = vmatmul.mubr.bf16.gmra.mxu1 %v6247_v13  ;;  %5618 = vmatmul.mubr.bf16.gmra.mxu0 %v6977_v33 }
 0x136   : > { %v7192_v27 = vadd.f32 %v4764_v6, %v1365_v8  ;;  %1922 = vmatprep.mubr.bf16.mxu1 %v8846_v16  ;;  %5621 = vmatprep.mubr.bf16.mxu0 %v6985_v60  ;;  %v1373_v60 = vadd.f32 %v7124_v50, %v7146_v20 }
 0x137   : > { %v4678_v0 = vpop.f32.mrf.mxu0  ;;  %v4766_v5 = vpop.f32.mrf.mxu1  ;;  %5122 = vmatpush3.bf16.msra.mxu0 %v5908_v46 }
 0x138   : > { %v7198_v13 = vadd.f32 %v4678_v0, %v4677_v31  ;;  %v4767_v33 = vadd.f32 %v4766_v5, %v4765_v34  ;;  %v1378_v0 = vadd.f32 %v7132_v59, %v7146_v20  ;;  %5123 = vmatprep.subr.bf16.mxu0 %v5909_v25  ;;  %v319_v59 = vld [vmem:[%s6232_s9 + $0xd4] sm:$0x1] }
 0x139   : > { %v4680_v4 = vpop.f32.mrf.mxu0  ;;  %v4768_v28 = vpop.f32.mrf.mxu1 }
 0x13a   : > { %v7200_v39 = vadd.f32 %v4767_v33, %v1370_v2  ;;  %v5910_v33 = vld [vmem:[#allocation3 + $0x30] sm:$0xff]  }
 0x13b   : > { %v4681_v37 = vpop.f32.mrf.mxu0  ;;  %v4769_v8 = vpop.f32.mrf.mxu1  ;;  %5124 = vmatpush3.bf16.msra.mxu0 %v5910_v33 }
 0x13c   : > { %v7204_v6 = vadd.f32 %v4681_v37, %v4680_v4  ;;  %v4770_v9 = vadd.f32 %v4769_v8, %v4768_v28  ;;  %v7223_v8 = vld [vmem:[%s6232_s9 + $0xcc] sm:$0xff]   ;;  %s257_s9 = sand.u32 1, %s6081_s22  }
 0x13d   : > { %v4683_v19 = vpop.f32.mrf.mxu0  ;;  %v4771_v31 = vpop.f32.mrf.mxu1  ;;  %1923 = vmatmul.mubr.bf16.gmra.mxu1 %v8840_v26  ;;  %5622 = vmatmul.mubr.bf16.gmra.mxu0 %v7000_v48  ;;  %s4445_s16 = sshll.u32 %s257_s9, 8  ;;  %s8689_s25 = scalar_lea.sflag [#allocation5], %s257_s9 }
 0x13e   : > { %v7208_v34 = vadd.f32 %v4770_v9, %v1373_v60  ;;  %1930 = vmatprep.mubr.bf16.mxu1 %v8847_v11  ;;  %5625 = vmatprep.mubr.bf16.mxu0 %v7014_v14  ;;  %v1381_v14 = vadd.f32 %v7139_v3, %v7146_v20  ;;  %v5911_v3 = vld [vmem:[#allocation3 + $0x68] sm:$0xff]   ;;  %s8520_s17 = scalar_lea.vmem [#allocation6], %s4445_s16 }
 0x13f   : > { %v4684_v51 = vpop.f32.mrf.mxu0  ;;  %v4772_v50 = vpop.f32.mrf.mxu1  ;;  %5125 = vmatprep.subr.bf16.mxu0 %v5911_v3  ;;  %s4365_s19 = sshll.u32 %s8520_s17, 4  ;;  %s8683_s19 = int_to_ptr.vmem [resolvable:$true] %s4365_s19 }
 0x140   : > { %v7214_v5 = vadd.f32 %v4684_v51, %v4683_v19  ;;  %v4773_v2 = vadd.f32 %v4772_v50, %v4771_v31  ;;  %v371_v50 = vunpack.c.l.bf16 %v7223_v8  ;;  %s6025_s29 = scalar_lea.vmem %s8683_s19, 4096  ;;  %p6032_p11 = scmp.lt.s32.totalorder %s8683_s19, %s6030_s11 }
 0x141   : > { %v4686_v26 = vpop.f32.mrf.mxu0  ;;  %v4774_v48 = vpop.f32.mrf.mxu1  ;;  %p6026_p8 = scmp.ne.s32.totalorder %s8683_s19, %s6025_s29  ;;  %p6033_p12 = scmp.lt.s32.totalorder %s6031_s12, %s6025_s29 }
 0x142   : > { %v7216_v9 = vadd.f32 %v4773_v2, %v1378_v0  ;;  %v372_v0 = vunpack.c.h.bf16 %v7223_v8  ;;  %v373_v2 = vunpack.c.l.bf16 %v319_v59  ;;  %v1389_v59 = vadd.f32 %v7163_v43, %v7146_v20 }
 0x143   : > { %v4687_v4 = vpop.f32.mrf.mxu0  ;;  %v4775_v28 = vpop.f32.mrf.mxu1  ;;  %p6027_p9 = pnand %p6026_p8, %p6172_p5  ;;  %p6034_p13 = por %p6033_p12, %p6032_p11 }
 0x144   : > { %v7220_v46 = vadd.f32 %v4687_v4, %v4686_v26  ;;  %v4776_v37 = vadd.f32 %v4775_v28, %v4774_v48  ;;  %v1386_v26 = vadd.f32 %v7154_v22, %v7146_v20  ;;  %v669_v12 = vrot.slane %v372_v0, 1 }
 0x145   : > { %v4689_v60 = vpop.f32.mrf.mxu0  ;;  %v4777_v19 = vpop.f32.mrf.mxu1  ;;  %1931 = vmatmul.mubr.bf16.gmra.mxu1 %v6358_v7  ;;  %5626 = vmatmul.mubr.bf16.gmra.mxu0 %v7028_v45  ;;  %v671_v23 = vrot.slane %v373_v2, 1  ;;  %p6028_p10 = pneg %p6027_p9 }
 0x146   : > { %v7228_v31 = vadd.f32 %v4776_v37, %v1381_v14  ;;  %1938 = vmatprep.mubr.bf16.mxu1 %v8850_v18  ;;  %5629 = vmatprep.mubr.bf16.mxu0 %v6835_v42  ;;  %v5912_v42 = vld [vmem:[#allocation3 + $0x28] sm:$0xff]   ;;  %v668_v37 = vrot.slane %v371_v50, 1 }
 0x147   : > { %v4690_v25 = vpop.f32.mrf.mxu0  ;;  %v4778_v51 = vpop.f32.mrf.mxu1  ;;  %5126 = vmatpush3.bf16.msra.mxu0 %v5912_v42  ;;  %p6035_p0 = pnand %p6034_p13, %p6028_p10 }
 0x148   : > { %v7236_v7 = vadd.f32 %v4690_v25, %v4689_v60  ;;  %v4779_v45 = vadd.f32 %v4778_v51, %v4777_v19  ;;  %v5913_v25 = vld [vmem:[#allocation3 + $0x60] sm:$0xff]   ;;  %v670_v43 = vsel %vm422_vm0, %v668_v37, %v669_v12 }
 0x149   : > { %v4692_v48 = vpop.f32.mrf.mxu0  ;;  %v4780_v33 = vpop.f32.mrf.mxu1  ;;  %5127 = vmatprep.subr.bf16.mxu0 %v5913_v25  ;;  %v5915_v25 = vld [vmem:[#allocation3 + $0x58] sm:$0xff]  }
 0x14a   : > { %v7238_v4 = vadd.f32 %v4779_v45, %v1386_v26  ;;  %v672_v45 = vsel %vm422_vm0, %v669_v12, %v671_v23  ;;  %v1397_v12 = vadd.f32 %v7185_v36, %v7146_v20 }
 0x14b   : > { %v4693_v28 = vpop.f32.mrf.mxu0  ;;  %v4781_v14 = vpop.f32.mrf.mxu1 }
 0x14c   : > { %v7242_v41 = vadd.f32 %v4693_v28, %v4692_v48  ;;  %v4782_v22 = vadd.f32 %v4781_v14, %v4780_v33  ;;  %v1394_v48 = vadd.f32 %v7176_v57, %v7146_v20  ;;  %v675_v28 = vrot.slane %v371_v50, 2 }
 0x14d   : > { %v4695_v60 = vpop.f32.mrf.mxu0  ;;  %v4783_v19 = vpop.f32.mrf.mxu1  ;;  %1939 = vmatmul.mubr.bf16.gmra.mxu1 %v6410_v53  ;;  %5630 = vmatmul.mubr.bf16.gmra.mxu0 %v6855_v58 }
 0x14e   : > { %v7246_v3 = vadd.f32 %v4782_v22, %v1389_v59  ;;  %1946 = vmatprep.mubr.bf16.mxu1 %v7122_v15  ;;  %5633 = vmatprep.mubr.bf16.mxu0 %v6865_v32  ;;  %v734_v32 = vpack.c.bf16 %v672_v45, %v670_v43  ;;  %v676_v59 = vrot.slane %v372_v0, 2  ;;  %v678_v22 = vrot.slane %v373_v2, 2  ;;  %v5914_v15 = vld [vmem:[#allocation3 + $0x20] sm:$0xff]  }
 0x14f   : > { %v4696_v51 = vpop.f32.mrf.mxu0  ;;  %v4784_v26 = vpop.f32.mrf.mxu1  ;;  %5128 = vmatpush3.bf16.msra.mxu0 %v5914_v15  ;;  %v1402_v15 = vadd.f32 %v7198_v13, %v7146_v20  ;;  %v1405_v13 = vadd.f32 %v7204_v6, %v7146_v20 }
 0x150   : > { %v7254_v33 = vadd.f32 %v4696_v51, %v4695_v60  ;;  %v4785_v53 = vadd.f32 %v4784_v26, %v4783_v19  ;;  %v677_v0 = vsel %vm535_vm1, %v675_v28, %v676_v59  ;;  %v679_v2 = vsel %vm535_vm1, %v676_v59, %v678_v22  ;;  %5129 = vmatprep.subr.bf16.mxu0 %v5915_v25  ;;  %v5919_v59 = vld [vmem:[#allocation3 + $0x50] sm:$0xff]  }
 0x151   : > { %v7256_v58 = vpop.f32.mrf.mxu0  ;;  %v4786_v42 = vpop.f32.mrf.mxu1  ;;  %v735_v45 = vpack.c.bf16 %v679_v2, %v677_v0  ;;  %v8781_v22 = vmov 0.0   ;;  %v1410_v0 = vadd.f32 %v7214_v5, %v7146_v20  ;;  %v1413_v5 = vadd.f32 %v7220_v46, %v7146_v20 }
 0x152   : > { %v7258_v14 = vadd.f32 %v4785_v53, %v1394_v48  ;;  %v5916_v48 = vld [vmem:[#allocation3 + $0x18] sm:$0xff]   ;;  %2156 = vst [vmem:[#allocation2] sm:$0xff] %v8781_v22  ;;  %2158 = vst [vmem:[#allocation2 + $0x10] sm:$0x3] %v8781_v22  ;;  %v1418_v46 = vadd.f32 %v7236_v7, %v7146_v20  ;;  %v5926_v7 = vld [vmem:[#allocation3 + $0xa8] sm:$0xff]  }
 0x153   : > { %v7260_v37 = vpop.f32.mrf.mxu0  ;;  %v4787_v23 = vpop.f32.mrf.mxu1  ;;  %5130 = vmatpush3.bf16.msra.mxu0 %v5916_v48  ;;  %2162 = vst [vmem:[#allocation2 + $0x1a8] sm:$0x3] %v8781_v22  ;;  %2164 = vst [vmem:[#allocation2 + $0x18] sm:$0x1] %v8781_v22  ;;  %v5921_v48 = vld [vmem:[#allocation3 + $0xf0] sm:$0xff]  }
 0x154   : > { %v4788_v57 = vadd.f32 %v4787_v23, %v4786_v42  ;;  %2165 = vst [vmem:[#allocation2 + $0x30] sm:$0x1] %v8781_v22  ;;  %2166 = vst [vmem:[#allocation2 + $0x48] sm:$0x1] %v8781_v22  ;;  %5131 = vmatprep.subr.bf16.mxu0 %v5919_v59 }
 0x155   : > { %v4701_v60 = vpop.f32.mrf.mxu0  ;;  %v4789_v19 = vpop.f32.mrf.mxu1  ;;  %1947 = vmatmul.mubr.bf16.gmra.mxu1 %v7046_v10  ;;  %5634 = vmatmul.mubr.bf16.gmra.mxu0 %v6887_v30  ;;  %2167 = vst [vmem:[#allocation2 + $0x60] sm:$0x1] %v8781_v22  ;;  %2168 = vst [vmem:[#allocation2 + $0x78] sm:$0x1] %v8781_v22 }
 0x156   : > { %v7266_v50 = vadd.f32 %v4788_v57, %v1397_v12  ;;  %1954 = vmatprep.mubr.bf16.mxu1 %v734_v32  ;;  %5637 = vmatprep.mubr.bf16.mxu0 %v7103_v52  ;;  %v5917_v52 = vld [vmem:[#allocation3 + $0xf8] sm:$0xff]   ;;  %2169 = vst [vmem:[#allocation2 + $0x90] sm:$0x1] %v8781_v22  ;;  %2170 = vst [vmem:[#allocation2 + $0xa8] sm:$0x1] %v8781_v22  ;;  %v5920_v12 = vld [vmem:[#allocation3 + $0x10] sm:$0xff]  }
 0x157   : > { %v4702_v51 = vpop.f32.mrf.mxu0  ;;  %v4790_v36 = vpop.f32.mrf.mxu1  ;;  %5233 = vmatprep.subr.bf16.mxu1 %v5917_v52  ;;  %2171 = vst [vmem:[#allocation2 + $0xc0] sm:$0x1] %v8781_v22  ;;  %2172 = vst [vmem:[#allocation2 + $0xd8] sm:$0x1] %v8781_v22  ;;  %5132 = vmatpush3.bf16.msra.mxu0 %v5920_v12  ;;  %v5929_v12 = vld [vmem:[#allocation3] sm:$0xff]  }
 0x158   : > { %v7273_v26 = vadd.f32 %v4702_v51, %v4701_v60  ;;  %v4791_v10 = vadd.f32 %v4790_v36, %v4789_v19  ;;  %2173 = vst [vmem:[#allocation2 + $0xf0] sm:$0x1] %v8781_v22  ;;  %2174 = vst [vmem:[#allocation2 + $0x108] sm:$0x1] %v8781_v22  ;;  %v5923_v51 = vld [vmem:[#allocation3 + $0x48] sm:$0xff]  }
 0x159   : > { %v7275_v30 = vpop.f32.mrf.mxu0  ;;  %v4792_v43 = vpop.f32.mrf.mxu1  ;;  %2175 = vst [vmem:[#allocation2 + $0x120] sm:$0x1] %v8781_v22  ;;  %2176 = vst [vmem:[#allocation2 + $0x138] sm:$0x1] %v8781_v22  ;;  %5133 = vmatprep.subr.bf16.mxu0 %v5923_v51  ;;  %v7332_v52 = vld [vmem:[#allocation2 + $0x10] sm:$0x3] }
 0x15a   : > { %v7277_v53 = vadd.f32 %v4791_v10, %v1402_v15  ;;  %2177 = vst [vmem:[#allocation2 + $0x150] sm:$0x1] %v8781_v22  ;;  %2178 = vst [vmem:[#allocation2 + $0x168] sm:$0x1] %v8781_v22  ;;  %v5925_v15 = vld [vmem:[#allocation3 + $0x8] sm:$0xff]   ;;  %v2333_v59 = vrot.slane %v7332_v52, 1 }
 0x15b   : > { %v7279_v42 = vpop.f32.mrf.mxu0  ;;  %v4793_v28 = vpop.f32.mrf.mxu1  ;;  %2179 = vst [vmem:[#allocation2 + $0x180] sm:$0x1] %v8781_v22  ;;  %2180 = vst [vmem:[#allocation2 + $0x29] sm:$0x1] %v8781_v22  ;;  %5134 = vmatpush3.bf16.msra.mxu0 %v5925_v15  ;;  %v5924_v51 = vld [vmem:[#allocation3 + $0xe8] sm:$0xff]  }
 0x15c   : > { %v4794_v32 = vadd.f32 %v4793_v28, %v4792_v43  ;;  %2181 = vst [vmem:[#allocation2 + $0x41] sm:$0x1] %v8781_v22  ;;  %2182 = vst [vmem:[#allocation2 + $0x59] sm:$0x1] %v8781_v22  ;;  %v5918_v43 = vld [vmem:[#allocation3 + $0xb8] sm:$0xff]  }
 0x15d   : > { %2183 = vst [vmem:[#allocation2 + $0x71] sm:$0x1] %v8781_v22  ;;  %2184 = vst [vmem:[#allocation2 + $0x89] sm:$0x1] %v8781_v22  ;;  %v4707_v6 = vpop.f32.mrf.mxu0  ;;  %v4795_v23 = vpop.f32.mrf.mxu1  ;;  %1955 = vmatmul.mubr.bf16.gmra.mxu1 %v7223_v8  ;;  %5638 = vmatmul.mubr.bf16.gmra.mxu0 %v735_v45 }
 0x15e   : > { %2185 = vst [vmem:[#allocation2 + $0xa1] sm:$0x1] %v8781_v22  ;;  %2186 = vst [vmem:[#allocation2 + $0xb9] sm:$0x1] %v8781_v22  ;;  %v7319_v57 = vadd.f32 %v4794_v32, %v1405_v13  ;;  %5657 = vmatprep.mubr.bf16.mxu1 %v6341_v63  ;;  %v5927_v13 = vld [vmem:[#allocation3 + $0x40] sm:$0xff]   ;;  %v2330_v32 = vrot.slane %v8781_v22, 1 }
 0x15f   : > { %2187 = vst [vmem:[#allocation2 + $0xd1] sm:$0x1] %v8781_v22  ;;  %2188 = vst [vmem:[#allocation2 + $0xe9] sm:$0x1] %v8781_v22  ;;  %v4708_v60 = vpop.f32.mrf.mxu0  ;;  %v4796_v19 = vpop.f32.mrf.mxu1  ;;  %5135 = vmatprep.subr.bf16.mxu0 %v5927_v13  ;;  %v5928_v13 = vld [vmem:[#allocation3 + $0xe0] sm:$0xff]  }
 0x160   : > { %2189 = vst [vmem:[#allocation2 + $0x101] sm:$0x1] %v8781_v22  ;;  %2190 = vst [vmem:[#allocation2 + $0x119] sm:$0x1] %v8781_v22  ;;  %v7324_v2 = vadd.f32 %v4708_v60, %v4707_v6  ;;  %v4797_v25 = vadd.f32 %v4796_v19, %v4795_v23  ;;  %v5922_v19 = vld [vmem:[#allocation3 + $0xb0] sm:$0xff]   ;;  %5136 = vmatpush3.bf16.msra.mxu0 %v5929_v12 }
 0x161   : > { %2191 = vst [vmem:[#allocation2 + $0x131] sm:$0x1] %v8781_v22  ;;  %2192 = vst [vmem:[#allocation2 + $0x149] sm:$0x1] %v8781_v22  ;;  %v7326_v36 = vpop.f32.mrf.mxu0  ;;  %v4798_v8 = vpop.f32.mrf.mxu1 }
 0x162   : > { %2193 = vst [vmem:[#allocation2 + $0x161] sm:$0x1] %v8781_v22  ;;  %2194 = vst [vmem:[#allocation2 + $0x179] sm:$0x1] %v8781_v22  ;;  %v7328_v10 = vadd.f32 %v4797_v25, %v1410_v0 }
 0x163   : > { %2195 = vst [vmem:[#allocation2 + $0x191] sm:$0x1] %v8781_v22  ;;  %v7330_v63 = vpop.f32.mrf.mxu0  ;;  %v4799_v45 = vpop.f32.mrf.mxu1  ;;  %8856 = vst [vmem:[#allocation12_spill] sm:$0xff] %v7332_v52  ;;  %v6095_v52 = vmov 0.0|0.0  }
 0x164   : > { %v4800_v28 = vadd.f32 %v4799_v45, %v4798_v8  ;;  %v2334_v8 = vsel %vm422_vm0, %v2330_v32, %v2333_v59  ;;  %v1421_v59 = vadd.f32 %v7242_v41, %v7146_v20  ;;  %v1426_v41 = vadd.f32 %v7254_v33, %v7146_v20 }
 0x165   : > { %v4801_v6 = vpop.f32.mrf.mxu1  ;;  %v4865_v23 = vpop.f32.mrf.mxu0  ;;  %5658 = vmatmul.mubr.bf16.vlgmr.msra.gmra.mxu1 %v6404_v49  ;;  %v2589_v49 = vpack.c.bf16 %v2334_v8, %v2330_v32 }
 0x166   : > { %v7339_v60 = vadd.f32 %v4800_v28, %v1413_v5  ;;  %5661 = vmatprep.mubr.bf16.mxu1 %v6467_v55  ;;  %5234 = vmatpush3.bf16.msra.mxu1 %v5918_v43 }
 0x167   : > { %v4802_v0 = vpop.f32.mrf.mxu1  ;;  %v4866_v25 = vpop.f32.mrf.mxu0  ;;  %5235 = vmatprep.subr.bf16.mxu1 %v5921_v48  ;;  %3475 = vmatprep.mubr.bf16.mxu0 %v2589_v49  ;;  %v5932_v49 = vld [vmem:[#allocation3 + $0x98] sm:$0xff]  }
 0x168   : > { %v4803_v15 = vadd.f32 %v4802_v0, %v4801_v6  ;;  %v4867_v45 = vadd.f32 %v4866_v25, %v4865_v23  ;;  %3476 = vmatmul.mubr.bf16.vlgmr.msra.gmra.mxu0 %v6095_v52  ;;  %v5931_v25 = vld [vmem:[#allocation3 + $0xd8] sm:$0xff]  }
 0x169   : > { %v4804_v5 = vpop.f32.mrf.mxu1  ;;  %v4868_v28 = vpop.f32.mrf.mxu0 }
 0x16a   : > { %v7345_v22 = vadd.f32 %v4803_v15, %v1418_v46  ;;  %v7348_v55 = vadd.f32 %v4867_v45, %v7159_v29  ;;  %5236 = vmatpush3.bf16.msra.mxu1 %v5922_v19  ;;  %v5930_v46 = vld [vmem:[#allocation3 + $0xa0] sm:$0xff]  }
 0x16b   : > { %v4805_v43 = vpop.f32.mrf.mxu1  ;;  %v4869_v48 = vpop.f32.mrf.mxu0  ;;  %5237 = vmatprep.subr.bf16.mxu1 %v5924_v51  ;;  %v4700_v51 = vadd.f32 %v7260_v37, %v7256_v58 }
 0x16c   : > { %v4806_v32 = vadd.f32 %v4805_v43, %v4804_v5  ;;  %v4870_v6 = vadd.f32 %v4869_v48, %v4868_v28 }
 0x16d   : > { %v4807_v23 = vpop.f32.mrf.mxu1  ;;  %v4871_v12 = vpop.f32.mrf.mxu0  ;;  %5662 = vmatmul.mubr.bf16.gmra.mxu1 %v8839_v54  ;;  %v1429_v33 = vadd.f32 %v4700_v51, %v7146_v20  ;;  %v5937_v51 = vld [vmem:[#allocation3 + $0x178] sm:$0xff]  }
 0x16e   : > { %v7353_v29 = vadd.f32 %v4806_v32, %v1421_v59  ;;  %v7356_v19 = vadd.f32 %v4870_v6, %v7170_v35  ;;  %5665 = vmatprep.mubr.bf16.mxu1 %v8841_v44  ;;  %5238 = vmatpush3.bf16.msra.mxu1 %v5926_v7  ;;  %v5933_v7 = vld [vmem:[#allocation3 + $0xd0] sm:$0xff]  }
 0x16f   : > { %v4808_v0 = vpop.f32.mrf.mxu1  ;;  %v4872_v52 = vpop.f32.mrf.mxu0  ;;  %5239 = vmatprep.subr.bf16.mxu1 %v5928_v13  ;;  %5345 = vmatprep.subr.bf16.mxu0 %v5937_v51 }
 0x170   : > { %v4809_v54 = vadd.f32 %v4808_v0, %v4807_v23  ;;  %v4873_v8 = vadd.f32 %v4872_v52, %v4871_v12  ;;  %v5935_v23 = vld [vmem:[#allocation3 + $0xc8] sm:$0xff]   ;;  %v1434_v12 = vadd.f32 %v7273_v26, %v7146_v20 }
 0x171   : > { %v4810_v15 = vpop.f32.mrf.mxu1  ;;  %v4874_v45 = vpop.f32.mrf.mxu0 }
 0x172   : > { %v7363_v35 = vadd.f32 %v4809_v54, %v1426_v41  ;;  %v7366_v44 = vadd.f32 %v4873_v8, %v7181_v47  ;;  %5240 = vmatpush3.bf16.msra.mxu1 %v5930_v46  ;;  %v5934_v47 = vld [vmem:[#allocation3 + $0x90] sm:$0xff]   ;;  %v4706_v46 = vadd.f32 %v7279_v42, %v7275_v30  ;;  %v5936_v41 = vld [vmem:[#allocation3 + $0x88] sm:$0xff]   ;;  %v5939_v42 = vld [vmem:[#allocation3 + $0x138] sm:$0xff]  }
 0x173   : > { %v4811_v5 = vpop.f32.mrf.mxu1  ;;  %v4875_v28 = vpop.f32.mrf.mxu0  ;;  %5241 = vmatprep.subr.bf16.mxu1 %v5931_v25  ;;  %5346 = vmatpush3.bf16.msra.mxu0 %v5939_v42 }
 0x174   : > { %v4812_v43 = vadd.f32 %v4811_v5, %v4810_v15  ;;  %v4876_v48 = vadd.f32 %v4875_v28, %v4874_v45  ;;  %v5938_v15 = vld [vmem:[#allocation3 + $0xc0] sm:$0xff]   ;;  %v1437_v26 = vadd.f32 %v4706_v46, %v7146_v20 }
 0x175   : > { %v4813_v58 = vpop.f32.mrf.mxu1  ;;  %v4877_v37 = vpop.f32.mrf.mxu0  ;;  %5666 = vmatmul.mubr.bf16.gmra.mxu1 %v8842_v38 }
 0x176   : > { %v7370_v13 = vadd.f32 %v4812_v43, %v1429_v33  ;;  %v7373_v59 = vadd.f32 %v4876_v48, %v7192_v27  ;;  %5669 = vmatprep.mubr.bf16.mxu1 %v6791_v21  ;;  %5242 = vmatpush3.bf16.msra.mxu1 %v5932_v49  ;;  %v1442_v48 = vadd.f32 %v7324_v2, %v7146_v20 }
 0x177   : > { %v4814_v32 = vpop.f32.mrf.mxu1  ;;  %v4878_v6 = vpop.f32.mrf.mxu0  ;;  %5243 = vmatprep.subr.bf16.mxu1 %v5933_v7  ;;  %v5940_v7 = vld [vmem:[#allocation3 + $0x80] sm:$0xff]  }
 0x178   : > { %v4815_v38 = vadd.f32 %v4814_v32, %v4813_v58  ;;  %v4879_v0 = vadd.f32 %v4878_v6, %v4877_v37  ;;  %v4712_v58 = vadd.f32 %v7330_v63, %v7326_v36 }
 0x179   : > { %v4816_v52 = vpop.f32.mrf.mxu1  ;;  %v4880_v25 = vpop.f32.mrf.mxu0 }
 0x17a   : > { %v7380_v27 = vadd.f32 %v4815_v38, %v1434_v12  ;;  %v7383_v21 = vadd.f32 %v4879_v0, %v7200_v39  ;;  %5244 = vmatpush3.bf16.msra.mxu1 %v5934_v47  ;;  %v1445_v12 = vadd.f32 %v4712_v58, %v7146_v20 }
 0x17b   : > { %v4817_v54 = vpop.f32.mrf.mxu1  ;;  %v4881_v8 = vpop.f32.mrf.mxu0  ;;  %5245 = vmatprep.subr.bf16.mxu1 %v5935_v23 }
 0x17c   : > { %v4818_v45 = vadd.f32 %v4817_v54, %v4816_v52  ;;  %v4882_v30 = vadd.f32 %v4881_v8, %v4880_v25  ;;  %v1450_v25 = vadd.f32 %v7087_v62, %v7146_v20 }
 0x17d   : > { %v4819_v49 = vpop.f32.mrf.mxu1  ;;  %v4883_v5 = vpop.f32.mrf.mxu0  ;;  %5670 = vmatmul.mubr.bf16.gmra.mxu1 %v6872_v17 }
 0x17e   : > { %v7387_v28 = vadd.f32 %v4818_v45, %v1437_v26  ;;  %v7390_v39 = vadd.f32 %v4882_v30, %v7208_v34  ;;  %5673 = vmatprep.mubr.bf16.mxu1 %v6908_v24  ;;  %5246 = vmatpush3.bf16.msra.mxu1 %v5936_v41  ;;  %v5941_v26 = vld [vmem:[#allocation3 + $0x170] sm:$0xff]  }
 0x17f   : > { %v4820_v33 = vpop.f32.mrf.mxu1  ;;  %v4884_v43 = vpop.f32.mrf.mxu0  ;;  %5247 = vmatprep.subr.bf16.mxu1 %v5938_v15  ;;  %5347 = vmatprep.subr.bf16.mxu0 %v5941_v26 }
 0x180   : > { %v4821_v17 = vadd.f32 %v4820_v33, %v4819_v49  ;;  %v4885_v37 = vadd.f32 %v4884_v43, %v4883_v5  ;;  %v5942_v49 = vld [vmem:[#allocation3 + $0x130] sm:$0xff]  }
 0x181   : > { %v4822_v47 = vpop.f32.mrf.mxu1  ;;  %v4886_v32 = vpop.f32.mrf.mxu0  ;;  %5348 = vmatpush3.bf16.msra.mxu0 %v5942_v49 }
 0x182   : > { %v7397_v34 = vadd.f32 %v4821_v17, %v1442_v48  ;;  %v7400_v24 = vadd.f32 %v4885_v37, %v7216_v9  ;;  %5248 = vmatpush3.bf16.msra.mxu1 %v5940_v7 }
 0x183   : > { %v4823_v6 = vpop.f32.mrf.mxu1  ;;  %v4887_v23 = vpop.f32.mrf.mxu0 }
 0x184   : > { %v4824_v46 = vadd.f32 %v4823_v6, %v4822_v47  ;;  %v4888_v38 = vadd.f32 %v4887_v23, %v4886_v32  ;;  %v8858_v23 = vld [vmem:[#allocation10_spill] sm:$0xff] }
 0x185   : > { %v4825_v2 = vpop.f32.mrf.mxu1  ;;  %v4889_v0 = vpop.f32.mrf.mxu0  ;;  %5674 = vmatmul.mubr.bf16.gmra.mxu1 %v6936_v1 }
 0x186   : > { %v7404_v36 = vadd.f32 %v4824_v46, %v1445_v12  ;;  %v7407_v63 = vadd.f32 %v4888_v38, %v7228_v31  ;;  %5677 = vmatprep.mubr.bf16.mxu1 %v6953_v61  ;;  %v1453_v61 = vadd.f32 %v7091_v56, %v7146_v20  ;;  %v8857_v56 = vld [vmem:[#allocation16_spill] sm:$0xff] }
 0x187   : > { %v4826_v9 = vpop.f32.mrf.mxu1  ;;  %v4890_v52 = vpop.f32.mrf.mxu0  ;;  %v1458_v48 = vadd.f32 %v8857_v56, %v7146_v20 }
 0x188   : > { %v4827_v41 = vadd.f32 %v4826_v9, %v4825_v2  ;;  %v4891_v51 = vadd.f32 %v4890_v52, %v4889_v0 }
 0x189   : > { %v4828_v54 = vpop.f32.mrf.mxu1  ;;  %v4892_v8 = vpop.f32.mrf.mxu0 }
 0x18a   : > { %v7412_v15 = vadd.f32 %v4827_v41, %v1450_v25  ;;  %v7415_v1 = vadd.f32 %v4891_v51, %v7238_v4  ;;  %v8859_v25 = vld [vmem:[#allocation17_spill] sm:$0xff] }
 0x18b   : > { %v4829_v45 = vpop.f32.mrf.mxu1  ;;  %v4893_v31 = vpop.f32.mrf.mxu0  ;;  %v1466_v41 = vadd.f32 %v8859_v25, %v7146_v20 }
 0x18c   : > { %v4830_v30 = vadd.f32 %v4829_v45, %v4828_v54  ;;  %v4894_v42 = vadd.f32 %v4893_v31, %v4892_v8  ;;  %v5943_v31 = vld [vmem:[#allocation3 + $0x168] sm:$0xff]  }
 0x18d   : > { %v4831_v62 = vpop.f32.mrf.mxu1  ;;  %v4895_v5 = vpop.f32.mrf.mxu0  ;;  %5678 = vmatmul.mubr.bf16.gmra.mxu1 %v8845_v40  ;;  %5349 = vmatprep.subr.bf16.mxu0 %v5943_v31 }
 0x18e   : > { %v7420_v7 = vadd.f32 %v4830_v30, %v1453_v61  ;;  %v7423_v33 = vadd.f32 %v4894_v42, %v7246_v3  ;;  %5681 = vmatprep.mubr.bf16.mxu1 %v8846_v16  ;;  %v1461_v16 = vadd.f32 %v8858_v23, %v7146_v20  ;;  %v8860_v30 = vld [vmem:[#allocation11_spill] sm:$0xff] }
 0x18f   : > { %v4832_v4 = vpop.f32.mrf.mxu1  ;;  %v4896_v43 = vpop.f32.mrf.mxu0 }
 0x190   : > { %v4833_v58 = vadd.f32 %v4832_v4, %v4831_v62  ;;  %v4897_v17 = vadd.f32 %v4896_v43, %v4895_v5  ;;  %v5944_v62 = vld [vmem:[#allocation3 + $0x128] sm:$0xff]  }
 0x191   : > { %v4834_v37 = vpop.f32.mrf.mxu1  ;;  %v4898_v47 = vpop.f32.mrf.mxu0  ;;  %v8861_v43 = vld [vmem:[#allocation18_spill] sm:$0xff]  ;;  %5350 = vmatpush3.bf16.msra.mxu0 %v5944_v62 }
 0x192   : > { %v7428_v32 = vadd.f32 %v4833_v58, %v1458_v48  ;;  %v7431_v40 = vadd.f32 %v4897_v17, %v7258_v14  ;;  %v8862_v17 = vld [vmem:[#allocation13_spill] sm:$0xff] }
 0x193   : > { %v4835_v6 = vpop.f32.mrf.mxu1  ;;  %v4899_v3 = vpop.f32.mrf.mxu0 }
 0x194   : > { %v4836_v12 = vadd.f32 %v4835_v6, %v4834_v37  ;;  %v4900_v46 = vadd.f32 %v4899_v3, %v4898_v47  ;;  %v1474_v37 = vadd.f32 %v8862_v17, %v7146_v20 }
 0x195   : > { %v4837_v38 = vpop.f32.mrf.mxu1  ;;  %v4901_v2 = vpop.f32.mrf.mxu0  ;;  %5682 = vmatmul.mubr.bf16.gmra.mxu1 %v8847_v11 }
 0x196   : > { %v7436_v0 = vadd.f32 %v4836_v12, %v1461_v16  ;;  %v7439_v9 = vadd.f32 %v4900_v46, %v7266_v50  ;;  %5685 = vmatprep.mubr.bf16.mxu1 %v8850_v18  ;;  %v1469_v18 = vadd.f32 %v8860_v30, %v7146_v20 }
 0x197   : > { %v4838_v14 = vpop.f32.mrf.mxu1  ;;  %v4902_v52 = vpop.f32.mrf.mxu0 }
 0x198   : > { %v4839_v51 = vadd.f32 %v4838_v14, %v4837_v38  ;;  %v4903_v54 = vadd.f32 %v4902_v52, %v4901_v2 }
 0x199   : > { %v4840_v8 = vpop.f32.mrf.mxu1  ;;  %v4904_v26 = vpop.f32.mrf.mxu0 }
 0x19a   : > { %v7444_v45 = vadd.f32 %v4839_v51, %v1466_v41  ;;  %v7447_v11 = vadd.f32 %v4903_v54, %v7277_v53 }
 0x19b   : > { %v4841_v61 = vpop.f32.mrf.mxu1  ;;  %v4905_v50 = vpop.f32.mrf.mxu0 }
 0x19c   : > { %v4842_v42 = vadd.f32 %v4841_v61, %v4840_v8  ;;  %v4906_v49 = vadd.f32 %v4905_v50, %v4904_v26 }
 0x19d   : > { %v4843_v5 = vpop.f32.mrf.mxu1  ;;  %v4907_v4 = vpop.f32.mrf.mxu0  ;;  %5686 = vmatmul.mubr.bf16.gmra.mxu1 %v8861_v43 }
 0x19e   : > { %v7452_v56 = vadd.f32 %v4842_v42, %v1469_v18  ;;  %v7455_v48 = vadd.f32 %v4906_v49, %v7319_v57  ;;  %v8863_v57 = vld [vmem:[#allocation9_spill] sm:$0xff] }
 0x19f   : > { %v4844_v53 = vpop.f32.mrf.mxu1  ;;  %v4908_v58 = vpop.f32.mrf.mxu0  ;;  %v1477_v2 = vadd.f32 %v8863_v57, %v7146_v20  ;;  %v5945_v42 = vld [vmem:[#allocation3 + $0x160] sm:$0xff]  }
 0x1a0   : > { %v4845_v47 = vadd.f32 %v4844_v53, %v4843_v5  ;;  %v4909_v6 = vadd.f32 %v4908_v58, %v4907_v4  ;;  %v5946_v49 = vld [vmem:[#allocation3 + $0x120] sm:$0xff]   ;;  %5351 = vmatprep.subr.bf16.mxu0 %v5945_v42 }
 0x1a1   : > { %v4846_v3 = vpop.f32.mrf.mxu1  ;;  %v4910_v23 = vpop.f32.mrf.mxu0  ;;  %5352 = vmatpush3.bf16.msra.mxu0 %v5946_v49 }
 0x1a2   : > { %v7459_v16 = vadd.f32 %v4845_v47, %v1474_v37  ;;  %v7462_v12 = vadd.f32 %v4909_v6, %v7328_v10 }
 0x1a3   : > { %v4847_v46 = vpop.f32.mrf.mxu1  ;;  %v4911_v38 = vpop.f32.mrf.mxu0 }
 0x1a4   : > { %v4848_v14 = vadd.f32 %v4847_v46, %v4846_v3  ;;  %v4912_v52 = vadd.f32 %v4911_v38, %v4910_v23 }
 0x1a5   : > { %v4913_v25 = vpop.f32.mrf.mxu0  ;;  %v7466_v41 = vpop.f32.mrf.mxu1 }
 0x1a6   : > { %v7468_v51 = vadd.f32 %v4848_v14, %v1477_v2  ;;  %v7471_v54 = vadd.f32 %v4912_v52, %v7339_v60  ;;  %v5949_v2 = vld [vmem:[#allocation3 + $0x158] sm:$0xff]  }
 0x1a7   : > { %v4914_v8 = vpop.f32.mrf.mxu0  ;;  %v7473_v26 = vpop.f32.mrf.mxu1  ;;  %v5950_v52 = vld [vmem:[#allocation3 + $0x118] sm:$0xff]   ;;  %5353 = vmatprep.subr.bf16.mxu0 %v5949_v2 }
 0x1a8   : > { %v4915_v10 = vadd.f32 %v4914_v8, %v4913_v25  ;;  %5354 = vmatpush3.bf16.msra.mxu0 %v5950_v52  ;;  %v5953_v52 = vld [vmem:[#allocation3 + $0x150] sm:$0xff]  }
 0x1a9   : > { %v4916_v31 = vpop.f32.mrf.mxu0  ;;  %v7475_v61 = vpop.f32.mrf.mxu1  ;;  %5355 = vmatprep.subr.bf16.mxu0 %v5953_v52 }
 0x1aa   : > { %v7478_v50 = vadd.f32 %v4915_v10, %v7345_v22  ;;  %v5947_v22 = vld [vmem:[#allocation3 + $0x1f8] sm:$0xff]  }
 0x1ab   : > { %v4917_v20 = vpop.f32.mrf.mxu0  ;;  %v7480_v30 = vpop.f32.mrf.mxu1  ;;  %5457 = vmatprep.subr.bf16.mxu1 %v5947_v22 }
 0x1ac   : > { %v4918_v18 = vadd.f32 %v4917_v20, %v4916_v31 }
 0x1ad   : > { %v4919_v62 = vpop.f32.mrf.mxu0  ;;  %v7482_v5 = vpop.f32.mrf.mxu1 }
 0x1ae   : > { %v7485_v60 = vadd.f32 %v4918_v18, %v7353_v29 }
 0x1af   : > { %v4920_v4 = vpop.f32.mrf.mxu0  ;;  %v7487_v43 = vpop.f32.mrf.mxu1 }
 0x1b0   : > { %8864 = vst [vmem:[#allocation14_spill] sm:$0xff] %v7485_v60  ;;  %v4921_v53 = vadd.f32 %v4920_v4, %v4919_v62 }
 0x1b1   : > { %v4922_v58 = vpop.f32.mrf.mxu0  ;;  %v7489_v17 = vpop.f32.mrf.mxu1 }
 0x1b2   : > { %v7492_v37 = vadd.f32 %v4921_v53, %v7363_v35 }
 0x1b3   : > { %v4923_v47 = vpop.f32.mrf.mxu0  ;;  %v7494_v6 = vpop.f32.mrf.mxu1 }
 0x1b4   : > { %v4924_v3 = vadd.f32 %v4923_v47, %v4922_v58 }
 0x1b5   : > { %v4925_v29 = vpop.f32.mrf.mxu0  ;;  %v7496_v23 = vpop.f32.mrf.mxu1 }
 0x1b6   : > { %v7499_v46 = vadd.f32 %v4924_v3, %v7370_v13 }
 0x1b7   : > { %v4926_v38 = vpop.f32.mrf.mxu0  ;;  %v7501_v57 = vpop.f32.mrf.mxu1 }
 0x1b8   : > { %v4927_v14 = vadd.f32 %v4926_v38, %v4925_v29 }
 0x1b9   : > { %v4928_v25 = vpop.f32.mrf.mxu0  ;;  %v7503_v35 = vpop.f32.mrf.mxu1 }
 0x1ba   : > { %v7506_v8 = vadd.f32 %v4927_v14, %v7380_v27 }
 0x1bb   : > { %v4929_v10 = vpop.f32.mrf.mxu0  ;;  %v7508_v31 = vpop.f32.mrf.mxu1 }
 0x1bc   : > { %8865 = vst [vmem:[#allocation15_spill] sm:$0xff] %v7506_v8  ;;  %v4930_v20 = vadd.f32 %v4929_v10, %v4928_v25  ;;  %v5954_v10 = vld [vmem:[#allocation3 + $0x110] sm:$0xff]   ;;  %v5958_v8 = vld [vmem:[#allocation3 + $0x108] sm:$0xff]  }
 0x1bd   : > { %v4931_v13 = vpop.f32.mrf.mxu0  ;;  %v7510_v18 = vpop.f32.mrf.mxu1  ;;  %5356 = vmatpush3.bf16.msra.mxu0 %v5954_v10 }
 0x1be   : > { %v7513_v42 = vadd.f32 %v4930_v20, %v7387_v28 }
 0x1bf   : > { %v4932_v49 = vpop.f32.mrf.mxu0  ;;  %v7515_v62 = vpop.f32.mrf.mxu1 }
 0x1c0   : > { %8866 = vst [vmem:[#allocation16_spill] sm:$0xff] %v7513_v42  ;;  %v4933_v4 = vadd.f32 %v4932_v49, %v4931_v13 }
 0x1c1   : > { %v4934_v53 = vpop.f32.mrf.mxu0  ;;  %v7517_v22 = vpop.f32.mrf.mxu1 }
 0x1c2   : > { %v7520_v27 = vadd.f32 %v4933_v4, %v7397_v34 }
 0x1c3   : > { %v4935_v58 = vpop.f32.mrf.mxu0  ;;  %v7522_v47 = vpop.f32.mrf.mxu1 }
 0x1c4   : > { %8867 = vst [vmem:[#allocation10_spill] sm:$0xff] %v7520_v27  ;;  %v4936_v3 = vadd.f32 %v4935_v58, %v4934_v53 }
 0x1c5   : > { %v4937_v29 = vpop.f32.mrf.mxu0  ;;  %v7524_v38 = vpop.f32.mrf.mxu1 }
 0x1c6   : > { %v7527_v28 = vadd.f32 %v4936_v3, %v7404_v36 }
 0x1c7   : > { %v4938_v2 = vpop.f32.mrf.mxu0  ;;  %v7529_v14 = vpop.f32.mrf.mxu1 }
 0x1c8   : > { %8868 = vst [vmem:[#allocation17_spill] sm:$0xff] %v7527_v28  ;;  %v4939_v25 = vadd.f32 %v4938_v2, %v4937_v29 }
 0x1c9   : > { %v4940_v20 = vpop.f32.mrf.mxu0  ;;  %v7531_v13 = vpop.f32.mrf.mxu1 }
 0x1ca   : > { %v7534_v34 = vadd.f32 %v4939_v25, %v7412_v15 }
 0x1cb   : > { %v4941_v49 = vpop.f32.mrf.mxu0  ;;  %v7536_v4 = vpop.f32.mrf.mxu1 }
 0x1cc   : > { %8869 = vst [vmem:[#allocation11_spill] sm:$0xff] %v7534_v34  ;;  %v4942_v53 = vadd.f32 %v4941_v49, %v4940_v20 }
 0x1cd   : > { %v4943_v36 = vpop.f32.mrf.mxu0  ;;  %v7538_v58 = vpop.f32.mrf.mxu1 }
 0x1ce   : > { %v7541_v3 = vadd.f32 %v4942_v53, %v7420_v7 }
 0x1cf   : > { %v4944_v29 = vpop.f32.mrf.mxu0  ;;  %v7543_v2 = vpop.f32.mrf.mxu1 }
 0x1d0   : > { %8870 = vst [vmem:[#allocation18_spill] sm:$0xff] %v7541_v3  ;;  %v4945_v42 = vadd.f32 %v4944_v29, %v4943_v36  ;;  %v5957_v36 = vld [vmem:[#allocation3 + $0x148] sm:$0xff]  }
 0x1d1   : > { %v4946_v28 = vpop.f32.mrf.mxu0  ;;  %v7545_v52 = vpop.f32.mrf.mxu1  ;;  %5357 = vmatprep.subr.bf16.mxu0 %v5957_v36  ;;  %v4985_v36 = vadd.f32 %v7487_v43, %v7482_v5 }
 0x1d2   : > { %v7548_v15 = vadd.f32 %v4945_v42, %v7428_v32  ;;  %5358 = vmatpush3.bf16.msra.mxu0 %v5958_v8  ;;  %v4979_v8 = vadd.f32 %v7473_v26, %v7466_v41 }
 0x1d3   : > { %v4947_v25 = vpop.f32.mrf.mxu0  ;;  %v7550_v10 = vpop.f32.mrf.mxu1 }
 0x1d4   : > { %8871 = vst [vmem:[#allocation13_spill] sm:$0xff] %v7548_v15  ;;  %v4948_v20 = vadd.f32 %v4947_v25, %v4946_v28  ;;  %v1837_v26 = vadd.f32 %v4979_v8, %v7348_v55 }
 0x1d5   : > { %v4949_v49 = vpop.f32.mrf.mxu0  ;;  %v7552_v34 = vpop.f32.mrf.mxu1 }
 0x1d6   : > { %v7555_v7 = vadd.f32 %v4948_v20, %v7436_v0 }
 0x1d7   : > { %v4950_v53 = vpop.f32.mrf.mxu0  ;;  %v7557_v3 = vpop.f32.mrf.mxu1 }
 0x1d8   : > { %8872 = vst [vmem:[#allocation9_spill] sm:$0xff] %v7555_v7  ;;  %v4951_v29 = vadd.f32 %v4950_v53, %v4949_v49 }
 0x1d9   : > { %v4952_v27 = vpop.f32.mrf.mxu0  ;;  %v7559_v60 = vpop.f32.mrf.mxu1 }
 0x1da   : > { %v7562_v32 = vadd.f32 %v4951_v29, %v7444_v45 }
 0x1db   : > { %v4953_v42 = vpop.f32.mrf.mxu0  ;;  %v7564_v28 = vpop.f32.mrf.mxu1 }
 0x1dc   : > { %8873 = vst [vmem:[#allocation19_spill] sm:$0xff] %v7562_v32  ;;  %v4954_v25 = vadd.f32 %v4953_v42, %v4952_v27 }
 0x1dd   : > { %v4955_v0 = vpop.f32.mrf.mxu0  ;;  %v7566_v20 = vpop.f32.mrf.mxu1 }
 0x1de   : > { %v7569_v7 = vadd.f32 %v4954_v25, %v7452_v56  ;;  %v4988_v56 = vadd.f32 %v7494_v6, %v7489_v17  ;;  %v4997_v17 = vadd.f32 %v7515_v62, %v7510_v18 }
 0x1df   : > { %v4956_v49 = vpop.f32.mrf.mxu0  ;;  %v7571_v53 = vpop.f32.mrf.mxu1 }
 0x1e0   : > { %8874 = vst [vmem:[#allocation20_spill] sm:$0xff] %v7569_v7  ;;  %v4957_v15 = vadd.f32 %v4956_v49, %v4955_v0  ;;  %v1845_v7 = vadd.f32 %v4985_v36, %v7366_v44  ;;  %v4982_v0 = vadd.f32 %v7480_v30, %v7475_v61  ;;  %v1848_v36 = vadd.f32 %v4988_v56, %v7373_v59 }
 0x1e1   : > { %v4958_v45 = vpop.f32.mrf.mxu0  ;;  %v7575_v29 = vpop.f32.mrf.mxu1  ;;  %v5000_v59 = vadd.f32 %v7522_v47, %v7517_v22 }
 0x1e2   : > { %v7580_v27 = vadd.f32 %v4957_v15, %v7459_v16 }
 0x1e3   : > { %v4959_v42 = vpop.f32.mrf.mxu0  ;;  %v7582_v32 = vpop.f32.mrf.mxu1 }
 0x1e4   : > { %8875 = vst [vmem:[#allocation21_spill] sm:$0xff] %v7580_v27  ;;  %v4960_v25 = vadd.f32 %v4959_v42, %v4958_v45  ;;  %v5961_v27 = vld [vmem:[#allocation3 + $0x140] sm:$0xff]  }
 0x1e5   : > { %v7587_v5 = vpop.f32.mrf.mxu1  ;;  %v5611_v43 = vpop.f32.mrf.mxu0  ;;  %v5962_v45 = vld [vmem:[#allocation3 + $0x100] sm:$0xff]   ;;  %5359 = vmatprep.subr.bf16.mxu0 %v5961_v27  ;;  %v1861_v27 = vadd.f32 %v4997_v17, %v7400_v24  ;;  %v5009_v24 = vadd.f32 %v7543_v2, %v7538_v58  ;;  %v5012_v58 = vadd.f32 %v7550_v10, %v7545_v52 }
 0x1e6   : > { %v7592_v41 = vadd.f32 %v4960_v25, %v7468_v51  ;;  %v2006_v16 = vadd.f32 %v5611_v43, %v1845_v7  ;;  %v4991_v51 = vadd.f32 %v7501_v57, %v7496_v23  ;;  %v1840_v7 = vadd.f32 %v4982_v0, %v7356_v19  ;;  %5360 = vmatpush3.bf16.msra.mxu0 %v5962_v45  ;;  %v8877_v23 = vld [vmem:[#allocation12_spill] sm:$0xff] }
 0x1e7   : > { %v7595_v15 = vpop.f32.mrf.mxu1  ;;  %v1997_v49 = vpop.f32.mrf.mxu0  ;;  %v8876_v25 = vmov 0.0   ;;  %v2445_v57 = vrot.slane %v8877_v23, 2  ;;  %v4994_v0 = vadd.f32 %v7508_v31, %v7503_v35  ;;  %v5003_v45 = vadd.f32 %v7529_v14, %v7524_v38 }
 0x1e8   : > { %v2126_v44 = vmax.f32 %v2006_v16, 0.0  ;;  %v1998_v6 = vadd.f32 %v1997_v49, %v1837_v26  ;;  %v7611_v43 = vrot.slane %v8876_v25, 2  ;;  %v1853_v22 = vadd.f32 %v4991_v51, %v7383_v21 }
 0x1e9   : > { %v7600_v42 = vpop.f32.mrf.mxu1  ;;  %v5612_v61 = vpop.f32.mrf.mxu0  ;;  %v5006_v35 = vadd.f32 %v7536_v4, %v7531_v13  ;;  %v1877_v4 = vadd.f32 %v5009_v24, %v7431_v40  ;;  %v1869_v52 = vadd.f32 %v5003_v45, %v7415_v1  ;;  %v1880_v25 = vadd.f32 %v5012_v58, %v7439_v9 }
 0x1ea   : > { %2198 = vst [vmem:[#allocation2 + $0x31] sm:$0xff] %v2126_v44  ;;  %v2124_v55 = vmax.f32 %v1998_v6, 0.0  ;;  %v2009_v30 = vadd.f32 %v5612_v61, %v1848_v36  ;;  %v1864_v36 = vadd.f32 %v5000_v59, %v7407_v63  ;;  %v7630_v21 = vsel %vm535_vm1, %v7611_v43, %v2445_v57 }
 0x1eb   : > { %v7605_v8 = vpop.f32.mrf.mxu1  ;;  %v2000_v18 = vpop.f32.mrf.mxu0  ;;  %v1856_v63 = vadd.f32 %v4994_v0, %v7390_v39  ;;  %v1872_v39 = vadd.f32 %v5006_v35, %v7423_v33  ;;  %v5021_v1 = vadd.f32 %v7571_v53, %v7566_v20  ;;  %v5024_v33 = vadd.f32 %v7582_v32, %v7575_v29 }
 0x1ec   : > { %2196 = vst [vmem:[#allocation2 + $0x19] sm:$0xff] %v2124_v55  ;;  %v2127_v62 = vmax.f32 %v2009_v30, 0.0  ;;  %v2001_v56 = vadd.f32 %v2000_v18, %v1840_v7  ;;  %v2590_v30 = vpack.c.bf16 %v7630_v21, %v7611_v43 }
 0x1ed   : > { %v7614_v16 = vpop.f32.mrf.mxu1  ;;  %v5615_v19 = vpop.f32.mrf.mxu0 }
 0x1ee   : > { %2199 = vst [vmem:[#allocation2 + $0x39] sm:$0xff] %v2127_v62  ;;  %v2125_v26 = vmax.f32 %v2001_v56, 0.0  ;;  %v2022_v49 = vadd.f32 %v5615_v19, %v1861_v27  ;;  %v5015_v56 = vadd.f32 %v7557_v3, %v7552_v34 }
 0x1ef   : > { %v7619_v47 = vpop.f32.mrf.mxu1  ;;  %v2013_v44 = vpop.f32.mrf.mxu0 }
 0x1f0   : > { %2197 = vst [vmem:[#allocation2 + $0x21] sm:$0xff] %v2125_v26  ;;  %v2130_v17 = vmax.f32 %v2022_v49, 0.0  ;;  %v2014_v6 = vadd.f32 %v2013_v44, %v1853_v22  ;;  %v5969_v26 = vld [vmem:[#allocation3 + $0x238] sm:$0xff]  }
 0x1f1   : > { %v7632_v31 = vpop.f32.mrf.mxu1  ;;  %v5616_v61 = vpop.f32.mrf.mxu0  ;;  %v7655_v43 = vld [vmem:[#allocation2 + $0x30] sm:$0xff]  ;;  %5689 = vmatprep.subr.bf16.mxu0 %v5969_v26 }
 0x1f2   : > { %2202 = vst [vmem:[#allocation2 + $0x61] sm:$0xff] %v2130_v17  ;;  %v2128_v2 = vmax.f32 %v2014_v6, 0.0  ;;  %v2025_v51 = vadd.f32 %v5616_v61, %v1864_v36  ;;  %v2340_v29 = vrot.slane %v7655_v43, 1  ;;  %v5948_v6 = vld [vmem:[#allocation3 + $0x1b8] sm:$0xff]   ;;  %v5951_v61 = vld [vmem:[#allocation3 + $0x1f0] sm:$0xff]  }
 0x1f3   : > { %v7637_v55 = vpop.f32.mrf.mxu1  ;;  %v2016_v38 = vpop.f32.mrf.mxu0  ;;  %v7645_v10 = vld [vmem:[#allocation2 + $0x18] sm:$0xff] }
 0x1f4   : > { %2200 = vst [vmem:[#allocation2 + $0x49] sm:$0xff] %v2128_v2  ;;  %v2131_v14 = vmax.f32 %v2025_v51, 0.0  ;;  %v2017_v13 = vadd.f32 %v2016_v38, %v1856_v63  ;;  %v2335_v22 = vrot.slane %v7645_v10, 1 }
 0x1f5   : > { %v7642_v7 = vpop.f32.mrf.mxu1  ;;  %v5619_v18 = vpop.f32.mrf.mxu0  ;;  %v7648_v59 = vld [vmem:[#allocation2 + $0x38] sm:$0xff]  ;;  %v7650_v62 = vld [vmem:[#allocation2 + $0x40] sm:$0x3] }
 0x1f6   : > { %2203 = vst [vmem:[#allocation2 + $0x69] sm:$0xff] %v2131_v14  ;;  %v2129_v40 = vmax.f32 %v2017_v13, 0.0  ;;  %v2038_v27 = vadd.f32 %v5619_v18, %v1877_v4  ;;  %v2341_v0 = vrot.slane %v7648_v59, 1  ;;  %v2343_v3 = vrot.slane %v7650_v62, 1 }
 0x1f7   : > { %v7661_v23 = vpop.f32.mrf.mxu1  ;;  %v2029_v57 = vpop.f32.mrf.mxu0  ;;  %v2232_v19 = vld [vmem:[#allocation2 + $0x20] sm:$0xff]  ;;  %v2233_v34 = vld [vmem:[#allocation2 + $0x28] sm:$0x3]  ;;  %v7672_v24 = vpack.c.bf16 %v7648_v59, %v7655_v43  ;;  %v1893_v18 = vadd.f32 %v5021_v1, %v7462_v12  ;;  %v1885_v12 = vadd.f32 %v5015_v56, %v7447_v11  ;;  %v5033_v11 = vadd.f32 %v7619_v47, %v7614_v16  ;;  %v5956_v16 = vld [vmem:[#allocation3 + $0x1a8] sm:$0xff]  }
 0x1f8   : > { %2201 = vst [vmem:[#allocation2 + $0x51] sm:$0xff] %v2129_v40  ;;  %v2134_v9 = vmax.f32 %v2038_v27, 0.0  ;;  %v2030_v49 = vadd.f32 %v2029_v57, %v1869_v52  ;;  %v2336_v44 = vrot.slane %v2232_v19, 1  ;;  %v2591_v32 = vpack.c.bf16 %v2232_v19, %v7645_v10 }
 0x1f9   : > { %v7666_v20 = vpop.f32.mrf.mxu1  ;;  %v5620_v53 = vpop.f32.mrf.mxu0  ;;  %v2338_v17 = vrot.slane %v2233_v34, 1  ;;  %v2448_v35 = vrot.slane %v2232_v19, 2  ;;  %v2450_v63 = vrot.slane %v2233_v34, 2  ;;  %v2342_v38 = vsel %vm422_vm0, %v2340_v29, %v2341_v0  ;;  %v5952_v19 = vld [vmem:[#allocation3 + $0x1b0] sm:$0xff]  }
 0x1fa   : > { %2206 = vst [vmem:[#allocation2 + $0x91] sm:$0xff] %v2134_v9  ;;  %v2132_v36 = vmax.f32 %v2030_v49, 0.0  ;;  %v2041_v45 = vadd.f32 %v5620_v53, %v1880_v25  ;;  %v2337_v21 = vsel %vm422_vm0, %v2335_v22, %v2336_v44  ;;  %3636 = vmatprep.mubr.bf16.mxu1 %v2591_v32  ;;  %v2344_v14 = vsel %vm422_vm0, %v2341_v0, %v2343_v3 }
 0x1fb   : > { %v7675_v58 = vpop.f32.mrf.mxu1  ;;  %v2032_v2 = vpop.f32.mrf.mxu0  ;;  %v2339_v51 = vsel %vm422_vm0, %v2336_v44, %v2338_v17  ;;  %3637 = vmatmul.mubr.bf16.vlgmr.msra.gmra.mxu1 %v2590_v30  ;;  %v5018_v40 = vadd.f32 %v7564_v28, %v7559_v60  ;;  %v2447_v27 = vrot.slane %v7645_v10, 2  ;;  %v7691_v30 = vpack.c.bf16 %v2344_v14, %v2342_v38  ;;  %v7693_v1 = vld [vmem:[#allocation2 + $0x48] sm:$0xff]  ;;  %v5955_v60 = vld [vmem:[#allocation3 + $0x1e8] sm:$0xff]  }
 0x1fc   : > { %2204 = vst [vmem:[#allocation2 + $0x79] sm:$0xff] %v2132_v36  ;;  %v2135_v13 = vmax.f32 %v2041_v45, 0.0  ;;  %v2033_v4 = vadd.f32 %v2032_v2, %v1872_v39  ;;  %v7681_v52 = vpack.c.bf16 %v2339_v51, %v2337_v21  ;;  %3644 = vmatprep.mubr.bf16.mxu1 %v7672_v24  ;;  %5458 = vmatpush3.bf16.msra.mxu1 %v5948_v6  ;;  %v2345_v29 = vrot.slane %v7693_v1, 1 }
 0x1fd   : > { %v7687_v25 = vpop.f32.mrf.mxu1  ;;  %v5623_v57 = vpop.f32.mrf.mxu0  ;;  %5459 = vmatprep.subr.bf16.mxu1 %v5951_v61  ;;  %v1896_v34 = vadd.f32 %v5024_v33, %v7471_v54  ;;  %v2449_v3 = vsel %vm535_vm1, %v2447_v27, %v2448_v35  ;;  %v2451_v26 = vsel %vm535_vm1, %v2448_v35, %v2450_v63  ;;  %v5027_v54 = vadd.f32 %v7595_v15, %v7587_v5  ;;  %v5959_v5 = vld [vmem:[#allocation3 + $0x1e0] sm:$0xff]   ;;  %v7729_v38 = vld [vmem:[#allocation2 + $0x68] sm:$0xff] }
 0x1fe   : > { %2207 = vst [vmem:[#allocation2 + $0x99] sm:$0xff] %v2135_v13  ;;  %v2133_v0 = vmax.f32 %v2033_v4, 0.0  ;;  %v2054_v39 = vadd.f32 %v5623_v57, %v1893_v18  ;;  %3483 = vmatprep.mubr.bf16.mxu0 %v7681_v52  ;;  %v2453_v47 = vrot.slane %v7648_v59, 2  ;;  %v7716_v45 = vpack.c.bf16 %v2451_v26, %v2449_v3  ;;  %v7731_v14 = vld [vmem:[#allocation2 + $0x70] sm:$0x3] }
 0x1ff   : > { %3484 = vmatmul.mubr.bf16.gmra.mxu0 %v2591_v32  ;;  %v7695_v28 = vpop.f32.mrf.mxu1  ;;  %v2045_v10 = vpop.f32.mrf.mxu0  ;;  %v7700_v9 = vld [vmem:[#allocation2 + $0x50] sm:$0xff]  ;;  %v7702_v49 = vld [vmem:[#allocation2 + $0x58] sm:$0x3]  ;;  %v1888_v32 = vadd.f32 %v5018_v40, %v7455_v48  ;;  %v2455_v15 = vrot.slane %v7650_v62, 2  ;;  %v5036_v59 = vadd.f32 %v7637_v55, %v7632_v31  ;;  %v1909_v62 = vadd.f32 %v5033_v11, %v7492_v37 }
 0x200   : > { %2205 = vst [vmem:[#allocation2 + $0x81] sm:$0xff] %v2133_v0  ;;  %v2138_v56 = vmax.f32 %v2054_v39, 0.0  ;;  %v2046_v22 = vadd.f32 %v2045_v10, %v1885_v12  ;;  %3491 = vmatprep.mubr.bf16.mxu0 %v7691_v30  ;;  %v2346_v44 = vrot.slane %v7700_v9, 1  ;;  %v2348_v17 = vrot.slane %v7702_v49, 1  ;;  %5460 = vmatpush3.bf16.msra.mxu1 %v5952_v19  ;;  %v5960_v55 = vld [vmem:[#allocation3 + $0x1a0] sm:$0xff]   ;;  %v7742_v19 = vld [vmem:[#allocation2 + $0x60] sm:$0xff] }
 0x201   : > { %v7710_v33 = vpop.f32.mrf.mxu1  ;;  %v5624_v53 = vpop.f32.mrf.mxu0  ;;  %5461 = vmatprep.subr.bf16.mxu1 %v5955_v60  ;;  %v7721_v48 = vpack.c.bf16 %v7700_v9, %v7693_v1  ;;  %v5030_v13 = vadd.f32 %v7605_v8, %v7600_v42  ;;  %v2452_v4 = vrot.slane %v7655_v43, 2  ;;  %v1901_v37 = vadd.f32 %v5027_v54, %v7478_v50  ;;  %v5963_v42 = vld [vmem:[#allocation3 + $0x1d8] sm:$0xff]  }
 0x202   : > { %2210 = vst [vmem:[#allocation2 + $0xc1] sm:$0xff] %v2138_v56  ;;  %v2136_v6 = vmax.f32 %v2046_v22, 0.0  ;;  %v2057_v36 = vadd.f32 %v5624_v53, %v1896_v34  ;;  %v2347_v61 = vsel %vm422_vm0, %v2345_v29, %v2346_v44  ;;  %v2349_v2 = vsel %vm422_vm0, %v2346_v44, %v2348_v17  ;;  %v8878_v22 = vld [vmem:[#allocation14_spill] sm:$0xff]  ;;  %v5964_v53 = vld [vmem:[#allocation3 + $0x198] sm:$0xff]  }
 0x203   : > { %v5047_v35 = vpop.f32.mrf.mxu1  ;;  %v2048_v21 = vpop.f32.mrf.mxu0  ;;  %3645 = vmatmul.mubr.bf16.gmra.mxu1 %v7716_v45  ;;  %v7740_v57 = vpack.c.bf16 %v2349_v2, %v2347_v61  ;;  %v2454_v0 = vsel %vm535_vm1, %v2452_v4, %v2453_v47  ;;  %v2456_v39 = vsel %vm535_vm1, %v2453_v47, %v2455_v15  ;;  %v2351_v12 = vrot.slane %v7729_v38, 1  ;;  %v8879_v15 = vld [vmem:[#allocation10_spill] sm:$0xff] }
 0x204   : > { %2208 = vst [vmem:[#allocation2 + $0xa9] sm:$0xff] %v2136_v6  ;;  %v2139_v51 = vmax.f32 %v2057_v36, 0.0  ;;  %v2049_v63 = vadd.f32 %v2048_v21, %v1888_v32  ;;  %3652 = vmatprep.mubr.bf16.mxu1 %v7721_v48  ;;  %5462 = vmatpush3.bf16.msra.mxu1 %v5956_v16  ;;  %v2353_v60 = vrot.slane %v7731_v14, 1  ;;  %v5045_v50 = vadd.f32 %v7695_v28, %v7687_v25 }
 0x205   : > { %v7737_v18 = vpop.f32.mrf.mxu1  ;;  %v5627_v31 = vpop.f32.mrf.mxu0  ;;  %5463 = vmatprep.subr.bf16.mxu1 %v5959_v5  ;;  %v1912_v3 = vadd.f32 %v5036_v59, %v7499_v46  ;;  %v5039_v26 = vadd.f32 %v7661_v23, %v7642_v7  ;;  %v1904_v44 = vadd.f32 %v5030_v13, %v8878_v22  ;;  %v2350_v54 = vrot.slane %v7742_v19, 1  ;;  %v5965_v46 = vld [vmem:[#allocation3 + $0x1d0] sm:$0xff]   ;;  %v5968_v22 = vld [vmem:[#allocation3 + $0x188] sm:$0xff]  }
 0x206   : > { %2211 = vst [vmem:[#allocation2 + $0xc9] sm:$0xff] %v2139_v51  ;;  %v2137_v40 = vmax.f32 %v2049_v63, 0.0  ;;  %v2070_v27 = vadd.f32 %v5627_v31, %v1909_v62  ;;  %v2458_v25 = vrot.slane %v7700_v9, 2  ;;  %v7762_v29 = vpack.c.bf16 %v2456_v39, %v2454_v0  ;;  %v8880_v13 = vld [vmem:[#allocation15_spill] sm:$0xff] }
 0x207   : > { %3492 = vmatmul.mubr.bf16.gmra.mxu0 %v7672_v24  ;;  %v7745_v8 = vpop.f32.mrf.mxu1  ;;  %v2061_v43 = vpop.f32.mrf.mxu0  ;;  %v2460_v7 = vrot.slane %v7702_v49, 2  ;;  %v7769_v16 = vpack.c.bf16 %v7729_v38, %v7742_v19  ;;  %v2352_v47 = vsel %vm422_vm0, %v2350_v54, %v2351_v12  ;;  %v2354_v9 = vsel %vm422_vm0, %v2351_v12, %v2353_v60  ;;  %v7776_v21 = vld [vmem:[#allocation2 + $0x80] sm:$0xff]  ;;  %v7778_v61 = vld [vmem:[#allocation2 + $0x88] sm:$0x3]  ;;  %v8881_v12 = vld [vmem:[#allocation17_spill] sm:$0xff] }
 0x208   : > { %2209 = vst [vmem:[#allocation2 + $0xb1] sm:$0xff] %v2137_v40  ;;  %v2142_v10 = vmax.f32 %v2070_v27, 0.0  ;;  %v2062_v34 = vadd.f32 %v2061_v43, %v1901_v37  ;;  %3499 = vmatprep.mubr.bf16.mxu0 %v7740_v57  ;;  %5464 = vmatpush3.bf16.msra.mxu1 %v5960_v55  ;;  %v5048_v6 = vadd.f32 %v5047_v35, %v7710_v33  ;;  %v2457_v59 = vrot.slane %v7693_v1, 2  ;;  %v5966_v35 = vld [vmem:[#allocation3 + $0x190] sm:$0xff]   ;;  %v7787_v55 = vld [vmem:[#allocation2 + $0x78] sm:$0xff] }
 0x209   : > { %v7757_v11 = vpop.f32.mrf.mxu1  ;;  %v5628_v56 = vpop.f32.mrf.mxu0  ;;  %5465 = vmatprep.subr.bf16.mxu1 %v5963_v42  ;;  %v1925_v49 = vadd.f32 %v5045_v50, %v8879_v15  ;;  %v5042_v2 = vadd.f32 %v7675_v58, %v7666_v20  ;;  %v1917_v4 = vadd.f32 %v5039_v26, %v8880_v13  ;;  %v7785_v31 = vpack.c.bf16 %v2354_v9, %v2352_v47  ;;  %v5967_v40 = vld [vmem:[#allocation3 + $0x1c8] sm:$0xff]  }
 0x20a   : > { %2214 = vst [vmem:[#allocation2 + $0xf1] sm:$0xff] %v2142_v10  ;;  %v2140_v28 = vmax.f32 %v2062_v34, 0.0  ;;  %v2073_v32 = vadd.f32 %v5628_v56, %v1912_v3  ;;  %v2459_v1 = vsel %vm535_vm1, %v2457_v59, %v2458_v25  ;;  %v2461_v27 = vsel %vm535_vm1, %v2458_v25, %v2460_v7 }
 0x20b   : > { %v7765_v23 = vpop.f32.mrf.mxu1  ;;  %v2064_v17 = vpop.f32.mrf.mxu0  ;;  %3653 = vmatmul.mubr.bf16.gmra.mxu1 %v7762_v29  ;;  %v2356_v37 = vrot.slane %v7776_v21, 1  ;;  %v2358_v42 = vrot.slane %v7778_v61, 1  ;;  %v1928_v60 = vadd.f32 %v5048_v6, %v8881_v12  ;;  %v5051_v50 = vadd.f32 %v7745_v8, %v7737_v18  ;;  %v8883_v6 = vld [vmem:[#allocation13_spill] sm:$0xff] }
 0x20c   : > { %2212 = vst [vmem:[#allocation2 + $0xd9] sm:$0xff] %v2140_v28  ;;  %v2143_v36 = vmax.f32 %v2073_v32, 0.0  ;;  %v2065_v5 = vadd.f32 %v2064_v17, %v1904_v44  ;;  %3660 = vmatprep.mubr.bf16.mxu1 %v7769_v16  ;;  %5466 = vmatpush3.bf16.msra.mxu1 %v5964_v53  ;;  %v2463_v10 = vrot.slane %v7729_v38, 2  ;;  %v2465_v34 = vrot.slane %v7731_v14, 2  ;;  %v8882_v53 = vld [vmem:[#allocation16_spill] sm:$0xff]  ;;  %v5970_v32 = vld [vmem:[#allocation3 + $0x1c0] sm:$0xff]  }
 0x20d   : > { %v5055_v51 = vpop.f32.mrf.mxu1  ;;  %v5631_v33 = vpop.f32.mrf.mxu0  ;;  %5467 = vmatprep.subr.bf16.mxu1 %v5965_v46  ;;  %v2355_v56 = vrot.slane %v7787_v55, 1  ;;  %v1920_v25 = vadd.f32 %v5042_v2, %v8882_v53  ;;  %v7802_v28 = vpack.c.bf16 %v2461_v27, %v2459_v1  ;;  %v2462_v18 = vrot.slane %v7742_v19, 2  ;;  %v7815_v19 = vld [vmem:[#allocation2 + $0xa0] sm:$0x3] }
 0x20e   : > { %2215 = vst [vmem:[#allocation2 + $0xf9] sm:$0xff] %v2143_v36  ;;  %v2141_v63 = vmax.f32 %v2065_v5, 0.0  ;;  %v2086_v62 = vadd.f32 %v5631_v33, %v1925_v49  ;;  %v7807_v14 = vpack.c.bf16 %v7776_v21, %v7787_v55  ;;  %v2359_v7 = vsel %vm422_vm0, %v2356_v37, %v2358_v42  ;;  %v7813_v5 = vld [vmem:[#allocation2 + $0x98] sm:$0xff]  ;;  %v8884_v2 = vld [vmem:[#allocation11_spill] sm:$0xff] }
 0x20f   : > { %3500 = vmatmul.mubr.bf16.gmra.mxu0 %v7721_v48  ;;  %v5056_v20 = vpop.f32.mrf.mxu1  ;;  %v2077_v58 = vpop.f32.mrf.mxu0  ;;  %v2357_v46 = vsel %vm422_vm0, %v2355_v56, %v2356_v37  ;;  %v1933_v59 = vadd.f32 %v5051_v50, %v8884_v2  ;;  %v2466_v33 = vsel %vm535_vm1, %v2463_v10, %v2465_v34  ;;  %v2361_v1 = vrot.slane %v7813_v5, 1 }
 0x210   : > { %2213 = vst [vmem:[#allocation2 + $0xe1] sm:$0xff] %v2141_v63  ;;  %v2146_v43 = vmax.f32 %v2086_v62, 0.0  ;;  %v5057_v0 = vadd.f32 %v5056_v20, %v5055_v51  ;;  %v2078_v39 = vadd.f32 %v2077_v58, %v1917_v4  ;;  %3507 = vmatprep.mubr.bf16.mxu0 %v7785_v31  ;;  %5468 = vmatpush3.bf16.msra.mxu1 %v5966_v35  ;;  %v5971_v35 = vld [vmem:[#allocation3 + $0x180] sm:$0xff]   ;;  %v2363_v27 = vrot.slane %v7815_v19, 1 }
 0x211   : > { %v5058_v3 = vpop.f32.mrf.mxu1  ;;  %v5632_v26 = vpop.f32.mrf.mxu0  ;;  %5469 = vmatprep.subr.bf16.mxu1 %v5967_v40  ;;  %v2464_v51 = vsel %vm535_vm1, %v2462_v18, %v2463_v10  ;;  %v5054_v63 = vadd.f32 %v7765_v23, %v7757_v11  ;;  %v7823_v4 = vpack.c.bf16 %v2359_v7, %v2357_v46  ;;  %v7825_v40 = vld [vmem:[#allocation2 + $0x90] sm:$0xff]  ;;  %v2470_v56 = vrot.slane %v7778_v61, 2 }
 0x212   : > { %2218 = vst [vmem:[#allocation2 + $0x121] sm:$0xff] %v2146_v43  ;;  %v2144_v44 = vmax.f32 %v2078_v39, 0.0  ;;  %v2089_v54 = vadd.f32 %v5632_v26, %v1928_v60  ;;  %v1941_v36 = vadd.f32 %v5057_v0, %v8883_v6  ;;  %v8885_v11 = vld [vmem:[#allocation9_spill] sm:$0xff]  ;;  %v2468_v43 = vrot.slane %v7776_v21, 2 }
 0x213   : > { %v5059_v38 = vpop.f32.mrf.mxu1  ;;  %v2080_v8 = vpop.f32.mrf.mxu0  ;;  %3661 = vmatmul.mubr.bf16.gmra.mxu1 %v7802_v28  ;;  %v7833_v12 = vpack.c.bf16 %v2466_v33, %v2464_v51  ;;  %v2360_v60 = vrot.slane %v7825_v40, 1  ;;  %v7840_v21 = vpack.c.bf16 %v7813_v5, %v7825_v40  ;;  %v2364_v53 = vsel %vm422_vm0, %v2361_v1, %v2363_v27  ;;  %v7845_v18 = vld [vmem:[#allocation2 + $0xb0] sm:$0xff] }
 0x214   : > { %2216 = vst [vmem:[#allocation2 + $0x109] sm:$0xff] %v2144_v44  ;;  %v2147_v17 = vmax.f32 %v2089_v54, 0.0  ;;  %v5060_v47 = vadd.f32 %v5059_v38, %v5058_v3  ;;  %v2081_v9 = vadd.f32 %v2080_v8, %v1920_v25  ;;  %3668 = vmatprep.mubr.bf16.mxu1 %v7807_v14  ;;  %5470 = vmatpush3.bf16.msra.mxu1 %v5968_v22  ;;  %v8886_v3 = vld [vmem:[#allocation18_spill] sm:$0xff]  ;;  %v2467_v61 = vrot.slane %v7787_v55, 2 }
 0x215   : > { %v5061_v15 = vpop.f32.mrf.mxu1  ;;  %v5635_v49 = vpop.f32.mrf.mxu0  ;;  %5471 = vmatprep.subr.bf16.mxu1 %v5970_v32  ;;  %v1936_v26 = vadd.f32 %v5054_v63, %v8886_v3  ;;  %v2362_v54 = vsel %vm422_vm0, %v2360_v60, %v2361_v1  ;;  %v7847_v38 = vld [vmem:[#allocation2 + $0xb8] sm:$0x3]  ;;  %v2471_v55 = vsel %vm535_vm1, %v2468_v43, %v2470_v56  ;;  %v2473_v63 = vrot.slane %v7813_v5, 2  ;;  %v2253_v3 = vld [vmem:[#allocation2 + $0xc8] sm:$0xff] }
 0x216   : > { %2219 = vst [vmem:[#allocation2 + $0x129] sm:$0xff] %v2147_v17  ;;  %v2145_v62 = vmax.f32 %v2081_v9, 0.0  ;;  %v2102_v13 = vadd.f32 %v5635_v49, %v1941_v36  ;;  %v1944_v23 = vadd.f32 %v5060_v47, %v8885_v11  ;;  %v8887_v47 = vld [vmem:[#allocation19_spill] sm:$0xff]  ;;  %v7852_v6 = vpack.c.bf16 %v2364_v53, %v2362_v54  ;;  %v7854_v36 = vld [vmem:[#allocation2 + $0xa8] sm:$0xff] }
 0x217   : > { %3508 = vmatmul.mubr.bf16.gmra.mxu0 %v7769_v16  ;;  %v5062_v20 = vpop.f32.mrf.mxu1  ;;  %v2093_v58 = vpop.f32.mrf.mxu0  ;;  %v2469_v2 = vsel %vm535_vm1, %v2467_v61, %v2468_v43  ;;  %v2368_v51 = vrot.slane %v7847_v38, 1  ;;  %v2252_v53 = vld [vmem:[#allocation2 + $0xc0] sm:$0xff]  ;;  %v2371_v61 = vrot.slane %v2253_v3, 1 }
 0x218   : > { %2217 = vst [vmem:[#allocation2 + $0x111] sm:$0xff] %v2145_v62  ;;  %v2150_v37 = vmax.f32 %v2102_v13, 0.0  ;;  %v2094_v42 = vadd.f32 %v2093_v58, %v1933_v59  ;;  %3515 = vmatprep.mubr.bf16.mxu0 %v7823_v4  ;;  %5472 = vmatpush3.bf16.msra.mxu1 %v5971_v35  ;;  %v5063_v50 = vadd.f32 %v5062_v20, %v5061_v15  ;;  %v2366_v59 = vrot.slane %v7845_v18, 1  ;;  %v8888_v58 = vld [vmem:[#allocation21_spill] sm:$0xff] }
 0x219   : > { %v5064_v0 = vpop.f32.mrf.mxu1  ;;  %v5636_v39 = vpop.f32.mrf.mxu0  ;;  %v2365_v20 = vrot.slane %v7854_v36, 1  ;;  %v7866_v11 = vpack.c.bf16 %v2471_v55, %v2469_v2  ;;  %v7894_v2 = vld [vmem:[#allocation2 + $0xe0] sm:$0xff]  ;;  %v7896_v55 = vld [vmem:[#allocation2 + $0xe8] sm:$0x3] }
 0x21a   : > { %2222 = vst [vmem:[#allocation2 + $0x151] sm:$0xff] %v2150_v37  ;;  %v2148_v10 = vmax.f32 %v2094_v42, 0.0  ;;  %v2105_v34 = vadd.f32 %v5636_v39, %v1944_v23  ;;  %v1949_v9 = vadd.f32 %v5063_v50, %v8887_v47  ;;  %v8889_v37 = vld [vmem:[#allocation20_spill] sm:$0xff]  ;;  %v2475_v23 = vrot.slane %v7815_v19, 2 }
 0x21b   : > { %v5065_v22 = vpop.f32.mrf.mxu1  ;;  %v2096_v44 = vpop.f32.mrf.mxu0  ;;  %3669 = vmatmul.mubr.bf16.gmra.mxu1 %v7833_v12  ;;  %v7871_v39 = vpack.c.bf16 %v7845_v18, %v7854_v36  ;;  %v2367_v5 = vsel %vm422_vm0, %v2365_v20, %v2366_v59  ;;  %v2369_v60 = vsel %vm422_vm0, %v2366_v59, %v2368_v51  ;;  %v2472_v19 = vrot.slane %v7825_v40, 2 }
 0x21c   : > { %2220 = vst [vmem:[#allocation2 + $0x139] sm:$0xff] %v2148_v10  ;;  %v2151_v25 = vmax.f32 %v2105_v34, 0.0  ;;  %v2097_v32 = vadd.f32 %v2096_v44, %v1936_v26  ;;  %3676 = vmatprep.mubr.bf16.mxu1 %v7840_v21  ;;  %v5066_v7 = vadd.f32 %v5065_v22, %v5064_v0  ;;  %v2254_v26 = vld [vmem:[#allocation2 + $0xd0] sm:$0x3]  ;;  %v7879_v54 = vpack.c.bf16 %v2369_v60, %v2367_v5 }
 0x21d   : > { %v5067_v8 = vpop.f32.mrf.mxu1  ;;  %v5639_v46 = vpop.f32.mrf.mxu0  ;;  %v2370_v40 = vrot.slane %v2252_v53, 1  ;;  %v2480_v47 = vrot.slane %v7847_v38, 2  ;;  %v2477_v59 = vrot.slane %v7854_v36, 2  ;;  %v7902_v38 = vld [vmem:[#allocation2 + $0xd8] sm:$0xff] }
 0x21e   : > { %2223 = vst [vmem:[#allocation2 + $0x159] sm:$0xff] %v2151_v25  ;;  %v2149_v17 = vmax.f32 %v2097_v32, 0.0  ;;  %v1952_v42 = vadd.f32 %v5066_v7, %v8889_v37  ;;  %v2474_v25 = vsel %vm535_vm1, %v2472_v19, %v2473_v63  ;;  %v2476_v32 = vsel %vm535_vm1, %v2473_v63, %v2475_v23  ;;  %v7919_v37 = vld [vmem:[#allocation2 + $0xf8] sm:$0xff]  ;;  %v7922_v23 = vld [vmem:[#allocation2 + $0x100] sm:$0x3] }
 0x21f   : > { %3516 = vmatmul.mubr.bf16.gmra.mxu0 %v7807_v14  ;;  %v5068_v15 = vpop.f32.mrf.mxu1  ;;  %v2109_v49 = vpop.f32.mrf.mxu0  ;;  %v2378_v63 = vrot.slane %v7896_v55, 1  ;;  %v2375_v36 = vrot.slane %v7902_v38, 1  ;;  %v2383_v19 = vrot.slane %v7922_v23, 1 }
 0x220   : > { %2221 = vst [vmem:[#allocation2 + $0x141] sm:$0xff] %v2149_v17  ;;  %v5069_v33 = vadd.f32 %v5068_v15, %v5067_v8  ;;  %v2110_v35 = vadd.f32 %v2109_v49, %v1949_v9  ;;  %3523 = vmatprep.mubr.bf16.mxu0 %v7852_v6  ;;  %v2373_v8 = vrot.slane %v2254_v26, 1  ;;  %v7886_v17 = vpack.c.bf16 %v2476_v32, %v2474_v25 }
 0x221   : > { %v5070_v62 = vpop.f32.mrf.mxu1  ;;  %v5640_v13 = vpop.f32.mrf.mxu0  ;;  %v7889_v9 = vpack.c.bf16 %v2253_v3, %v2252_v53  ;;  %v2372_v15 = vsel %vm422_vm0, %v2370_v40, %v2371_v61 }
 0x222   : > { %v1957_v1 = vadd.f32 %v5069_v33, %v8888_v58  ;;  %v2152_v27 = vmax.f32 %v2110_v35, 0.0  ;;  %v2374_v49 = vsel %vm422_vm0, %v2371_v61, %v2373_v8  ;;  %v2376_v35 = vrot.slane %v7894_v2, 1 }
 0x223   : > { %v5071_v43 = vpop.f32.mrf.mxu1  ;;  %v2112_v0 = vpop.f32.mrf.mxu0  ;;  %3677 = vmatmul.mubr.bf16.gmra.mxu1 %v7866_v11  ;;  %v7915_v58 = vpack.c.bf16 %v7894_v2, %v7902_v38  ;;  %v2490_v8 = vrot.slane %v7896_v55, 2  ;;  %v2262_v55 = vld [vmem:[#allocation2 + $0x110] sm:$0xff] }
 0x224   : > { %v2118_v50 = vadd.f32 %v5639_v46, %v1957_v1  ;;  %2224 = vst [vmem:[#allocation2 + $0x169] sm:$0xff] %v2152_v27  ;;  %v5072_v10 = vadd.f32 %v5071_v43, %v5070_v62  ;;  %v2113_v34 = vadd.f32 %v2112_v0, %v1952_v42  ;;  %3684 = vmatprep.mubr.bf16.mxu1 %v7871_v39  ;;  %v2483_v62 = vrot.slane %v2253_v3, 2 }
 0x225   : > { %v2377_v1 = vsel %vm422_vm0, %v2375_v36, %v2376_v35  ;;  %v2379_v27 = vsel %vm422_vm0, %v2376_v35, %v2378_v63  ;;  %v2482_v42 = vrot.slane %v2252_v53, 2  ;;  %v7933_v3 = vpop.f32.mrf.mxu1  ;;  %v2488_v53 = vrot.slane %v7894_v2, 2  ;;  %v2263_v63 = vld [vmem:[#allocation2 + $0x118] sm:$0x3] }
 0x226   : > { %v2154_v56 = vmax.f32 %v2118_v50, 0.0  ;;  %v1960_v22 = vadd.f32 %v5072_v10, %v7592_v41  ;;  %v2153_v44 = vmax.f32 %v2113_v34, 0.0  ;;  %v2478_v41 = vrot.slane %v7845_v18, 2  ;;  %v2258_v34 = vld [vmem:[#allocation2 + $0xf0] sm:$0xff] }
 0x227   : > { %3524 = vmatmul.mubr.bf16.gmra.mxu0 %v7840_v21  ;;  %v7900_v18 = vpack.c.bf16 %v2374_v49, %v2372_v15  ;;  %v7929_v60 = vpack.c.bf16 %v2379_v27, %v2377_v1  ;;  %v2484_v50 = vsel %vm535_vm1, %v2482_v42, %v2483_v62 }
 0x228   : > { %2226 = vst [vmem:[#allocation2 + $0x181] sm:$0xff] %v2154_v56  ;;  %v2121_v46 = vadd.f32 %v5640_v13, %v1960_v22  ;;  %2225 = vst [vmem:[#allocation2 + $0x171] sm:$0xff] %v2153_v44  ;;  %3531 = vmatprep.mubr.bf16.mxu0 %v7879_v54  ;;  %v2479_v51 = vsel %vm535_vm1, %v2477_v59, %v2478_v41  ;;  %v2481_v33 = vsel %vm535_vm1, %v2478_v41, %v2480_v47  ;;  %v5137_v5 = vpop.f32.mrf.mxu0  ;;  %v2884_v47 = vpop.f32.mrf.mxu1 }
 0x229   : > { %v2485_v13 = vrot.slane %v2254_v26, 2  ;;  %v7911_v20 = vpack.c.bf16 %v2481_v33, %v2479_v51  ;;  %v2381_v26 = vrot.slane %v7919_v37, 1  ;;  %v7950_v59 = vpack.c.bf16 %v7919_v37, %v2258_v34 }
 0x22a   : > { %v2155_v7 = vmax.f32 %v2121_v46, 0.0  ;;  %v5138_v61 = vpop.f32.mrf.mxu0  ;;  %v2380_v46 = vrot.slane %v2258_v34, 1 }
 0x22b   : > { %3685 = vmatmul.mubr.bf16.gmra.mxu1 %v7886_v17  ;;  %v2486_v10 = vsel %vm535_vm1, %v2483_v62, %v2485_v13  ;;  %v5139_v40 = vadd.f32 %v5138_v61, %v5137_v5  ;;  %v2384_v33 = vsel %vm422_vm0, %v2381_v26, %v2383_v19  ;;  %v2487_v13 = vrot.slane %v7902_v38, 2  ;;  %v2261_v5 = vld [vmem:[#allocation2 + $0x108] sm:$0xff] }
 0x22c   : > { %2227 = vst [vmem:[#allocation2 + $0x189] sm:$0xff] %v2155_v7  ;;  %3692 = vmatprep.mubr.bf16.mxu1 %v7889_v9  ;;  %v7946_v41 = vpack.c.bf16 %v2486_v10, %v2484_v50  ;;  %v2382_v51 = vsel %vm422_vm0, %v2380_v46, %v2381_v26  ;;  %v2491_v10 = vsel %vm535_vm1, %v2488_v53, %v2490_v8  ;;  %v2386_v26 = vrot.slane %v2262_v55, 1  ;;  %v2266_v8 = vld [vmem:[#allocation2 + $0x130] sm:$0x3]  ;;  %v7980_v46 = vpop.f32.mrf.mxu1 }
 0x22d   : > { %v7954_v35 = vadd.f32 %v5139_v40, %v2884_v47  ;;  %v7965_v42 = vpack.c.bf16 %v2384_v33, %v2382_v51  ;;  %v2489_v50 = vsel %vm535_vm1, %v2487_v13, %v2488_v53  ;;  %v2388_v19 = vrot.slane %v2263_v63, 1  ;;  %v2265_v53 = vld [vmem:[#allocation2 + $0x128] sm:$0xff] }
 0x22e   : > { %v2385_v38 = vrot.slane %v2261_v5, 1  ;;  %v2492_v40 = vrot.slane %v2258_v34, 2  ;;  %v2498_v33 = vrot.slane %v2262_v55, 2 }
 0x22f   : > { %3532 = vmatmul.mubr.bf16.gmra.mxu0 %v7871_v39  ;;  %v7924_v43 = vld [vmem:[#allocation2 + $0x180] sm:$0xff]  ;;  %v2389_v61 = vsel %vm422_vm0, %v2386_v26, %v2388_v19 }
 0x230   : > { %3539 = vmatprep.mubr.bf16.mxu0 %v7900_v18  ;;  %v2557_v56 = vrot.slane %v7924_v43, 1  ;;  %v2564_v25 = vrot.slane %v7924_v43, 2 }
 0x233   : > { %3693 = vmatmul.mubr.bf16.gmra.mxu1 %v7911_v20  ;;  %v7926_v0 = vld [vmem:[#allocation2 + $0x188] sm:$0xff]  ;;  %v2278_v44 = vld [vmem:[#allocation2 + $0x190] sm:$0x3] }
 0x234   : > { %3700 = vmatprep.mubr.bf16.mxu1 %v7915_v58  ;;  %v2558_v22 = vrot.slane %v7926_v0, 1  ;;  %v2565_v32 = vrot.slane %v7926_v0, 2  ;;  %v2560_v15 = vrot.slane %v2278_v44, 1  ;;  %v2567_v2 = vrot.slane %v2278_v44, 2 }
 0x235   : > { %v2495_v44 = vrot.slane %v7922_v23, 2 }
 0x236   : > { %v2559_v7 = vsel %vm422_vm0, %v2557_v56, %v2558_v22  ;;  %v2566_v49 = vsel %vm535_vm1, %v2564_v25, %v2565_v32  ;;  %v2561_v36 = vsel %vm422_vm0, %v2558_v22, %v2560_v15  ;;  %v2568_v62 = vsel %vm535_vm1, %v2565_v32, %v2567_v2  ;;  %v7989_v2 = vpop.f32.mrf.mxu1 }
 0x237   : > { %3540 = vmatmul.mubr.bf16.gmra.mxu0 %v7889_v9  ;;  %v7961_v1 = vpack.c.bf16 %v2561_v36, %v2559_v7  ;;  %v7963_v27 = vpack.c.bf16 %v2568_v62, %v2566_v49  ;;  %v2493_v56 = vrot.slane %v7919_v37, 2  ;;  %v7972_v22 = vpack.c.bf16 %v2491_v10, %v2489_v50  ;;  %v2264_v7 = vld [vmem:[#allocation2 + $0x120] sm:$0xff] }
 0x238   : > { %3547 = vmatprep.mubr.bf16.mxu0 %v7929_v60  ;;  %v7975_v25 = vpack.c.bf16 %v2262_v55, %v2261_v5  ;;  %v2387_v32 = vsel %vm422_vm0, %v2385_v38, %v2386_v26  ;;  %v2391_v15 = vrot.slane %v2265_v53, 1  ;;  %v2393_v49 = vrot.slane %v2266_v8, 1  ;;  %v2268_v10 = vld [vmem:[#allocation2 + $0x140] sm:$0xff]  ;;  %v2269_v26 = vld [vmem:[#allocation2 + $0x148] sm:$0x3]  ;;  %v7998_v19 = vpop.f32.mrf.mxu1  ;;  %v2267_v55 = vld [vmem:[#allocation2 + $0x138] sm:$0xff] }
 0x239   : > { %8890 = vst [vmem:[#allocation12_spill] sm:$0xff] %v7961_v1  ;;  %8891 = vst [vmem:[#allocation14_spill] sm:$0xff] %v7963_v27  ;;  %v7983_v37 = vpack.c.bf16 %v2389_v61, %v2387_v32  ;;  %v2494_v23 = vsel %vm535_vm1, %v2492_v40, %v2493_v56  ;;  %v2496_v47 = vsel %vm535_vm1, %v2493_v56, %v2495_v44  ;;  %v2390_v51 = vrot.slane %v2264_v7, 1 }
 0x23a   : > { %v7991_v34 = vpack.c.bf16 %v2496_v47, %v2494_v23  ;;  %v2500_v36 = vrot.slane %v2263_v63, 2  ;;  %v7993_v62 = vpack.c.bf16 %v2265_v53, %v2264_v7  ;;  %v2394_v50 = vsel %vm422_vm0, %v2391_v15, %v2393_v49  ;;  %8892 = vst [vmem:[#allocation10_spill] sm:$0xff] %v7998_v19  ;;  %v8007_v40 = vpop.f32.mrf.mxu1 }
 0x23b   : > { %3701 = vmatmul.mubr.bf16.gmra.mxu1 %v7946_v41  ;;  %v2392_v13 = vsel %vm422_vm0, %v2390_v51, %v2391_v15  ;;  %v2497_v38 = vrot.slane %v2261_v5, 2  ;;  %v2396_v32 = vrot.slane %v2268_v10, 1  ;;  %v2398_v61 = vrot.slane %v2269_v26, 1  ;;  %8893 = vst [vmem:[#allocation15_spill] sm:$0xff] %v8007_v40 }
 0x23c   : > { %3708 = vmatprep.mubr.bf16.mxu1 %v7950_v59  ;;  %v8001_v56 = vpack.c.bf16 %v2394_v50, %v2392_v13  ;;  %v2501_v44 = vsel %vm535_vm1, %v2498_v33, %v2500_v36  ;;  %v2395_v23 = vrot.slane %v2267_v55, 1  ;;  %v2503_v47 = vrot.slane %v2265_v53, 2  ;;  %v2272_v36 = vld [vmem:[#allocation2 + $0x160] sm:$0x3]  ;;  %v8016_v50 = vpop.f32.mrf.mxu1  ;;  %v2270_v53 = vld [vmem:[#allocation2 + $0x150] sm:$0xff] }
 0x23d   : > { %v2499_v63 = vsel %vm535_vm1, %v2497_v38, %v2498_v33  ;;  %v2505_v15 = vrot.slane %v2266_v8, 2  ;;  %v8011_v49 = vpack.c.bf16 %v2268_v10, %v2267_v55  ;;  %v2399_v13 = vsel %vm422_vm0, %v2396_v32, %v2398_v61  ;;  %v2271_v33 = vld [vmem:[#allocation2 + $0x158] sm:$0xff]  ;;  %8895 = vst [vmem:[#allocation16_spill] sm:$0xff] %v8016_v50 }
 0x23e   : > { %v8009_v5 = vpack.c.bf16 %v2501_v44, %v2499_v63  ;;  %v2397_v51 = vsel %vm422_vm0, %v2395_v23, %v2396_v32  ;;  %v2502_v38 = vrot.slane %v2264_v7, 2  ;;  %v2401_v44 = vrot.slane %v2271_v33, 1  ;;  %v8025_v61 = vpop.f32.mrf.mxu1 }
 0x23f   : > { %3548 = vmatmul.mubr.bf16.gmra.mxu0 %v7915_v58  ;;  %8894 = vst [vmem:[#allocation17_spill] sm:$0xff] %v8011_v49  ;;  %v8019_v27 = vpack.c.bf16 %v2399_v13, %v2397_v51  ;;  %v2506_v63 = vsel %vm535_vm1, %v2503_v47, %v2505_v15  ;;  %v2403_v32 = vrot.slane %v2272_v36, 1  ;;  %8897 = vst [vmem:[#allocation11_spill] sm:$0xff] %v8025_v61  ;;  %v2400_v23 = vrot.slane %v2270_v53, 1  ;;  %v2275_v15 = vld [vmem:[#allocation2 + $0x178] sm:$0x3] }
 0x240   : > { %3555 = vmatprep.mubr.bf16.mxu0 %v7965_v42  ;;  %v2504_v8 = vsel %vm535_vm1, %v2502_v38, %v2503_v47  ;;  %v2508_v1 = vrot.slane %v2268_v10, 2  ;;  %v2510_v50 = vrot.slane %v2269_v26, 2  ;;  %v8029_v51 = vpack.c.bf16 %v2271_v33, %v2270_v53  ;;  %v2274_v47 = vld [vmem:[#allocation2 + $0x170] sm:$0xff]  ;;  %v8034_v38 = vpop.f32.mrf.mxu1  ;;  %v2273_v10 = vld [vmem:[#allocation2 + $0x168] sm:$0xff] }
 0x241   : > { %8896 = vst [vmem:[#allocation13_spill] sm:$0xff] %v8019_v27  ;;  %v8027_v7 = vpack.c.bf16 %v2506_v63, %v2504_v8  ;;  %v2402_v13 = vsel %vm422_vm0, %v2400_v23, %v2401_v44  ;;  %v2404_v19 = vsel %vm422_vm0, %v2401_v44, %v2403_v32  ;;  %8898 = vst [vmem:[#allocation9_spill] sm:$0xff] %v8034_v38  ;;  %v2507_v40 = vrot.slane %v2267_v55, 2 }
 0x242   : > { %v8037_v61 = vpack.c.bf16 %v2404_v19, %v2402_v13  ;;  %v2511_v8 = vsel %vm535_vm1, %v2508_v1, %v2510_v50  ;;  %v2406_v63 = vrot.slane %v2274_v47, 1  ;;  %v2408_v44 = vrot.slane %v2275_v15, 1  ;;  %v8043_v32 = vpop.f32.mrf.mxu1 }
 0x243   : > { %3709 = vmatmul.mubr.bf16.gmra.mxu1 %v7972_v22  ;;  %v2509_v26 = vsel %vm535_vm1, %v2507_v40, %v2508_v1  ;;  %v2405_v23 = vrot.slane %v2273_v10, 1  ;;  %v2513_v38 = vrot.slane %v2271_v33, 2  ;;  %v8047_v19 = vpack.c.bf16 %v2274_v47, %v2273_v10 }
 0x244   : > { %3716 = vmatprep.mubr.bf16.mxu1 %v7975_v25  ;;  %v8045_v55 = vpack.c.bf16 %v2511_v8, %v2509_v26  ;;  %v8052_v1 = vpop.f32.mrf.mxu1  ;;  %v2512_v40 = vrot.slane %v2270_v53, 2  ;;  %v8067_v53 = vpack.c.bf16 %v7926_v0, %v7924_v43  ;;  %v5972_v0 = vld [vmem:[#allocation3 + $0x230] sm:$0xff]  }
 0x245   : > { %v2407_v13 = vsel %vm422_vm0, %v2405_v23, %v2406_v63  ;;  %v2517_v23 = vrot.slane %v2273_v10, 2  ;;  %v5997_v10 = vld [vmem:[#allocation3 + $0x238] sm:$0xff]  }
 0x246   : > { %v2514_v33 = vsel %vm535_vm1, %v2512_v40, %v2513_v38  ;;  %v8061_v26 = vpop.f32.mrf.mxu1 }
 0x247   : > { %3556 = vmatmul.mubr.bf16.gmra.mxu0 %v7950_v59 }
 0x248   : > { %3563 = vmatprep.mubr.bf16.mxu0 %v7983_v37 }
 0x24b   : > { %3717 = vmatmul.mubr.bf16.gmra.mxu1 %v7991_v34 }
 0x24c   : > { %3724 = vmatprep.mubr.bf16.mxu1 %v7993_v62 }
 0x24f   : > { %3564 = vmatmul.mubr.bf16.gmra.mxu0 %v7975_v25 }
 0x250   : > { %3571 = vmatprep.mubr.bf16.mxu0 %v8001_v56 }
 0x253   : > { %3725 = vmatmul.mubr.bf16.gmra.mxu1 %v8009_v5 }
 0x254   : > { %3732 = vmatprep.mubr.bf16.mxu1 %v8011_v49 }
 0x257   : > { %3572 = vmatmul.mubr.bf16.gmra.mxu0 %v7993_v62 }
 0x258   : > { %3579 = vmatprep.mubr.bf16.mxu0 %v8019_v27  ;;  %v2515_v27 = vrot.slane %v2272_v36, 2 }
 0x25a   : > { %v2516_v36 = vsel %vm535_vm1, %v2513_v38, %v2515_v27 }
 0x25b   : > { %3733 = vmatmul.mubr.bf16.gmra.mxu1 %v8027_v7  ;;  %v8063_v8 = vpack.c.bf16 %v2516_v36, %v2514_v33  ;;  %v5974_v33 = vld [vmem:[#allocation3 + $0x220] sm:$0xff]   ;;  %v5975_v36 = vld [vmem:[#allocation3 + $0x218] sm:$0xff]  }
 0x25c   : > { %3740 = vmatprep.mubr.bf16.mxu1 %v8029_v51 }
 0x25f   : > { %3580 = vmatmul.mubr.bf16.gmra.mxu0 %v8011_v49  ;;  %v2409_v49 = vsel %vm422_vm0, %v2406_v63, %v2408_v44  ;;  %v2518_v63 = vrot.slane %v2274_v47, 2  ;;  %v2520_v44 = vrot.slane %v2275_v15, 2 }
 0x260   : > { %3587 = vmatprep.mubr.bf16.mxu0 %v8037_v61  ;;  %v8055_v50 = vpack.c.bf16 %v2409_v49, %v2407_v13  ;;  %v8070_v49 = vpop.f32.mrf.mxu1 }
 0x261   : > { %v2519_v27 = vsel %vm535_vm1, %v2517_v23, %v2518_v63  ;;  %v2521_v38 = vsel %vm535_vm1, %v2518_v63, %v2520_v44  ;;  %v5977_v44 = vld [vmem:[#allocation3 + $0x208] sm:$0xff]  }
 0x262   : > { %v8077_v47 = vpop.f32.mrf.mxu1  ;;  %v8079_v15 = vpack.c.bf16 %v2521_v38, %v2519_v27 }
 0x263   : > { %3741 = vmatmul.mubr.bf16.gmra.mxu1 %v8045_v55 }
 0x264   : > { %3748 = vmatprep.mubr.bf16.mxu1 %v8047_v19  ;;  %v8082_v43 = vpop.f32.mrf.mxu1 }
 0x266   : > { %v8087_v13 = vpop.f32.mrf.mxu1 }
 0x267   : > { %3588 = vmatmul.mubr.bf16.gmra.mxu0 %v8029_v51 }
 0x268   : > { %3595 = vmatprep.mubr.bf16.mxu0 %v8055_v50  ;;  %v8090_v40 = vpop.f32.mrf.mxu1 }
 0x26b   : > { %3749 = vmatmul.mubr.bf16.gmra.mxu1 %v8063_v8 }
 0x26c   : > { %3756 = vmatprep.mubr.bf16.mxu1 %v8067_v53 }
 0x26f   : > { %3596 = vmatmul.mubr.bf16.gmra.mxu0 %v8047_v19 }
 0x270   : > { %3797 = vmatprep.mubr.bf16.mxu0 %v7716_v45  ;;  %v5973_v45 = vld [vmem:[#allocation3 + $0x228] sm:$0xff]  }
 0x273   : > { %3757 = vmatmul.mubr.bf16.gmra.mxu1 %v8079_v15 }
 0x274   : > { %3958 = vmatprep.mubr.bf16.mxu1 %v7691_v30 }
 0x277   : > { %3798 = vmatmul.mubr.bf16.vlgmr.msra.gmra.mxu0 %v7681_v52  ;;  %v8095_v52 = vpop.f32.mrf.mxu1 }
 0x278   : > { %3805 = vmatprep.mubr.bf16.mxu0 %v7762_v29  ;;  %5690 = vmatpush3.bf16.msra.mxu0 %v5997_v10 }
 0x279   : > { %5691 = vmatprep.subr.bf16.mxu0 %v5972_v0  ;;  %v8098_v63 = vpop.f32.mrf.mxu1 }
 0x27b   : > { %3959 = vmatmul.mubr.bf16.vlgmr.msra.gmra.mxu1 %v7672_v24  ;;  %v5976_v24 = vld [vmem:[#allocation3 + $0x210] sm:$0xff]  }
 0x27c   : > { %5692 = vmatpush3.bf16.msra.mxu0 %v5972_v0  ;;  %3966 = vmatprep.mubr.bf16.mxu1 %v7740_v57 }
 0x27d   : > { %5693 = vmatprep.subr.bf16.mxu0 %v5973_v45 }
 0x27f   : > { %3806 = vmatmul.mubr.bf16.gmra.mxu0 %v7691_v30  ;;  %v8103_v30 = vpop.f32.mrf.mxu1 }
 0x280   : > { %3813 = vmatprep.mubr.bf16.mxu0 %v7802_v28  ;;  %5694 = vmatpush3.bf16.msra.mxu0 %v5973_v45 }
 0x281   : > { %5695 = vmatprep.subr.bf16.mxu0 %v5974_v33  ;;  %v8106_v23 = vpop.f32.mrf.mxu1 }
 0x283   : > { %3967 = vmatmul.mubr.bf16.gmra.mxu1 %v7721_v48  ;;  %v5978_v48 = vld [vmem:[#allocation3 + $0x200] sm:$0xff]  }
 0x284   : > { %5696 = vmatpush3.bf16.msra.mxu0 %v5974_v33  ;;  %3974 = vmatprep.mubr.bf16.mxu1 %v7785_v31 }
 0x285   : > { %5697 = vmatprep.subr.bf16.mxu0 %v5975_v36 }
 0x287   : > { %3814 = vmatmul.mubr.bf16.gmra.mxu0 %v7740_v57  ;;  %v8111_v57 = vpop.f32.mrf.mxu1 }
 0x288   : > { %3821 = vmatprep.mubr.bf16.mxu0 %v7833_v12  ;;  %5698 = vmatpush3.bf16.msra.mxu0 %v5975_v36 }
 0x289   : > { %5699 = vmatprep.subr.bf16.mxu0 %v5976_v24  ;;  %v8114_v27 = vpop.f32.mrf.mxu1 }
 0x28b   : > { %3975 = vmatmul.mubr.bf16.gmra.mxu1 %v7769_v16  ;;  %v8119_v16 = vpop.f32.mrf.mxu1 }
 0x28c   : > { %5700 = vmatpush3.bf16.msra.mxu0 %v5976_v24  ;;  %3982 = vmatprep.mubr.bf16.mxu1 %v7823_v4 }
 0x28d   : > { %5701 = vmatprep.subr.bf16.mxu0 %v5977_v44 }
 0x28f   : > { %3822 = vmatmul.mubr.bf16.gmra.mxu0 %v7785_v31  ;;  %v8122_v31 = vpop.f32.mrf.mxu1 }
 0x290   : > { %3829 = vmatprep.mubr.bf16.mxu0 %v7866_v11  ;;  %5702 = vmatpush3.bf16.msra.mxu0 %v5977_v44 }
 0x291   : > { %5703 = vmatprep.subr.bf16.mxu0 %v5978_v48 }
 0x293   : > { %3983 = vmatmul.mubr.bf16.gmra.mxu1 %v7807_v14  ;;  %v8127_v14 = vpop.f32.mrf.mxu1 }
 0x294   : > { %5704 = vmatpush3.bf16.msra.mxu0 %v5978_v48  ;;  %3990 = vmatprep.mubr.bf16.mxu1 %v7852_v6 }
 0x295   : > { %v8130_v38 = vpop.f32.mrf.mxu1 }
 0x297   : > { %3830 = vmatmul.mubr.bf16.gmra.mxu0 %v7823_v4  ;;  %v8135_v4 = vpop.f32.mrf.mxu1 }
 0x298   : > { %3837 = vmatprep.mubr.bf16.mxu0 %v7886_v17 }
 0x29b   : > { %3991 = vmatmul.mubr.bf16.gmra.mxu1 %v7840_v21  ;;  %v8138_v21 = vpop.f32.mrf.mxu1 }
 0x29c   : > { %3998 = vmatprep.mubr.bf16.mxu1 %v7879_v54  ;;  %8899 = vst [vmem:[#allocation18_spill] sm:$0xff] %v8138_v21 }
 0x29f   : > { %3838 = vmatmul.mubr.bf16.gmra.mxu0 %v7852_v6  ;;  %v8143_v6 = vpop.f32.mrf.mxu1 }
 0x2a0   : > { %3845 = vmatprep.mubr.bf16.mxu0 %v7911_v20 }
 0x2a3   : > { %3999 = vmatmul.mubr.bf16.gmra.mxu1 %v7871_v39  ;;  %v8146_v39 = vpop.f32.mrf.mxu1 }
 0x2a4   : > { %4006 = vmatprep.mubr.bf16.mxu1 %v7900_v18  ;;  %8900 = vst [vmem:[#allocation19_spill] sm:$0xff] %v8146_v39 }
 0x2a7   : > { %3846 = vmatmul.mubr.bf16.gmra.mxu0 %v7879_v54  ;;  %v5140_v54 = vpop.f32.mrf.mxu0 }
 0x2a8   : > { %3853 = vmatprep.mubr.bf16.mxu0 %v7946_v41 }
 0x2a9   : > { %v5141_v0 = vpop.f32.mrf.mxu0 }
 0x2aa   : > { %v5142_v45 = vadd.f32 %v5141_v0, %v5140_v54 }
 0x2ab   : > { %4007 = vmatmul.mubr.bf16.gmra.mxu1 %v7889_v9  ;;  %v8151_v9 = vpop.f32.mrf.mxu1 }
 0x2ac   : > { %4014 = vmatprep.mubr.bf16.mxu1 %v7929_v60  ;;  %8901 = vst [vmem:[#allocation21_spill] sm:$0xff] %v8151_v9  ;;  %v3481_v39 = vadd.f32 %v5142_v45, %v7989_v2 }
 0x2af   : > { %3854 = vmatmul.mubr.bf16.gmra.mxu0 %v7900_v18 }
 0x2b0   : > { %3861 = vmatprep.mubr.bf16.mxu0 %v7972_v22 }
 0x2b3   : > { %4015 = vmatmul.mubr.bf16.gmra.mxu1 %v7915_v58 }
 0x2b4   : > { %4022 = vmatprep.mubr.bf16.mxu1 %v7965_v42 }
 0x2b7   : > { %3862 = vmatmul.mubr.bf16.gmra.mxu0 %v7929_v60 }
 0x2b8   : > { %3869 = vmatprep.mubr.bf16.mxu0 %v7991_v34 }
 0x2bb   : > { %v5249_v10 = vpop.f32.mrf.mxu1  ;;  %4023 = vmatmul.mubr.bf16.gmra.mxu1 %v7950_v59 }
 0x2bc   : > { %4030 = vmatprep.mubr.bf16.mxu1 %v7983_v37 }
 0x2bd   : > { %v5250_v18 = vpop.f32.mrf.mxu1 }
 0x2be   : > { %v5251_v58 = vadd.f32 %v5250_v18, %v5249_v10 }
 0x2bf   : > { %v5143_v33 = vpop.f32.mrf.mxu0  ;;  %3870 = vmatmul.mubr.bf16.gmra.mxu0 %v7965_v42  ;;  %v5252_v36 = vpop.f32.mrf.mxu1 }
 0x2c0   : > { %3877 = vmatprep.mubr.bf16.mxu0 %v8009_v5  ;;  %v8158_v60 = vadd.f32 %v5251_v58, %v7954_v35 }
 0x2c1   : > { %v5144_v24 = vpop.f32.mrf.mxu0  ;;  %v5253_v48 = vpop.f32.mrf.mxu1 }
 0x2c2   : > { %v5145_v44 = vadd.f32 %v5144_v24, %v5143_v33  ;;  %v5254_v59 = vadd.f32 %v5253_v48, %v5252_v36 }
 0x2c3   : > { %v5146_v21 = vpop.f32.mrf.mxu0  ;;  %v5255_v9 = vpop.f32.mrf.mxu1  ;;  %4031 = vmatmul.mubr.bf16.gmra.mxu1 %v7975_v25 }
 0x2c4   : > { %v8162_v54 = vadd.f32 %v5254_v59, %v3481_v39  ;;  %4038 = vmatprep.mubr.bf16.mxu1 %v8001_v56  ;;  %v3486_v35 = vadd.f32 %v7933_v3, %v5145_v44  ;;  %v8902_v44 = vld [vmem:[#allocation13_spill] sm:$0xff] }
 0x2c5   : > { %v5147_v0 = vpop.f32.mrf.mxu0  ;;  %v5256_v10 = vpop.f32.mrf.mxu1 }
 0x2c6   : > { %v5148_v42 = vadd.f32 %v5147_v0, %v5146_v21  ;;  %v5257_v18 = vadd.f32 %v5256_v10, %v5255_v9  ;;  %v8903_v0 = vld [vmem:[#allocation15_spill] sm:$0xff] }
 0x2c7   : > { %v5149_v58 = vpop.f32.mrf.mxu0  ;;  %3878 = vmatmul.mubr.bf16.gmra.mxu0 %v7983_v37  ;;  %v5258_v33 = vpop.f32.mrf.mxu1 }
 0x2c8   : > { %3885 = vmatprep.mubr.bf16.mxu0 %v8027_v7  ;;  %v8168_v2 = vadd.f32 %v5257_v18, %v3486_v35  ;;  %v3489_v36 = vadd.f32 %v7980_v46, %v5148_v42 }
 0x2c9   : > { %v5150_v45 = vpop.f32.mrf.mxu0  ;;  %v5259_v39 = vpop.f32.mrf.mxu1 }
 0x2ca   : > { %v5151_v25 = vadd.f32 %v5150_v45, %v5149_v58  ;;  %v5260_v24 = vadd.f32 %v5259_v39, %v5258_v33  ;;  %v8905_v45 = vld [vmem:[#allocation11_spill] sm:$0xff] }
 0x2cb   : > { %v5152_v48 = vpop.f32.mrf.mxu0  ;;  %v5261_v21 = vpop.f32.mrf.mxu1  ;;  %4039 = vmatmul.mubr.bf16.gmra.mxu1 %v7993_v62 }
 0x2cc   : > { %v8172_v3 = vadd.f32 %v5260_v24, %v3489_v36  ;;  %4046 = vmatprep.mubr.bf16.mxu1 %v8902_v44  ;;  %v3494_v10 = vadd.f32 %v5151_v25, %v8903_v0  ;;  %v8907_v0 = vld [vmem:[#allocation10_spill] sm:$0xff] }
 0x2cd   : > { %v5153_v9 = vpop.f32.mrf.mxu0  ;;  %v5262_v59 = vpop.f32.mrf.mxu1 }
 0x2ce   : > { %v5154_v37 = vadd.f32 %v5153_v9, %v5152_v48  ;;  %v5263_v35 = vadd.f32 %v5262_v59, %v5261_v21  ;;  %v8906_v9 = vld [vmem:[#allocation17_spill] sm:$0xff] }
 0x2cf   : > { %v5155_v18 = vpop.f32.mrf.mxu0  ;;  %3886 = vmatmul.mubr.bf16.gmra.mxu0 %v8001_v56  ;;  %v5264_v58 = vpop.f32.mrf.mxu1 }
 0x2d0   : > { %3893 = vmatprep.mubr.bf16.mxu0 %v8045_v55  ;;  %v8178_v46 = vadd.f32 %v5263_v35, %v3494_v10  ;;  %v3497_v39 = vadd.f32 %v5154_v37, %v8905_v45  ;;  %v8908_v45 = vld [vmem:[#allocation16_spill] sm:$0xff] }
 0x2d1   : > { %v5156_v42 = vpop.f32.mrf.mxu0  ;;  %v5265_v33 = vpop.f32.mrf.mxu1 }
 0x2d2   : > { %8904 = vst [vmem:[#allocation20_spill] sm:$0xff] %v8178_v46  ;;  %v5157_v62 = vadd.f32 %v5156_v42, %v5155_v18  ;;  %v5266_v36 = vadd.f32 %v5265_v33, %v5264_v58 }
 0x2d3   : > { %v5158_v24 = vpop.f32.mrf.mxu0  ;;  %v5267_v48 = vpop.f32.mrf.mxu1  ;;  %4047 = vmatmul.mubr.bf16.gmra.mxu1 %v8906_v9 }
 0x2d4   : > { %v8182_v25 = vadd.f32 %v5266_v36, %v3497_v39  ;;  %4054 = vmatprep.mubr.bf16.mxu1 %v8037_v61  ;;  %v3502_v10 = vadd.f32 %v8907_v0, %v5157_v62 }
 0x2d5   : > { %v5159_v21 = vpop.f32.mrf.mxu0  ;;  %v5268_v59 = vpop.f32.mrf.mxu1 }
 0x2d6   : > { %v5160_v56 = vadd.f32 %v5159_v21, %v5158_v24  ;;  %v5269_v35 = vadd.f32 %v5268_v59, %v5267_v48 }
 0x2d7   : > { %v5161_v46 = vpop.f32.mrf.mxu0  ;;  %3894 = vmatmul.mubr.bf16.gmra.mxu0 %v8902_v44  ;;  %v5270_v18 = vpop.f32.mrf.mxu1 }
 0x2d8   : > { %3901 = vmatprep.mubr.bf16.mxu0 %v8063_v8  ;;  %v8188_v37 = vadd.f32 %v5269_v35, %v3502_v10  ;;  %v3505_v39 = vadd.f32 %v8908_v45, %v5160_v56 }
 0x2d9   : > { %v5162_v58 = vpop.f32.mrf.mxu0  ;;  %v5271_v33 = vpop.f32.mrf.mxu1 }
 0x2da   : > { %v5163_v42 = vadd.f32 %v5162_v58, %v5161_v46  ;;  %v5272_v36 = vadd.f32 %v5271_v33, %v5270_v18  ;;  %v8197_v46 = vld [vmem:[#allocation2 + $0x1a8] sm:$0x3]  ;;  %v8202_v33 = vld [vmem:[#allocation2] sm:$0xff] }
 0x2db   : > { %v5164_v9 = vpop.f32.mrf.mxu0  ;;  %v5273_v24 = vpop.f32.mrf.mxu1  ;;  %4055 = vmatmul.mubr.bf16.gmra.mxu1 %v8029_v51  ;;  %v2574_v45 = vrot.slane %v8202_v33, 1 }
 0x2dc   : > { %v8192_v62 = vadd.f32 %v5272_v36, %v3505_v39  ;;  %4062 = vmatprep.mubr.bf16.mxu1 %v8055_v50  ;;  %v3510_v59 = vadd.f32 %v5163_v42, %v8043_v32  ;;  %v2577_v32 = vrot.slane %v8197_v46, 1 }
 0x2dd   : > { %v5165_v48 = vpop.f32.mrf.mxu0  ;;  %v5274_v21 = vpop.f32.mrf.mxu1 }
 0x2de   : > { %8909 = vst [vmem:[#allocation13_spill] sm:$0xff] %v8192_v62  ;;  %v5166_v44 = vadd.f32 %v5165_v48, %v5164_v9  ;;  %v5275_v0 = vadd.f32 %v5274_v21, %v5273_v24  ;;  %v8912_v48 = vld [vmem:[#allocation12_spill] sm:$0xff] }
 0x2df   : > { %v5167_v10 = vpop.f32.mrf.mxu0  ;;  %3902 = vmatmul.mubr.bf16.gmra.mxu0 %v8037_v61  ;;  %v5276_v56 = vpop.f32.mrf.mxu1 }
 0x2e0   : > { %3909 = vmatprep.mubr.bf16.mxu0 %v8079_v15  ;;  %v8200_v35 = vadd.f32 %v5275_v0, %v3510_v59  ;;  %v3513_v42 = vadd.f32 %v5166_v44, %v8061_v26  ;;  %v2578_v0 = vsel %vm422_vm0, %v2574_v45, %v2577_v32  ;;  %v8914_v44 = vld [vmem:[#allocation14_spill] sm:$0xff] }
 0x2e1   : > { %v5168_v51 = vpop.f32.mrf.mxu0  ;;  %v5277_v58 = vpop.f32.mrf.mxu1 }
 0x2e2   : > { %8910 = vst [vmem:[#allocation15_spill] sm:$0xff] %v8200_v35  ;;  %v5169_v18 = vadd.f32 %v5168_v51, %v5167_v10  ;;  %v5278_v39 = vadd.f32 %v5277_v58, %v5276_v56  ;;  %v8913_v10 = vld [vmem:[#allocation9_spill] sm:$0xff]  ;;  %v2640_v58 = vpack.c.bf16 %v2578_v0, %v2574_v45 }
 0x2e3   : > { %v5170_v61 = vpop.f32.mrf.mxu0  ;;  %v5279_v36 = vpop.f32.mrf.mxu1  ;;  %4063 = vmatmul.mubr.bf16.gmra.mxu1 %v8047_v19 }
 0x2e4   : > { %v8208_v9 = vadd.f32 %v5278_v39, %v3513_v42  ;;  %4070 = vmatprep.mubr.bf16.mxu1 %v8912_v48  ;;  %v3518_v51 = vadd.f32 %v8913_v10, %v5169_v18 }
 0x2e5   : > { %v5171_v24 = vpop.f32.mrf.mxu0  ;;  %v5280_v59 = vpop.f32.mrf.mxu1 }
 0x2e6   : > { %8911 = vst [vmem:[#allocation11_spill] sm:$0xff] %v8208_v9  ;;  %v5172_v21 = vadd.f32 %v5171_v24, %v5170_v61  ;;  %v5281_v35 = vadd.f32 %v5280_v59, %v5279_v36 }
 0x2e7   : > { %v5173_v62 = vpop.f32.mrf.mxu0  ;;  %3910 = vmatmul.mubr.bf16.gmra.mxu0 %v8055_v50  ;;  %v5282_v26 = vpop.f32.mrf.mxu1 }
 0x2e8   : > { %3917 = vmatprep.mubr.bf16.mxu0 %v8914_v44  ;;  %v8215_v56 = vadd.f32 %v5281_v35, %v3518_v51  ;;  %v3521_v61 = vadd.f32 %v8052_v1, %v5172_v21  ;;  %v2639_v1 = vpack.c.bf16 %v8202_v33, %v8202_v33 }
 0x2e9   : > { %v5174_v19 = vpop.f32.mrf.mxu0  ;;  %v5283_v39 = vpop.f32.mrf.mxu1 }
 0x2ea   : > { %v5175_v42 = vadd.f32 %v5174_v19, %v5173_v62  ;;  %v5284_v24 = vadd.f32 %v5283_v39, %v5282_v26 }
 0x2eb   : > { %v5176_v9 = vpop.f32.mrf.mxu0  ;;  %v5285_v32 = vpop.f32.mrf.mxu1  ;;  %4071 = vmatmul.mubr.bf16.gmra.mxu1 %v8067_v53 }
 0x2ec   : > { %v8219_v18 = vadd.f32 %v5284_v24, %v3521_v61  ;;  %4078 = vmatprep.mubr.bf16.mxu1 %v2640_v58  ;;  %v3526_v35 = vadd.f32 %v5175_v42, %v8077_v47 }
 0x2ed   : > { %v5177_v36 = vpop.f32.mrf.mxu0  ;;  %v5286_v59 = vpop.f32.mrf.mxu1 }
 0x2ee   : > { %v5178_v50 = vadd.f32 %v5177_v36, %v5176_v9  ;;  %v5287_v10 = vadd.f32 %v5286_v59, %v5285_v32 }
 0x2ef   : > { %v5179_v51 = vpop.f32.mrf.mxu0  ;;  %3918 = vmatmul.mubr.bf16.gmra.mxu0 %v8912_v48  ;;  %v5288_v62 = vpop.f32.mrf.mxu1 }
 0x2f0   : > { %5705 = vmatprep.mubr.bf16.mxu0 %v7762_v29  ;;  %v8226_v45 = vadd.f32 %v5287_v10, %v3526_v35  ;;  %v3529_v9 = vadd.f32 %v5178_v50, %v8087_v13 }
 0x2f1   : > { %v5180_v53 = vpop.f32.mrf.mxu0  ;;  %v5289_v0 = vpop.f32.mrf.mxu1 }
 0x2f2   : > { %v5181_v21 = vadd.f32 %v5180_v53, %v5179_v51  ;;  %v5290_v26 = vadd.f32 %v5289_v0, %v5288_v62 }
 0x2f3   : > { %v5182_v19 = vpop.f32.mrf.mxu0  ;;  %v5291_v47 = vpop.f32.mrf.mxu1  ;;  %4079 = vmatmul.mubr.bf16.gmra.mxu1 %v2639_v1 }
 0x2f4   : > { %v8229_v58 = vadd.f32 %v5290_v26, %v3529_v9  ;;  %v3534_v29 = vadd.f32 %v8070_v49, %v5181_v21 }
 0x2f5   : > { %v5183_v48 = vpop.f32.mrf.mxu0  ;;  %v5292_v39 = vpop.f32.mrf.mxu1 }
 0x2f6   : > { %v5184_v42 = vadd.f32 %v5183_v48, %v5182_v19  ;;  %v5293_v61 = vadd.f32 %v5292_v39, %v5291_v47 }
 0x2f7   : > { %v5185_v24 = vpop.f32.mrf.mxu0  ;;  %5706 = vmatmul.mubr.bf16.vlgmr.msra.gmra.mxu0 %v7802_v28  ;;  %v5294_v32 = vpop.f32.mrf.mxu1 }
 0x2f8   : > { %5709 = vmatprep.mubr.bf16.mxu0 %v7833_v12  ;;  %v8234_v36 = vadd.f32 %v5293_v61, %v3534_v29  ;;  %v3537_v35 = vadd.f32 %v8082_v43, %v5184_v42 }
 0x2f9   : > { %v5186_v13 = vpop.f32.mrf.mxu0  ;;  %v5295_v59 = vpop.f32.mrf.mxu1 }
 0x2fa   : > { %v5187_v50 = vadd.f32 %v5186_v13, %v5185_v24  ;;  %v5296_v10 = vadd.f32 %v5295_v59, %v5294_v32 }
 0x2fb   : > { %v5188_v51 = vpop.f32.mrf.mxu0  ;;  %v5297_v62 = vpop.f32.mrf.mxu1 }
 0x2fc   : > { %v8237_v1 = vadd.f32 %v5296_v10, %v3537_v35  ;;  %v3542_v28 = vadd.f32 %v5187_v50, %v8095_v52 }
 0x2fd   : > { %v5189_v49 = vpop.f32.mrf.mxu0  ;;  %v5298_v21 = vpop.f32.mrf.mxu1 }
 0x2fe   : > { %v5190_v53 = vadd.f32 %v5189_v49, %v5188_v51  ;;  %v5299_v0 = vadd.f32 %v5298_v21, %v5297_v62 }
 0x2ff   : > { %v5191_v9 = vpop.f32.mrf.mxu0  ;;  %5710 = vmatmul.mubr.bf16.gmra.mxu0 %v7866_v11  ;;  %v5300_v12 = vpop.f32.mrf.mxu1 }
 0x300   : > { %5713 = vmatprep.mubr.bf16.mxu0 %v7886_v17  ;;  %v8242_v26 = vadd.f32 %v5299_v0, %v3542_v28  ;;  %v3545_v48 = vadd.f32 %v5190_v53, %v8103_v30 }
 0x301   : > { %v5192_v43 = vpop.f32.mrf.mxu0  ;;  %v5301_v47 = vpop.f32.mrf.mxu1 }
 0x302   : > { %v5193_v19 = vadd.f32 %v5192_v43, %v5191_v9  ;;  %v5302_v42 = vadd.f32 %v5301_v47, %v5300_v12 }
 0x303   : > { %v5194_v39 = vpop.f32.mrf.mxu0  ;;  %v5303_v29 = vpop.f32.mrf.mxu1 }
 0x304   : > { %v8245_v61 = vadd.f32 %v5302_v42, %v3545_v48  ;;  %v3550_v11 = vadd.f32 %v8090_v40, %v5193_v19 }
 0x305   : > { %v5195_v52 = vpop.f32.mrf.mxu0  ;;  %v5304_v32 = vpop.f32.mrf.mxu1 }
 0x306   : > { %v5196_v24 = vadd.f32 %v5195_v52, %v5194_v39  ;;  %v5305_v13 = vadd.f32 %v5304_v32, %v5303_v29 }
 0x307   : > { %v5197_v50 = vpop.f32.mrf.mxu0  ;;  %5714 = vmatmul.mubr.bf16.gmra.mxu0 %v7911_v20  ;;  %v5306_v17 = vpop.f32.mrf.mxu1 }
 0x308   : > { %5717 = vmatprep.mubr.bf16.mxu0 %v7946_v41  ;;  %v8250_v59 = vadd.f32 %v5305_v13, %v3550_v11  ;;  %v3553_v51 = vadd.f32 %v8098_v63, %v5196_v24 }
 0x309   : > { %v5198_v30 = vpop.f32.mrf.mxu0  ;;  %v5307_v10 = vpop.f32.mrf.mxu1 }
 0x30a   : > { %v5199_v35 = vadd.f32 %v5198_v30, %v5197_v50  ;;  %v5308_v62 = vadd.f32 %v5307_v10, %v5306_v17 }
 0x30b   : > { %v5200_v49 = vpop.f32.mrf.mxu0  ;;  %v5309_v53 = vpop.f32.mrf.mxu1 }
 0x30c   : > { %v8253_v21 = vadd.f32 %v5308_v62, %v3553_v51  ;;  %v3558_v20 = vadd.f32 %v5199_v35, %v8111_v57 }
 0x30d   : > { %v5201_v40 = vpop.f32.mrf.mxu0  ;;  %v5310_v0 = vpop.f32.mrf.mxu1 }
 0x30e   : > { %v5202_v28 = vadd.f32 %v5201_v40, %v5200_v49  ;;  %v5311_v9 = vadd.f32 %v5310_v0, %v5309_v53 }
 0x30f   : > { %v5203_v12 = vpop.f32.mrf.mxu0  ;;  %5718 = vmatmul.mubr.bf16.gmra.mxu0 %v7972_v22  ;;  %v5312_v41 = vpop.f32.mrf.mxu1 }
 0x310   : > { %5721 = vmatprep.mubr.bf16.mxu0 %v7991_v34  ;;  %v8258_v43 = vadd.f32 %v5311_v9, %v3558_v20  ;;  %v3561_v48 = vadd.f32 %v5202_v28, %v8119_v16 }
 0x311   : > { %v5204_v63 = vpop.f32.mrf.mxu0  ;;  %v5313_v47 = vpop.f32.mrf.mxu1 }
 0x312   : > { %v5205_v19 = vadd.f32 %v5204_v63, %v5203_v12  ;;  %v5314_v42 = vadd.f32 %v5313_v47, %v5312_v41  ;;  %v2584_v47 = vrot.slane %v8197_v46, 2 }
 0x313   : > { %v5206_v39 = vpop.f32.mrf.mxu0  ;;  %v5315_v29 = vpop.f32.mrf.mxu1 }
 0x314   : > { %v8261_v52 = vadd.f32 %v5314_v42, %v3561_v48  ;;  %v3566_v22 = vadd.f32 %v8106_v23, %v5205_v19 }
 0x315   : > { %v5207_v57 = vpop.f32.mrf.mxu0  ;;  %v5316_v32 = vpop.f32.mrf.mxu1 }
 0x316   : > { %v5208_v24 = vadd.f32 %v5207_v57, %v5206_v39  ;;  %v5317_v11 = vadd.f32 %v5316_v32, %v5315_v29 }
 0x317   : > { %v5209_v13 = vpop.f32.mrf.mxu0  ;;  %5722 = vmatmul.mubr.bf16.gmra.mxu0 %v8009_v5  ;;  %v5318_v34 = vpop.f32.mrf.mxu1 }
 0x318   : > { %5725 = vmatprep.mubr.bf16.mxu0 %v8027_v7  ;;  %v8266_v50 = vadd.f32 %v5317_v11, %v3566_v22  ;;  %v3569_v35 = vadd.f32 %v8114_v27, %v5208_v24 }
 0x319   : > { %v5210_v16 = vpop.f32.mrf.mxu0  ;;  %v5319_v30 = vpop.f32.mrf.mxu1 }
 0x31a   : > { %v5211_v17 = vadd.f32 %v5210_v16, %v5209_v13  ;;  %v5320_v10 = vadd.f32 %v5319_v30, %v5318_v34 }
 0x31b   : > { %v5212_v51 = vpop.f32.mrf.mxu0  ;;  %v5321_v62 = vpop.f32.mrf.mxu1 }
 0x31c   : > { %v8269_v49 = vadd.f32 %v5320_v10, %v3569_v35  ;;  %v3574_v5 = vadd.f32 %v5211_v17, %v8127_v14  ;;  %v2581_v14 = vrot.slane %v8202_v33, 2 }
 0x31d   : > { %v5213_v23 = vpop.f32.mrf.mxu0  ;;  %v5322_v40 = vpop.f32.mrf.mxu1 }
 0x31e   : > { %v5214_v53 = vadd.f32 %v5213_v23, %v5212_v51  ;;  %v5323_v28 = vadd.f32 %v5322_v40, %v5321_v62 }
 0x31f   : > { %v5215_v0 = vpop.f32.mrf.mxu0  ;;  %5726 = vmatmul.mubr.bf16.gmra.mxu0 %v8045_v55  ;;  %v5324_v7 = vpop.f32.mrf.mxu1 }
 0x320   : > { %5729 = vmatprep.mubr.bf16.mxu0 %v8063_v8  ;;  %v8274_v20 = vadd.f32 %v5323_v28, %v3574_v5  ;;  %v3577_v41 = vadd.f32 %v5214_v53, %v8135_v4  ;;  %v2585_v4 = vsel %vm535_vm1, %v2581_v14, %v2584_v47  ;;  %v8915_v28 = vld [vmem:[#allocation21_spill] sm:$0xff] }
 0x321   : > { %v5216_v27 = vpop.f32.mrf.mxu0  ;;  %v5325_v12 = vpop.f32.mrf.mxu1  ;;  %v2641_v17 = vpack.c.bf16 %v2585_v4, %v2581_v14 }
 0x322   : > { %v5217_v9 = vadd.f32 %v5216_v27, %v5215_v0  ;;  %v5326_v63 = vadd.f32 %v5325_v12, %v5324_v7 }
 0x323   : > { %v5218_v19 = vpop.f32.mrf.mxu0  ;;  %v5327_v48 = vpop.f32.mrf.mxu1 }
 0x324   : > { %v8279_v42 = vadd.f32 %v5326_v63, %v3577_v41  ;;  %v3582_v8 = vadd.f32 %v8122_v31, %v5217_v9 }
 0x325   : > { %v5219_v55 = vpop.f32.mrf.mxu0  ;;  %v5328_v29 = vpop.f32.mrf.mxu1 }
 0x326   : > { %v5220_v39 = vadd.f32 %v5219_v55, %v5218_v19  ;;  %v5329_v57 = vadd.f32 %v5328_v29, %v5327_v48 }
 0x327   : > { %v5221_v24 = vpop.f32.mrf.mxu0  ;;  %5730 = vmatmul.mubr.bf16.gmra.mxu0 %v8079_v15  ;;  %v5330_v32 = vpop.f32.mrf.mxu1 }
 0x328   : > { %5733 = vmatprep.mubr.bf16.mxu0 %v8914_v44  ;;  %v8285_v46 = vadd.f32 %v5329_v57, %v3582_v8  ;;  %v3585_v13 = vadd.f32 %v8130_v38, %v5220_v39 }
 0x329   : > { %v5222_v22 = vpop.f32.mrf.mxu0  ;;  %v5331_v11 = vpop.f32.mrf.mxu1 }
 0x32a   : > { %v5223_v33 = vadd.f32 %v5222_v22, %v5221_v24  ;;  %v5332_v34 = vadd.f32 %v5331_v11, %v5330_v32  ;;  %v8918_v24 = vld [vmem:[#allocation19_spill] sm:$0xff] }
 0x32b   : > { %v5224_v16 = vpop.f32.mrf.mxu0  ;;  %v5333_v31 = vpop.f32.mrf.mxu1 }
 0x32c   : > { %v8288_v30 = vadd.f32 %v5332_v34, %v3585_v13  ;;  %v3590_v44 = vadd.f32 %v5223_v33, %v8143_v6  ;;  %v8916_v6 = vld [vmem:[#allocation18_spill] sm:$0xff] }
 0x32d   : > { %v5225_v35 = vpop.f32.mrf.mxu0  ;;  %v5334_v10 = vpop.f32.mrf.mxu1 }
 0x32e   : > { %v5226_v15 = vadd.f32 %v5225_v35, %v5224_v16  ;;  %v5335_v51 = vadd.f32 %v5334_v10, %v5333_v31 }
 0x32f   : > { %v5227_v62 = vpop.f32.mrf.mxu0  ;;  %5734 = vmatmul.mubr.bf16.gmra.mxu0 %v2641_v17  ;;  %v5336_v23 = vpop.f32.mrf.mxu1 }
 0x330   : > { %v8291_v53 = vadd.f32 %v5335_v51, %v3590_v44  ;;  %v3593_v0 = vadd.f32 %v5226_v15, %v8915_v28 }
 0x331   : > { %v5228_v40 = vpop.f32.mrf.mxu0  ;;  %v5337_v38 = vpop.f32.mrf.mxu1 }
 0x332   : > { %v5229_v5 = vadd.f32 %v5228_v40, %v5227_v62  ;;  %v5338_v7 = vadd.f32 %v5337_v38, %v5336_v23 }
 0x333   : > { %v5230_v27 = vpop.f32.mrf.mxu0  ;;  %v5339_v9 = vpop.f32.mrf.mxu1 }
 0x334   : > { %v8294_v12 = vadd.f32 %v5338_v7, %v3593_v0  ;;  %v3598_v47 = vadd.f32 %v8916_v6, %v5229_v5 }
 0x335   : > { %v5231_v41 = vpop.f32.mrf.mxu0  ;;  %v5340_v19 = vpop.f32.mrf.mxu1 }
 0x336   : > { %v5232_v63 = vadd.f32 %v5231_v41, %v5230_v27  ;;  %v5341_v48 = vadd.f32 %v5340_v19, %v5339_v9 }
 0x337   : > { %v5361_v14 = vpop.f32.mrf.mxu0  ;;  %v5342_v55 = vpop.f32.mrf.mxu1 }
 0x338   : > { %v8297_v39 = vadd.f32 %v5341_v48, %v3598_v47  ;;  %v3601_v32 = vadd.f32 %v8918_v24, %v5232_v63  ;;  %v8920_v47 = vld [vmem:[#allocation20_spill] sm:$0xff] }
 0x339   : > { %v5362_v29 = vpop.f32.mrf.mxu0  ;;  %v5343_v57 = vpop.f32.mrf.mxu1 }
 0x33a   : > { %8917 = vst [vmem:[#allocation17_spill] sm:$0xff] %v8297_v39  ;;  %v5363_v8 = vadd.f32 %v5362_v29, %v5361_v14  ;;  %v5344_v4 = vadd.f32 %v5343_v57, %v5342_v55 }
 0x33b   : > { %v5364_v22 = vpop.f32.mrf.mxu0  ;;  %v5473_v11 = vpop.f32.mrf.mxu1 }
 0x33c   : > { %v3800_v33 = vadd.f32 %v5363_v8, %v8158_v60  ;;  %v8301_v13 = vadd.f32 %v5344_v4, %v3601_v32 }
 0x33d   : > { %v5365_v34 = vpop.f32.mrf.mxu0  ;;  %v5474_v17 = vpop.f32.mrf.mxu1 }
 0x33e   : > { %8919 = vst [vmem:[#allocation10_spill] sm:$0xff] %v8301_v13  ;;  %v5366_v16 = vadd.f32 %v5365_v34, %v5364_v22  ;;  %v5475_v31 = vadd.f32 %v5474_v17, %v5473_v11 }
 0x33f   : > { %v5367_v35 = vpop.f32.mrf.mxu0  ;;  %v5476_v10 = vpop.f32.mrf.mxu1 }
 0x340   : > { %v3803_v15 = vadd.f32 %v5366_v16, %v8162_v54  ;;  %v8304_v51 = vadd.f32 %v5475_v31, %v3800_v33 }
 0x341   : > { %v5368_v44 = vpop.f32.mrf.mxu0  ;;  %v5477_v23 = vpop.f32.mrf.mxu1 }
 0x342   : > { %v5369_v62 = vadd.f32 %v5368_v44, %v5367_v35  ;;  %v5478_v40 = vadd.f32 %v5477_v23, %v5476_v10 }
 0x343   : > { %v5370_v5 = vpop.f32.mrf.mxu0  ;;  %v8309_v38 = vpop.f32.mrf.mxu1 }
 0x344   : > { %v8307_v60 = vadd.f32 %v5369_v62, %v8168_v2  ;;  %v8311_v0 = vadd.f32 %v5478_v40, %v3803_v15  ;;  %v8921_v15 = vld [vmem:[#allocation13_spill] sm:$0xff] }
 0x345   : > { %v5371_v28 = vpop.f32.mrf.mxu0  ;;  %v8313_v27 = vpop.f32.mrf.mxu1 }
 0x346   : > { %v5372_v7 = vadd.f32 %v5371_v28, %v5370_v5  ;;  %v8922_v5 = vld [vmem:[#allocation15_spill] sm:$0xff] }
 0x347   : > { %v5373_v54 = vpop.f32.mrf.mxu0  ;;  %v8318_v41 = vpop.f32.mrf.mxu1 }
 0x348   : > { %v8316_v9 = vadd.f32 %v5372_v7, %v8172_v3 }
 0x349   : > { %v5374_v63 = vpop.f32.mrf.mxu0  ;;  %v8320_v6 = vpop.f32.mrf.mxu1 }
 0x34a   : > { %v5375_v19 = vadd.f32 %v5374_v63, %v5373_v54 }
 0x34b   : > { %v5376_v2 = vpop.f32.mrf.mxu0  ;;  %v8325_v14 = vpop.f32.mrf.mxu1 }
 0x34c   : > { %v8323_v48 = vadd.f32 %v5375_v19, %v8920_v47 }
 0x34d   : > { %v5377_v55 = vpop.f32.mrf.mxu0  ;;  %v8327_v8 = vpop.f32.mrf.mxu1 }
 0x34e   : > { %v5378_v29 = vadd.f32 %v5377_v55, %v5376_v2  ;;  %v8923_v2 = vld [vmem:[#allocation11_spill] sm:$0xff] }
 0x34f   : > { %v5379_v57 = vpop.f32.mrf.mxu0  ;;  %v8332_v24 = vpop.f32.mrf.mxu1 }
 0x350   : > { %v8330_v3 = vadd.f32 %v5378_v29, %v8182_v25 }
 0x351   : > { %v5380_v32 = vpop.f32.mrf.mxu0  ;;  %v8334_v22 = vpop.f32.mrf.mxu1 }
 0x352   : > { %v5381_v4 = vadd.f32 %v5380_v32, %v5379_v57 }
 0x353   : > { %v5382_v33 = vpop.f32.mrf.mxu0  ;;  %v8339_v34 = vpop.f32.mrf.mxu1 }
 0x354   : > { %v8337_v11 = vadd.f32 %v5381_v4, %v8188_v37 }
 0x355   : > { %v5383_v16 = vpop.f32.mrf.mxu0  ;;  %v8341_v31 = vpop.f32.mrf.mxu1 }
 0x356   : > { %v5384_v17 = vadd.f32 %v5383_v16, %v5382_v33 }
 0x357   : > { %v5385_v35 = vpop.f32.mrf.mxu0  ;;  %v8346_v10 = vpop.f32.mrf.mxu1 }
 0x358   : > { %v8344_v25 = vadd.f32 %v5384_v17, %v8921_v15 }
 0x359   : > { %v5386_v44 = vpop.f32.mrf.mxu0  ;;  %v8348_v23 = vpop.f32.mrf.mxu1 }
 0x35a   : > { %v5387_v62 = vadd.f32 %v5386_v44, %v5385_v35 }
 0x35b   : > { %v5388_v40 = vpop.f32.mrf.mxu0  ;;  %v8353_v28 = vpop.f32.mrf.mxu1 }
 0x35c   : > { %v8351_v37 = vadd.f32 %v5387_v62, %v8922_v5 }
 0x35d   : > { %v5389_v7 = vpop.f32.mrf.mxu0  ;;  %v8355_v63 = vpop.f32.mrf.mxu1 }
 0x35e   : > { %v5390_v54 = vadd.f32 %v5389_v7, %v5388_v40 }
 0x35f   : > { %v5391_v19 = vpop.f32.mrf.mxu0  ;;  %v8360_v55 = vpop.f32.mrf.mxu1 }
 0x360   : > { %v8358_v47 = vadd.f32 %v5390_v54, %v8923_v2 }
 0x361   : > { %v5392_v29 = vpop.f32.mrf.mxu0  ;;  %v8362_v32 = vpop.f32.mrf.mxu1 }
 0x362   : > { %v5393_v57 = vadd.f32 %v5392_v29, %v5391_v19 }
 0x363   : > { %v5394_v4 = vpop.f32.mrf.mxu0  ;;  %v8367_v16 = vpop.f32.mrf.mxu1 }
 0x364   : > { %v8365_v33 = vadd.f32 %v5393_v57, %v8215_v56 }
 0x365   : > { %v5395_v17 = vpop.f32.mrf.mxu0  ;;  %v8369_v15 = vpop.f32.mrf.mxu1 }
 0x366   : > { %v5396_v35 = vadd.f32 %v5395_v17, %v5394_v4 }
 0x367   : > { %v5397_v44 = vpop.f32.mrf.mxu0  ;;  %v8374_v40 = vpop.f32.mrf.mxu1 }
 0x368   : > { %v8372_v62 = vadd.f32 %v5396_v35, %v8219_v18 }
 0x369   : > { %v5398_v5 = vpop.f32.mrf.mxu0  ;;  %v8376_v54 = vpop.f32.mrf.mxu1 }
 0x36a   : > { %v5399_v7 = vadd.f32 %v5398_v5, %v5397_v44 }
 0x36b   : > { %v5400_v19 = vpop.f32.mrf.mxu0  ;;  %v8381_v2 = vpop.f32.mrf.mxu1 }
 0x36c   : > { %v8379_v56 = vadd.f32 %v5399_v7, %v8226_v45 }
 0x36d   : > { %v5401_v29 = vpop.f32.mrf.mxu0  ;;  %v8383_v4 = vpop.f32.mrf.mxu1 }
 0x36e   : > { %8924 = vst [vmem:[#allocation16_spill] sm:$0xff] %v8379_v56  ;;  %v5402_v57 = vadd.f32 %v5401_v29, %v5400_v19  ;;  %8925 = vst [vmem:[#allocation12_spill] sm:$0xff] %v8383_v4 }
 0x36f   : > { %v5403_v17 = vpop.f32.mrf.mxu0  ;;  %v8388_v35 = vpop.f32.mrf.mxu1 }
 0x370   : > { %v8386_v18 = vadd.f32 %v5402_v57, %v8229_v58  ;;  %8927 = vst [vmem:[#allocation14_spill] sm:$0xff] %v8388_v35 }
 0x371   : > { %v5404_v13 = vpop.f32.mrf.mxu0  ;;  %v8390_v5 = vpop.f32.mrf.mxu1 }
 0x372   : > { %8926 = vst [vmem:[#allocation9_spill] sm:$0xff] %v8386_v18  ;;  %v5405_v44 = vadd.f32 %v5404_v13, %v5403_v17  ;;  %8928 = vst [vmem:[#allocation21_spill] sm:$0xff] %v8390_v5 }
 0x373   : > { %v5406_v39 = vpop.f32.mrf.mxu0  ;;  %v8395_v7 = vpop.f32.mrf.mxu1 }
 0x374   : > { %v8393_v45 = vadd.f32 %v5405_v44, %v8234_v36 }
 0x375   : > { %v5407_v56 = vpop.f32.mrf.mxu0  ;;  %v8397_v29 = vpop.f32.mrf.mxu1 }
 0x376   : > { %8929 = vst [vmem:[#allocation18_spill] sm:$0xff] %v8393_v45  ;;  %v5408_v19 = vadd.f32 %v5407_v56, %v5406_v39 }
 0x377   : > { %v5409_v4 = vpop.f32.mrf.mxu0  ;;  %v8402_v57 = vpop.f32.mrf.mxu1 }
 0x378   : > { %v8400_v58 = vadd.f32 %v5408_v19, %v8237_v1 }
 0x379   : > { %v5410_v18 = vpop.f32.mrf.mxu0  ;;  %v8404_v17 = vpop.f32.mrf.mxu1 }
 0x37a   : > { %8930 = vst [vmem:[#allocation19_spill] sm:$0xff] %v8400_v58  ;;  %v5411_v13 = vadd.f32 %v5410_v18, %v5409_v4  ;;  %8931 = vst [vmem:[#allocation20_spill] sm:$0xff] %v8404_v17 }
 0x37b   : > { %v5412_v5 = vpop.f32.mrf.mxu0  ;;  %v8409_v44 = vpop.f32.mrf.mxu1 }
 0x37c   : > { %v8407_v36 = vadd.f32 %v5411_v13, %v8242_v26 }
 0x37d   : > { %v5413_v35 = vpop.f32.mrf.mxu0  ;;  %v8411_v56 = vpop.f32.mrf.mxu1 }
 0x37e   : > { %8932 = vst [vmem:[#allocation13_spill] sm:$0xff] %v8407_v36  ;;  %v5414_v39 = vadd.f32 %v5413_v35, %v5412_v5  ;;  %8933 = vst [vmem:[#allocation15_spill] sm:$0xff] %v8411_v56 }
 0x37f   : > { %v5415_v45 = vpop.f32.mrf.mxu0  ;;  %v8416_v19 = vpop.f32.mrf.mxu1 }
 0x380   : > { %v8414_v1 = vadd.f32 %v5414_v39, %v8245_v61  ;;  %8935 = vst [vmem:[#allocation22_spill] sm:$0xff] %v8416_v19 }
 0x381   : > { %v5416_v58 = vpop.f32.mrf.mxu0  ;;  %v8418_v18 = vpop.f32.mrf.mxu1 }
 0x382   : > { %8934 = vst [vmem:[#allocation11_spill] sm:$0xff] %v8414_v1  ;;  %v5417_v4 = vadd.f32 %v5416_v58, %v5415_v45  ;;  %8936 = vst [vmem:[#allocation23_spill] sm:$0xff] %v8418_v18 }
 0x383   : > { %v5418_v17 = vpop.f32.mrf.mxu0  ;;  %v8423_v13 = vpop.f32.mrf.mxu1 }
 0x384   : > { %v8421_v26 = vadd.f32 %v5417_v4, %v8250_v59 }
 0x385   : > { %v5419_v36 = vpop.f32.mrf.mxu0  ;;  %v8425_v5 = vpop.f32.mrf.mxu1 }
 0x386   : > { %8937 = vst [vmem:[#allocation24_spill] sm:$0xff] %v8421_v26  ;;  %v5420_v35 = vadd.f32 %v5419_v36, %v5418_v17 }
 0x387   : > { %v5421_v56 = vpop.f32.mrf.mxu0  ;;  %v8430_v39 = vpop.f32.mrf.mxu1 }
 0x388   : > { %v8428_v61 = vadd.f32 %v5420_v35, %v8253_v21  ;;  %8939 = vst [vmem:[#allocation26_spill] sm:$0xff] %v8430_v39 }
 0x389   : > { %v5422_v1 = vpop.f32.mrf.mxu0  ;;  %v8432_v58 = vpop.f32.mrf.mxu1 }
 0x38a   : > { %8938 = vst [vmem:[#allocation25_spill] sm:$0xff] %v8428_v61  ;;  %v5423_v45 = vadd.f32 %v5422_v1, %v5421_v56  ;;  %8940 = vst [vmem:[#allocation27_spill] sm:$0xff] %v8432_v58 }
 0x38b   : > { %v5424_v18 = vpop.f32.mrf.mxu0  ;;  %v8437_v26 = vpop.f32.mrf.mxu1 }
 0x38c   : > { %v8435_v59 = vadd.f32 %v5423_v45, %v8258_v43 }
 0x38d   : > { %v5425_v4 = vpop.f32.mrf.mxu0  ;;  %v8442_v61 = vpop.f32.mrf.mxu1 }
 0x38e   : > { %8941 = vst [vmem:[#allocation28_spill] sm:$0xff] %v8435_v59  ;;  %v5426_v19 = vadd.f32 %v5425_v4, %v5424_v18 }
 0x38f   : > { %v5427_v17 = vpop.f32.mrf.mxu0  ;;  %v8447_v43 = vpop.f32.mrf.mxu1 }
 0x390   : > { %v8440_v36 = vadd.f32 %v5426_v19, %v8261_v52  ;;  %8943 = vst [vmem:[#allocation30_spill] sm:$0xff] %v8447_v43 }
 0x391   : > { %v5428_v21 = vpop.f32.mrf.mxu0  ;;  %v8452_v52 = vpop.f32.mrf.mxu1 }
 0x392   : > { %8942 = vst [vmem:[#allocation29_spill] sm:$0xff] %v8440_v36  ;;  %v5429_v35 = vadd.f32 %v5428_v21, %v5427_v17 }
 0x393   : > { %v5430_v39 = vpop.f32.mrf.mxu0 }
 0x394   : > { %v8445_v56 = vadd.f32 %v5429_v35, %v8266_v50  ;;  %v8457_v50 = vpop.f32.mrf.mxu1 }
 0x395   : > { %v5431_v1 = vpop.f32.mrf.mxu0 }
 0x396   : > { %v5432_v58 = vadd.f32 %v5431_v1, %v5430_v39 }
 0x397   : > { %v5433_v45 = vpop.f32.mrf.mxu0 }
 0x398   : > { %v8450_v18 = vadd.f32 %v5432_v58, %v8269_v49  ;;  %v8462_v49 = vpop.f32.mrf.mxu1 }
 0x399   : > { %v5434_v4 = vpop.f32.mrf.mxu0 }
 0x39a   : > { %8944 = vst [vmem:[#allocation31_spill] sm:$0xff] %v8450_v18  ;;  %v5435_v59 = vadd.f32 %v5434_v4, %v5433_v45 }
 0x39b   : > { %v5436_v19 = vpop.f32.mrf.mxu0 }
 0x39c   : > { %v8455_v17 = vadd.f32 %v5435_v59, %v8274_v20  ;;  %v8467_v20 = vpop.f32.mrf.mxu1 }
 0x39d   : > { %v5437_v21 = vpop.f32.mrf.mxu0 }
 0x39e   : > { %v5438_v36 = vadd.f32 %v5437_v21, %v5436_v19 }
 0x39f   : > { %v5439_v35 = vpop.f32.mrf.mxu0 }
 0x3a0   : > { %v8460_v39 = vadd.f32 %v5438_v36, %v8279_v42  ;;  %v8472_v36 = vpop.f32.mrf.mxu1 }
 0x3a1   : > { %v5440_v1 = vpop.f32.mrf.mxu0 }
 0x3a2   : > { %8945 = vst [vmem:[#allocation32_spill] sm:$0xff] %v8460_v39  ;;  %v5441_v43 = vadd.f32 %v5440_v1, %v5439_v35 }
 0x3a3   : > { %v5442_v58 = vpop.f32.mrf.mxu0 }
 0x3a4   : > { %v8465_v45 = vadd.f32 %v5441_v43, %v8285_v46  ;;  %v8477_v43 = vpop.f32.mrf.mxu1 }
 0x3a5   : > { %v5443_v4 = vpop.f32.mrf.mxu0 }
 0x3a6   : > { %v5444_v18 = vadd.f32 %v5443_v4, %v5442_v58 }
 0x3a7   : > { %v5445_v59 = vpop.f32.mrf.mxu0 }
 0x3a8   : > { %v8470_v19 = vadd.f32 %v5444_v18, %v8288_v30  ;;  %v5481_v18 = vadd.f32 %v8313_v27, %v8309_v38  ;;  %v5493_v27 = vadd.f32 %v8341_v31, %v8339_v34  ;;  %v5496_v31 = vadd.f32 %v8348_v23, %v8346_v10 }
 0x3a9   : > { %v5446_v21 = vpop.f32.mrf.mxu0 }
 0x3aa   : > { %8946 = vst [vmem:[#allocation33_spill] sm:$0xff] %v8470_v19  ;;  %v5447_v42 = vadd.f32 %v5446_v21, %v5445_v59  ;;  %v8488_v59 = vpop.f32.mrf.mxu1  ;;  %v3985_v34 = vadd.f32 %v5493_v27, %v8337_v11 }
 0x3ab   : > { %v5448_v35 = vpop.f32.mrf.mxu0 }
 0x3ac   : > { %v8475_v1 = vadd.f32 %v5447_v42, %v8291_v53  ;;  %v3969_v42 = vadd.f32 %v5481_v18, %v8307_v60 }
 0x3ad   : > { %v5449_v39 = vpop.f32.mrf.mxu0 }
 0x3ae   : > { %8947 = vst [vmem:[#allocation34_spill] sm:$0xff] %v8475_v1  ;;  %v5450_v46 = vadd.f32 %v5449_v39, %v5448_v35  ;;  %v5484_v39 = vadd.f32 %v8320_v6, %v8318_v41  ;;  %v8498_v35 = vpop.f32.mrf.mxu1 }
 0x3af   : > { %v8479_v58 = vpop.f32.mrf.mxu0 }
 0x3b0   : > { %v8482_v4 = vadd.f32 %v5450_v46, %v8294_v12  ;;  %v8503_v46 = vld [vmem:[%s8734_s5] ss:$0 sm:$0xff]  ;;  %v3972_v60 = vadd.f32 %v5484_v39, %v8316_v9  ;;  %v8512_v6 = vpop.f32.mrf.mxu1 }
 0x3b1   : > { %v8484_v30 = vpop.f32.mrf.mxu0 }
 0x3b2   : > { %8948 = vst [vmem:[#allocation35_spill] sm:$0xff] %v8482_v4 }
 0x3b3   : > { %v8490_v21 = vpop.f32.mrf.mxu0 }
 0x3b4   : > { %8949 = vst [vmem:[#allocation36_spill] sm:$0xff] %v8490_v21 }
 0x3b5   : > { %v8492_v53 = vpop.f32.mrf.mxu0 }
 0x3b6   : > { %8950 = vst [vmem:[#allocation37_spill] sm:$0xff] %v8492_v53  ;;  %v5487_v53 = vadd.f32 %v8327_v8, %v8325_v14  ;;  %v5490_v8 = vadd.f32 %v8334_v22, %v8332_v24 }
 0x3b7   : > { %v5707_v12 = vpop.f32.mrf.mxu0 }
 0x3b8   : > { %v4130_v38 = vadd.f32 %v5707_v12, %v3969_v42  ;;  %v3977_v39 = vadd.f32 %v5487_v53, %v8323_v48  ;;  %v5499_v48 = vadd.f32 %v8355_v63, %v8353_v28  ;;  %v5502_v28 = vadd.f32 %v8362_v32, %v8360_v55 }
 0x3b9   : > { %v4121_v4 = vpop.f32.mrf.mxu0 }
 0x3ba   : > { %v4257_v1 = vadd.f32 %v8503_v46, %v4130_v38  ;;  %v4122_v41 = vadd.f32 %v4121_v4, %v8304_v51  ;;  %v3988_v38 = vadd.f32 %v5496_v31, %v8344_v25  ;;  %v5508_v25 = vadd.f32 %v8376_v54, %v8374_v40 }
 0x3bb   : > { %v5708_v18 = vpop.f32.mrf.mxu0  ;;  %v5517_v40 = vadd.f32 %v8397_v29, %v8395_v7 }
 0x3bc   : > { %v4289_v21 = vmax.f32 %v4257_v1, 0.0  ;;  %v4255_v19 = vadd.f32 %v8503_v46, %v4122_v41  ;;  %v4133_v42 = vadd.f32 %v5708_v18, %v3972_v60  ;;  %v8527_v1 = vpop.f32.mrf.mxu1  ;;  %v3980_v60 = vadd.f32 %v5490_v8, %v8330_v3 }
 0x3bd   : > { %v4124_v12 = vpop.f32.mrf.mxu0 }
 0x3be   : > { %4321 = vst [vmem:[%s8520_s17 + $0x10] sm:$0xff] %v4289_v21  ;;  %v4287_v51 = vmax.f32 %v4255_v19, 0.0  ;;  %v4258_v9 = vadd.f32 %v8503_v46, %v4133_v42  ;;  %v4125_v14 = vadd.f32 %v4124_v12, %v8311_v0  ;;  %v5505_v19 = vadd.f32 %v8369_v15, %v8367_v16  ;;  %v8537_v27 = vpop.f32.mrf.mxu1 }
 0x3bf   : > { %v5711_v11 = vpop.f32.mrf.mxu0 }
 0x3c0   : > { %4319 = vst [vmem:[%s8520_s17] sm:$0xff] %v4287_v51  ;;  %v4290_v10 = vmax.f32 %v4258_v9, 0.0  ;;  %v4256_v23 = vadd.f32 %v8503_v46, %v4125_v14  ;;  %v4146_v4 = vadd.f32 %v5711_v11, %v3985_v34  ;;  %v4001_v42 = vadd.f32 %v5505_v19, %v8365_v33  ;;  %v8551_v63 = vpop.f32.mrf.mxu1 }
 0x3c1   : > { %v4137_v21 = vpop.f32.mrf.mxu0  ;;  %v3993_v14 = vadd.f32 %v5499_v48, %v8351_v37  ;;  %v4004_v11 = vadd.f32 %v5508_v25, %v8372_v62  ;;  %v8955_v48 = vld [vmem:[#allocation21_spill] sm:$0xff]  ;;  %v8956_v25 = vld [vmem:[#allocation16_spill] sm:$0xff] }
 0x3c2   : > { %4322 = vst [vmem:[%s8520_s17 + $0x18] sm:$0xff] %v4290_v10  ;;  %v4288_v0 = vmax.f32 %v4256_v23, 0.0  ;;  %v4261_v24 = vadd.f32 %v8503_v46, %v4146_v4  ;;  %v4138_v22 = vadd.f32 %v4137_v21, %v3977_v39  ;;  %v8561_v10 = vpop.f32.mrf.mxu1  ;;  %v3996_v4 = vadd.f32 %v5502_v28, %v8358_v47  ;;  %v8951_v39 = vld [vmem:[#allocation12_spill] sm:$0xff] }
 0x3c3   : > { %v5712_v41 = vpop.f32.mrf.mxu0  ;;  %v5511_v37 = vadd.f32 %v8951_v39, %v8381_v2  ;;  %v8961_v39 = vld [vmem:[#allocation26_spill] sm:$0xff] }
 0x3c4   : > { %4320 = vst [vmem:[%s8520_s17 + $0x8] sm:$0xff] %v4288_v0  ;;  %v4293_v16 = vmax.f32 %v4261_v24, 0.0  ;;  %v4259_v15 = vadd.f32 %v8503_v46, %v4138_v22  ;;  %v4149_v53 = vadd.f32 %v5712_v41, %v3988_v38  ;;  %v8952_v0 = vld [vmem:[#allocation18_spill] sm:$0xff]  ;;  %v8953_v22 = vld [vmem:[#allocation20_spill] sm:$0xff] }
 0x3c5   : > { %v4140_v18 = vpop.f32.mrf.mxu0  ;;  %v4017_v24 = vadd.f32 %v5517_v40, %v8952_v0  ;;  %v5520_v62 = vadd.f32 %v8953_v22, %v8402_v57  ;;  %v5529_v57 = vadd.f32 %v8425_v5, %v8423_v13  ;;  %v8958_v40 = vld [vmem:[#allocation9_spill] sm:$0xff]  ;;  %v8963_v0 = vld [vmem:[#allocation22_spill] sm:$0xff] }
 0x3c6   : > { %4325 = vst [vmem:[%s8520_s17 + $0x30] sm:$0xff] %v4293_v16  ;;  %v4291_v12 = vmax.f32 %v4259_v15, 0.0  ;;  %v4262_v3 = vadd.f32 %v8503_v46, %v4149_v53  ;;  %v4141_v34 = vadd.f32 %v4140_v18, %v3980_v60  ;;  %v8954_v60 = vld [vmem:[#allocation14_spill] sm:$0xff]  ;;  %v8575_v16 = vpop.f32.mrf.mxu1 }
 0x3c7   : > { %v5715_v31 = vpop.f32.mrf.mxu0  ;;  %v5514_v2 = vadd.f32 %v8955_v48, %v8954_v60  ;;  %v8965_v60 = vld [vmem:[#allocation13_spill] sm:$0xff] }
 0x3c8   : > { %4323 = vst [vmem:[%s8520_s17 + $0x20] sm:$0xff] %v4291_v12  ;;  %v4294_v51 = vmax.f32 %v4262_v3, 0.0  ;;  %v4260_v33 = vadd.f32 %v8503_v46, %v4141_v34  ;;  %v4162_v9 = vadd.f32 %v5715_v31, %v4001_v42  ;;  %v4009_v12 = vadd.f32 %v5511_v37, %v8956_v25  ;;  %v8962_v37 = vld [vmem:[#allocation27_spill] sm:$0xff]  ;;  %v8966_v25 = vld [vmem:[#allocation25_spill] sm:$0xff] }
 0x3c9   : > { %v4153_v54 = vpop.f32.mrf.mxu0 }
 0x3ca   : > { %4326 = vst [vmem:[%s8520_s17 + $0x38] sm:$0xff] %v4294_v51  ;;  %v4292_v8 = vmax.f32 %v4260_v33, 0.0  ;;  %v4265_v55 = vadd.f32 %v8503_v46, %v4162_v9  ;;  %v4154_v32 = vadd.f32 %v4153_v54, %v3993_v14  ;;  %v8957_v51 = vld [vmem:[#allocation19_spill] sm:$0xff]  ;;  %v8585_v9 = vpop.f32.mrf.mxu1  ;;  %v4012_v54 = vadd.f32 %v5514_v2, %v8958_v40 }
 0x3cb   : > { %v5716_v23 = vpop.f32.mrf.mxu0  ;;  %v4020_v33 = vadd.f32 %v5520_v62, %v8957_v51  ;;  %v5541_v2 = vadd.f32 %v8462_v49, %v8457_v50  ;;  %v5544_v40 = vadd.f32 %v8472_v36, %v8467_v20  ;;  %v5553_v20 = vadd.f32 %v8537_v27, %v8527_v1 }
 0x3cc   : > { %4324 = vst [vmem:[%s8520_s17 + $0x28] sm:$0xff] %v4292_v8  ;;  %v4297_v7 = vmax.f32 %v4265_v55, 0.0  ;;  %v4263_v29 = vadd.f32 %v8503_v46, %v4154_v32  ;;  %v4165_v19 = vadd.f32 %v5716_v23, %v4004_v11  ;;  %v8959_v8 = vld [vmem:[#allocation15_spill] sm:$0xff]  ;;  %v8960_v23 = vld [vmem:[#allocation24_spill] sm:$0xff]  ;;  %v8599_v22 = vpop.f32.mrf.mxu1 }
 0x3cd   : > { %v4156_v21 = vpop.f32.mrf.mxu0  ;;  %v5523_v55 = vadd.f32 %v8959_v8, %v8409_v44 }
 0x3ce   : > { %4329 = vst [vmem:[%s8520_s17 + $0x50] sm:$0xff] %v4297_v7  ;;  %v4295_v38 = vmax.f32 %v4263_v29, 0.0  ;;  %v4266_v47 = vadd.f32 %v8503_v46, %v4165_v19  ;;  %v4157_v41 = vadd.f32 %v4156_v21, %v3996_v4  ;;  %v4033_v4 = vadd.f32 %v5529_v57, %v8960_v23  ;;  %v8609_v57 = vpop.f32.mrf.mxu1  ;;  %v8969_v23 = vld [vmem:[#allocation28_spill] sm:$0xff] }
 0x3cf   : > { %v5719_v15 = vpop.f32.mrf.mxu0  ;;  %v5532_v7 = vadd.f32 %v8962_v37, %v8961_v39  ;;  %v4025_v48 = vadd.f32 %v5523_v55, %v8965_v60 }
 0x3d0   : > { %4327 = vst [vmem:[%s8520_s17 + $0x40] sm:$0xff] %v4295_v38  ;;  %v4298_v53 = vmax.f32 %v4266_v47, 0.0  ;;  %v4264_v18 = vadd.f32 %v8503_v46, %v4157_v41  ;;  %v4178_v42 = vadd.f32 %v5719_v15, %v4017_v24  ;;  %v8964_v24 = vld [vmem:[#allocation23_spill] sm:$0xff] }
 0x3d1   : > { %v4169_v3 = vpop.f32.mrf.mxu0  ;;  %v5526_v44 = vadd.f32 %v8964_v24, %v8963_v0  ;;  %v8971_v0 = vld [vmem:[#allocation29_spill] sm:$0xff] }
 0x3d2   : > { %4330 = vst [vmem:[%s8520_s17 + $0x58] sm:$0xff] %v4298_v53  ;;  %v4296_v34 = vmax.f32 %v4264_v18, 0.0  ;;  %v4269_v28 = vadd.f32 %v8503_v46, %v4178_v42  ;;  %v4170_v31 = vadd.f32 %v4169_v3, %v4009_v12  ;;  %v4036_v12 = vadd.f32 %v5532_v7, %v8966_v25  ;;  %v8970_v7 = vld [vmem:[#allocation31_spill] sm:$0xff] }
 0x3d3   : > { %v5720_v14 = vpop.f32.mrf.mxu0 }
 0x3d4   : > { %4328 = vst [vmem:[%s8520_s17 + $0x48] sm:$0xff] %v4296_v34  ;;  %v4301_v13 = vmax.f32 %v4269_v28, 0.0  ;;  %v4267_v5 = vadd.f32 %v8503_v46, %v4170_v31  ;;  %v4181_v32 = vadd.f32 %v5720_v14, %v4020_v33  ;;  %v8967_v34 = vld [vmem:[#allocation11_spill] sm:$0xff]  ;;  %v5535_v31 = vadd.f32 %v8442_v61, %v8437_v26  ;;  %v5563_v61 = vpop.f32.mrf.mxu1 }
 0x3d5   : > { %v4172_v11 = vpop.f32.mrf.mxu0  ;;  %v4028_v28 = vadd.f32 %v5526_v44, %v8967_v34  ;;  %v4049_v14 = vadd.f32 %v5541_v2, %v8445_v56  ;;  %v5547_v44 = vadd.f32 %v8488_v59, %v8477_v43  ;;  %v5550_v43 = vadd.f32 %v8512_v6, %v8498_v35  ;;  %v8972_v6 = vld [vmem:[#allocation33_spill] sm:$0xff] }
 0x3d6   : > { %4333 = vst [vmem:[%s8520_s17 + $0x70] sm:$0xff] %v4301_v13  ;;  %v4299_v29 = vmax.f32 %v4267_v5, 0.0  ;;  %v4270_v19 = vadd.f32 %v8503_v46, %v4181_v32  ;;  %v4173_v21 = vadd.f32 %v4172_v11, %v4012_v54  ;;  %v8968_v13 = vld [vmem:[#allocation30_spill] sm:$0xff]  ;;  %v5453_v59 = vadd.f32 %v8484_v30, %v8479_v58  ;;  %v8973_v34 = vld [vmem:[#allocation17_spill] sm:$0xff] }
 0x3d7   : > { %v5723_v62 = vpop.f32.mrf.mxu0  ;;  %v5538_v26 = vadd.f32 %v8452_v52, %v8968_v13  ;;  %v5559_v30 = vadd.f32 %v8585_v9, %v8575_v16 }
 0x3d8   : > { %4331 = vst [vmem:[%s8520_s17 + $0x60] sm:$0xff] %v4299_v29  ;;  %v4302_v38 = vmax.f32 %v4270_v19, 0.0  ;;  %v4268_v47 = vadd.f32 %v8503_v46, %v4173_v21  ;;  %v4194_v41 = vadd.f32 %v5723_v62, %v4033_v4  ;;  %v4041_v4 = vadd.f32 %v5535_v31, %v8969_v23  ;;  %v5564_v19 = vpop.f32.mrf.mxu1  ;;  %v8978_v23 = vld [vmem:[#allocation10_spill] sm:$0xff] }
 0x3d9   : > { %v4185_v15 = vpop.f32.mrf.mxu0  ;;  %v4052_v29 = vadd.f32 %v5544_v40, %v8970_v7  ;;  %v4044_v24 = vadd.f32 %v5538_v26, %v8971_v0 }
 0x3da   : > { %4334 = vst [vmem:[%s8520_s17 + $0x78] sm:$0xff] %v4302_v38  ;;  %v4300_v53 = vmax.f32 %v4268_v47, 0.0  ;;  %v4273_v18 = vadd.f32 %v8503_v46, %v4194_v41  ;;  %v4186_v42 = vadd.f32 %v4185_v15, %v4025_v48  ;;  %v4065_v47 = vadd.f32 %v5553_v20, %v8465_v45  ;;  %v5566_v15 = vpop.f32.mrf.mxu1 }
 0x3db   : > { %v5724_v3 = vpop.f32.mrf.mxu0  ;;  %v5556_v41 = vadd.f32 %v8561_v10, %v8551_v63  ;;  %v4057_v10 = vadd.f32 %v5547_v44, %v8455_v17  ;;  %v8975_v17 = vld [vmem:[#allocation36_spill] sm:$0xff] }
 0x3dc   : > { %4332 = vst [vmem:[%s8520_s17 + $0x68] sm:$0xff] %v4300_v53  ;;  %v4305_v50 = vmax.f32 %v4273_v18, 0.0  ;;  %v4271_v49 = vadd.f32 %v8503_v46, %v4186_v42  ;;  %v4197_v51 = vadd.f32 %v5724_v3, %v4036_v12  ;;  %v5565_v42 = vadd.f32 %v5564_v19, %v5563_v61  ;;  %v5567_v31 = vpop.f32.mrf.mxu1 }
 0x3dd   : > { %v4188_v33 = vpop.f32.mrf.mxu0  ;;  %v4068_v58 = vadd.f32 %v5556_v41, %v8972_v6  ;;  %v5568_v26 = vadd.f32 %v5567_v31, %v5566_v15 }
 0x3de   : > { %4337 = vst [vmem:[%s8520_s17 + $0x90] sm:$0xff] %v4305_v50  ;;  %v4303_v54 = vmax.f32 %v4271_v49, 0.0  ;;  %v4274_v8 = vadd.f32 %v8503_v46, %v4197_v51  ;;  %v4189_v55 = vadd.f32 %v4188_v33, %v4028_v28  ;;  %v3920_v28 = vadd.f32 %v5453_v59, %v8973_v34  ;;  %v8974_v49 = vld [vmem:[#allocation32_spill] sm:$0xff]  ;;  %v8976_v33 = vld [vmem:[#allocation37_spill] sm:$0xff] }
 0x3df   : > { %v5727_v5 = vpop.f32.mrf.mxu0  ;;  %v4060_v51 = vadd.f32 %v5550_v43, %v8974_v49 }
 0x3e0   : > { %4335 = vst [vmem:[%s8520_s17 + $0x80] sm:$0xff] %v4303_v54  ;;  %v4306_v32 = vmax.f32 %v4274_v8, 0.0  ;;  %v4272_v11 = vadd.f32 %v8503_v46, %v4189_v55  ;;  %v4210_v56 = vadd.f32 %v5727_v5, %v4049_v14  ;;  %v5456_v14 = vadd.f32 %v8976_v33, %v8975_v17 }
 0x3e1   : > { %v4201_v36 = vpop.f32.mrf.mxu0  ;;  %v4081_v13 = vadd.f32 %v5565_v42, %v3920_v28  ;;  %v5562_v5 = vadd.f32 %v8609_v57, %v8599_v22 }
 0x3e2   : > { %4338 = vst [vmem:[%s8520_s17 + $0x98] sm:$0xff] %v4306_v32  ;;  %v4304_v39 = vmax.f32 %v4272_v11, 0.0  ;;  %v4277_v37 = vadd.f32 %v8503_v46, %v4210_v56  ;;  %v4202_v52 = vadd.f32 %v4201_v36, %v4041_v4  ;;  %v8977_v11 = vld [vmem:[#allocation34_spill] sm:$0xff]  ;;  %v3923_v4 = vadd.f32 %v5456_v14, %v8978_v23 }
 0x3e3   : > { %v5728_v21 = vpop.f32.mrf.mxu0  ;;  %v4073_v56 = vadd.f32 %v5559_v30, %v8977_v11 }
 0x3e4   : > { %4336 = vst [vmem:[%s8520_s17 + $0x88] sm:$0xff] %v4304_v39  ;;  %v4309_v62 = vmax.f32 %v4277_v37, 0.0  ;;  %v4275_v1 = vadd.f32 %v8503_v46, %v4202_v52  ;;  %v4213_v27 = vadd.f32 %v5728_v21, %v4052_v29  ;;  %v4084_v57 = vadd.f32 %v5568_v26, %v3923_v4 }
 0x3e5   : > { %v4204_v38 = vpop.f32.mrf.mxu0 }
 0x3e6   : > { %4341 = vst [vmem:[%s8520_s17 + $0xb0] sm:$0xff] %v4309_v62  ;;  %v4307_v60 = vmax.f32 %v4275_v1, 0.0  ;;  %v4278_v48 = vadd.f32 %v8503_v46, %v4213_v27  ;;  %v4205_v2 = vadd.f32 %v4204_v38, %v4044_v24  ;;  %v8979_v24 = vld [vmem:[#allocation35_spill] sm:$0xff] }
 0x3e7   : > { %v5731_v53 = vpop.f32.mrf.mxu0  ;;  %v4076_v44 = vadd.f32 %v5562_v5, %v8979_v24 }
 0x3e8   : > { %4339 = vst [vmem:[%s8520_s17 + $0xa0] sm:$0xff] %v4307_v60  ;;  %v4310_v18 = vmax.f32 %v4278_v48, 0.0  ;;  %v4276_v45 = vadd.f32 %v8503_v46, %v4205_v2  ;;  %v4226_v63 = vadd.f32 %v5731_v53, %v4065_v47 }
 0x3e9   : > { %v4217_v25 = vpop.f32.mrf.mxu0 }
 0x3ea   : > { %4342 = vst [vmem:[%s8520_s17 + $0xb8] sm:$0xff] %v4310_v18  ;;  %v4308_v12 = vmax.f32 %v4276_v45, 0.0  ;;  %v4281_v3 = vadd.f32 %v8503_v46, %v4226_v63  ;;  %v4218_v35 = vadd.f32 %v4217_v25, %v4057_v10 }
 0x3eb   : > { %v5732_v50 = vpop.f32.mrf.mxu0 }
 0x3ec   : > { %4340 = vst [vmem:[%s8520_s17 + $0xa8] sm:$0xff] %v4308_v12  ;;  %v4313_v40 = vmax.f32 %v4281_v3, 0.0  ;;  %v4279_v54 = vadd.f32 %v8503_v46, %v4218_v35  ;;  %v4229_v8 = vadd.f32 %v5732_v50, %v4068_v58 }
 0x3ed   : > { %v4220_v55 = vpop.f32.mrf.mxu0 }
 0x3ee   : > { %4345 = vst [vmem:[%s8520_s17 + $0xd0] sm:$0xff] %v4313_v40  ;;  %v4311_v16 = vmax.f32 %v4279_v54, 0.0  ;;  %v4282_v9 = vadd.f32 %v8503_v46, %v4229_v8  ;;  %v4221_v61 = vadd.f32 %v4220_v55, %v4060_v51 }
 0x3ef   : > { %v5735_v32 = vpop.f32.mrf.mxu0 }
 0x3f0   : > { %4343 = vst [vmem:[%s8520_s17 + $0xc0] sm:$0xff] %v4311_v16  ;;  %v4314_v20 = vmax.f32 %v4282_v9, 0.0  ;;  %v4280_v36 = vadd.f32 %v8503_v46, %v4221_v61  ;;  %v4242_v39 = vadd.f32 %v5735_v32, %v4081_v13 }
 0x3f1   : > { %v4233_v37 = vpop.f32.mrf.mxu0 }
 0x3f2   : > { %4346 = vst [vmem:[%s8520_s17 + $0xd8] sm:$0xff] %v4314_v20  ;;  %v4312_v52 = vmax.f32 %v4280_v36, 0.0  ;;  %v4285_v7 = vadd.f32 %v8503_v46, %v4242_v39  ;;  %v4234_v22 = vadd.f32 %v4233_v37, %v4073_v56 }
 0x3f3   : > { %v5736_v29 = vpop.f32.mrf.mxu0 }
 0x3f4   : > { %4344 = vst [vmem:[%s8520_s17 + $0xc8] sm:$0xff] %v4312_v52  ;;  %v4317_v19 = vmax.f32 %v4285_v7, 0.0  ;;  %v4283_v21 = vadd.f32 %v8503_v46, %v4234_v22  ;;  %v4245_v0 = vadd.f32 %v5736_v29, %v4084_v57 }
 0x3f5   : > { %v4236_v62 = vpop.f32.mrf.mxu0 }
 0x3f6   : > { %4349 = vst [vmem:[%s8520_s17 + $0xf0] sm:$0xff] %v4317_v19  ;;  %v4315_v1 = vmax.f32 %v4283_v21, 0.0  ;;  %v4286_v27 = vadd.f32 %v8503_v46, %v4245_v0  ;;  %v4237_v38 = vadd.f32 %v4236_v62, %v4076_v44 }
 0x3f8   : > { %4347 = vst [vmem:[%s8520_s17 + $0xe0] sm:$0xff] %v4315_v1  ;;  %v4318_v47 = vmax.f32 %v4286_v27, 0.0  ;;  %v4284_v41 = vadd.f32 %v8503_v46, %v4237_v38 }
 0x3fa   : > { %4350 = vst [vmem:[%s8520_s17 + $0xf8] sm:$0xff] %v4318_v47  ;;  %v4316_v60 = vmax.f32 %v4284_v41, 0.0 }
 0x3fc   : > { %4348 = vst [vmem:[%s8520_s17 + $0xe8] sm:$0xff] %v4316_v60 }
 0x3fd   : > { %6038 = shalt.err (!%p6035_p0)
}
 0x3fe   : > { %s6039_s13 = scalar_lea.hbm %s8681_s28, 4096  ;;  %s6043_s15 = scalar_lea.hbm %s8735_s6, 8192 }
 0x3ff   : > { %p6040_p1 = scmp.ne.s32.totalorder %s8681_s28, %s6039_s13  ;;  %p6044_p4 = scmp.lt.s32.totalorder %s8681_s28, %s8735_s6 }
 0x400   : > { %p6045_p7 = scmp.lt.s32.totalorder %s6043_s15, %s6039_s13 }
 0x401   : > { %p6041_p2 = pnand %p6040_p1, %p6172_p5 }
 0x402   : > { %p6046_p6 = por %p6045_p7, %p6044_p4 }
 0x403   : > { %p6042_p3 = pneg %p6041_p2 }
 0x405   : > { %p6047_p8 = pnand %p6046_p6, %p6042_p3 }
 0x407   : > { %6050 = shalt.err (!%p6047_p8)
}
 0x408   : > { %s6097_s18 = smov 128   ;;  %s6098_s20 = smov 8  }
 0x409   : > { %5758 = dma.vmem_to_hbm [thread:$0]  (%p6172_p5), %s8683_s19, 4096, %s8681_s28, %s8689_s25, %s6097_s18, %s6097_s18, %s6098_s20  }
 0x40a PF: > { %p5770_p9 = scmp.ge.s32.totalorder %s6089_s24, 2  ;;  %s4380_s26 = sand.u32 1, %s6077_s21  }
 0x40b   : > { %p8980_p10 = scmp.ne.s32.totalorder %s8789_s8, 0  ;;  %s4381_s29 = scalar_lea.sflag [#allocation5], %s4380_s26 }
 0x40d   : > { %p5765_p11 = pnand %p5770_p9, %p8980_p10 }
 0x40f   : > { %p5766_p12 = pneg %p5765_p11 }
 0x411   : > { %6072 = dma.done.wait (%p5766_p12), %s4381_s29, 4096  }
 0x412   : > { %6074 = vsyncadd (%p5766_p12), %s4381_s29, 4294963200  ;;  %p17_p13 = scmp.ge.s32.totalorder %s6159_s27, 4   ;;  %s8981_s21 = smov %s6081_s22 }
 0x413   : > { %s8982_s22 = smov %s6085_s23  ;;  %s8983_s23 = smov %s6170_s30 }
 0x414   : > { %s8984_s24 = smov %s6159_s27  ;;  %19 = sbr.rel (!%p17_p13) target bundleno = 4 (0x4), region = 86 }
 0x419   :  { %4386 = vsyncpa [#allocation4], 1 }
 0x41a   :  { %4388 = vsyncpa [#allocation4 + $0x1], 1 }
 0x41b   :  { %4389 = vsyncpa [#allocation5], 1 }
 0x41c   :  { %4391 = vsyncpa [#allocation5 + $0x1], 1 }

</bundles_post_ra>
